<compile_context>
chip_gen: v7x
topology: tpu7x:2x2x1
jax: 0.10.0
libtpu: 0.0.40
codegen_flags: <defaults>
</compile_context>

<pallas_src>
import functools

import jax
import jax.numpy as jnp
from jax.experimental import pallas as pl
from jax.experimental.pallas import tpu as pltpu


# ---------------------------------------------------------------------------
# In-kernel helpers (traced inside the fused kernel; everything stays in vregs)
# ---------------------------------------------------------------------------
def _maxpool_2x2(a):
    """2x2 / stride-2 max pool of an (H, W, C) value.

    H pairs via an outer-dim split (layout-free); W pairs via unit-stride
    column slices + one concat -- no stride-2 sublane loads, no sublane-dim
    splitting reshapes.
    """
    hh, ww, cc = a.shape
    a = a.reshape(hh // 2, 2, ww, cc)
    a = jnp.maximum(a[:, 0], a[:, 1])                           # (hh//2, ww, cc)
    cols = [jnp.maximum(a[:, j:j + 1, :], a[:, j + 1:j + 2, :])
            for j in range(0, ww, 2)]
    return jnp.concatenate(cols, axis=1)                        # (hh//2, ww//2, cc)


def _im2col_3x3(a):
    """(H, W, C) -> (H*W, 9*C) im2col slab for a 3x3 'same' conv.

    The 1-px zero halo is folded into the slab build (zero rows / columns are
    concatenated), so there is no padded scratch buffer, no full-buffer zero
    fill and no unaligned interior store.  Column order is (kh, kw, cin),
    matching the (9*Cin, Cout) weight layout from prepare_params.
    """
    hh, ww, cc = a.shape
    zrow = jnp.zeros((1, ww, cc), a.dtype)
    zcol = jnp.zeros((hh, 1, cc), a.dtype)
    shifted_h = (
        jnp.concatenate([zrow, a[:hh - 1]], axis=0),            # kh = 0 -> x[i-1]
        a,                                                      # kh = 1 -> x[i]
        jnp.concatenate([a[1:], zrow], axis=0),                 # kh = 2 -> x[i+1]
    )
    cols = []
    for hs in shifted_h:
        cols.append(jnp.concatenate([zcol, hs[:, :ww - 1, :]], axis=1))   # kw = 0
        cols.append(hs)                                                   # kw = 1
        cols.append(jnp.concatenate([hs[:, 1:, :], zcol], axis=1))        # kw = 2
    cols = [c.reshape(hh * ww, cc) for c in cols]
    return jnp.concatenate(cols, axis=-1)                       # (H*W, 9*C)


# ---------------------------------------------------------------------------
# The fused forward kernel (one image per grid step)
# ---------------------------------------------------------------------------
def _wake_word_kernel(x_ref, w1_ref, b1_ref, w2_ref, b2_ref, w3_ref, b3_ref,
                      fc1w_ref, fc1b_ref, fc2w_ref, fc2b_ref, out_ref,
                      *, h0, w0):
    h1, w1 = h0 // 2, w0 // 2
    h2, w2 = h1 // 2, w1 // 2
    h3, w3 = h2 // 2, w2 // 2

    # ---- conv1 (1 -> 32): VPU, f32.  One hoisted lane-broadcast, 9 tap FMAs.
    xb = jnp.broadcast_to(x_ref[...], (h0 + 2, w0 + 2, 32))     # (.,.,1)->(.,.,32) once
    w1_all = w1_ref[...]                                        # (9, 32)
    acc1 = jnp.zeros((h0, w0, 32), jnp.float32)
    for kh in range(3):
        for kw in range(3):
            tap = kh * 3 + kw
            acc1 = acc1 + xb[kh:kh + h0, kw:kw + w0, :] * w1_all[tap:tap + 1, :]
    c1 = jnp.maximum(acc1 + b1_ref[...], 0.0)                   # (h0, w0, 32)

    # ---- pool1, single f32->bf16 cast of the conv2 input
    p1 = _maxpool_2x2(c1).astype(jnp.bfloat16)                  # (h1, w1, 32)

    # ---- conv2 (32 -> 64): ONE MXU matmul, K = 9*32 = 288
    slab2 = _im2col_3x3(p1)                                     # (h1*w1, 288) bf16
    c2 = jnp.dot(slab2, w2_ref[...], preferred_element_type=jnp.float32)
    c2 = jnp.maximum(c2 + b2_ref[...], 0.0).reshape(h1, w1, 64)

    # ---- pool2, single cast
    p2 = _maxpool_2x2(c2).astype(jnp.bfloat16)                  # (h2, w2, 64)

    # ---- conv3 (64 -> 128): ONE MXU matmul, K = 9*64 = 576
    slab3 = _im2col_3x3(p2)                                     # (h2*w2, 576) bf16
    c3 = jnp.dot(slab3, w3_ref[...], preferred_element_type=jnp.float32)
    c3 = jnp.maximum(c3 + b3_ref[...], 0.0).reshape(h2, w2, 128)

    # ---- pool3 + adaptive average pool -> (1, 128) feature row
    p3 = _maxpool_2x2(c3)                                       # (h3, w3, 128) f32
    feat = jnp.sum(p3.reshape(h3 * w3, 128), axis=0, keepdims=True) * (1.0 / (h3 * w3))

    # ---- FC head: fc1 on the MXU + ReLU; fc2 as VPU multiply + lane reduce; sigmoid
    h = jnp.dot(feat.astype(jnp.bfloat16), fc1w_ref[...],
                preferred_element_type=jnp.float32)
    h = jnp.maximum(h + fc1b_ref[...], 0.0)                     # (1, 128)
    logit = jnp.sum(h * fc2w_ref[...], axis=1, keepdims=True) + fc2b_ref[...]
    out_ref[...] = jnp.broadcast_to(jax.nn.sigmoid(logit), (1, 128)).astype(out_ref.dtype)


# ---------------------------------------------------------------------------
# Parameters: torch-like init + one-time kernel-ready re-layout
# ---------------------------------------------------------------------------
def init_params(key):
    """Deterministic synthetic parameters (shapes from WakeWordModel.__init__)."""
    ks = jax.random.split(key, 10)

    def conv_w(k, cout, cin):
        scale = 1.0 / jnp.sqrt(cin * 9.0)
        return jax.random.uniform(k, (cout, cin, 3, 3), jnp.float32, -scale, scale)

    def lin_w(k, cin, cout):  # stored as (in, out) — transpose of torch Linear
        scale = 1.0 / jnp.sqrt(float(cin))
        return jax.random.uniform(k, (cin, cout), jnp.float32, -scale, scale)

    return {
        "conv1_w": conv_w(ks[0], 32, 1),
        "conv1_b": jax.random.uniform(ks[1], (32,), jnp.float32, -0.3, 0.3),
        "conv2_w": conv_w(ks[2], 64, 32),
        "conv2_b": jax.random.uniform(ks[3], (64,), jnp.float32, -0.1, 0.1),
        "conv3_w": conv_w(ks[4], 128, 64),
        "conv3_b": jax.random.uniform(ks[5], (128,), jnp.float32, -0.1, 0.1),
        "fc1_w": lin_w(ks[6], 128, 128),
        "fc1_b": jax.random.uniform(ks[7], (128,), jnp.float32, -0.1, 0.1),
        "fc2_w": lin_w(ks[8], 128, 1),
        "fc2_b": jax.random.uniform(ks[9], (1,), jnp.float32, -0.1, 0.1),
    }


def _prep_conv_w(w_oihw, dtype):
    cout, cin, kh, kw = w_oihw.shape
    # OIHW -> (kh, kw, cin, cout) -> (kh*kw*cin, cout): matches im2col column order.
    return jnp.transpose(w_oihw, (2, 3, 1, 0)).reshape(kh * kw * cin, cout).astype(dtype)


def prepare_params(params):
    """One-time weight re-layout (done outside the jitted forward)."""
    return {
        "w1": _prep_conv_w(params["conv1_w"], jnp.float32),      # (9, 32)   VPU path
        "b1": params["conv1_b"].reshape(1, 32).astype(jnp.float32),
        "w2": _prep_conv_w(params["conv2_w"], jnp.bfloat16),     # (288, 64) big-K
        "b2": params["conv2_b"].reshape(1, 64).astype(jnp.float32),
        "w3": _prep_conv_w(params["conv3_w"], jnp.bfloat16),     # (576, 128) big-K
        "b3": params["conv3_b"].reshape(1, 128).astype(jnp.float32),
        "fc1_w": params["fc1_w"].astype(jnp.bfloat16),           # (128, 128) (in, out)
        "fc1_b": params["fc1_b"].reshape(1, 128).astype(jnp.float32),
        "fc2_w": params["fc2_w"].reshape(1, 128).astype(jnp.float32),
        "fc2_b": params["fc2_b"].reshape(1, 1).astype(jnp.float32),
    }


def _resident_spec(a):
    """Whole-array VMEM block, constant index across the batch grid (loaded once)."""
    zeros = (0,) * a.ndim
    return pl.BlockSpec(a.shape, lambda i, _z=zeros: _z)


# ---------------------------------------------------------------------------
# Forward wrapper: one fused pallas_call, batch = parallel grid axis
# ---------------------------------------------------------------------------
@jax.jit
def wake_word_forward(x_nchw, prep):
    n, cin, h0, w0 = x_nchw.shape
    assert cin == 1 and h0 % 8 == 0 and w0 % 8 == 0, (n, cin, h0, w0)

    # NCHW -> NHWC + conv1 zero padding (once, in XLA); kernel never re-pads.
    x = jnp.transpose(x_nchw, (0, 2, 3, 1)).astype(jnp.float32)
    xp = jnp.pad(x, ((0, 0), (1, 1), (1, 1), (0, 0)))            # (n, h0+2, w0+2, 1)

    h1, w1 = h0 // 2, w0 // 2
    h2, w2 = h1 // 2, w1 // 2

    weight_args = (prep["w1"], prep["b1"], prep["w2"], prep["b2"], prep["w3"],
                   prep["b3"], prep["fc1_w"], prep["fc1_b"], prep["fc2_w"],
                   prep["fc2_b"])

    flops_per_img = (2 * 9 * h0 * w0 * 1 * 32
                     + 2 * 9 * h1 * w1 * 32 * 64
                     + 2 * 9 * h2 * w2 * 64 * 128
                     + 2 * 128 * 128 + 2 * 128)
    bytes_accessed = int(xp.size * 4
                         + sum(a.size * a.dtype.itemsize for a in weight_args)
                         + n * 128 * 4)

    kern = functools.partial(_wake_word_kernel, h0=h0, w0=w0)
    out = pl.pallas_call(
        kern,
        grid=(n,),
        out_shape=jax.ShapeDtypeStruct((n, 1, 128), jnp.float32),
        in_specs=[pl.BlockSpec((None, h0 + 2, w0 + 2, 1), lambda i: (i, 0, 0, 0))]
                 + [_resident_spec(a) for a in weight_args],
        out_specs=pl.BlockSpec((None, 1, 128), lambda i: (i, 0, 0)),
        compiler_params=pltpu.CompilerParams(
            dimension_semantics=("parallel",),
            vmem_limit_bytes=32 * 1024 * 1024),
        cost_estimate=pl.CostEstimate(flops=n * flops_per_img,
                                      transcendentals=n,
                                      bytes_accessed=bytes_accessed),
    )(xp, *weight_args)
    return out[:, 0, :1]                                          # (n, 1)


# ---------------------------------------------------------------------------
# Pure-JAX f32 reference (PyTorch-equivalent forward) for validation
# ---------------------------------------------------------------------------
def reference_forward(x_nchw, params):
    def conv_relu(x, w, b):
        y = jax.lax.conv_general_dilated(
            x, w, window_strides=(1, 1), padding=((1, 1), (1, 1)),
            dimension_numbers=("NCHW", "OIHW", "NCHW"))
        return jax.nn.relu(y + b.reshape(1, -1, 1, 1))

    def pool(x):
        return jax.lax.reduce_window(x, -jnp.inf, jax.lax.max,
                                     (1, 1, 2, 2), (1, 1, 2, 2), "VALID")

    x = pool(conv_relu(x_nchw, params["conv1_w"], params["conv1_b"]))
    x = pool(conv_relu(x, params["conv2_w"], params["conv2_b"]))
    x = pool(conv_relu(x, params["conv3_w"], params["conv3_b"]))
    x = jnp.mean(x, axis=(2, 3))                     # AdaptiveAvgPool2d((1,1)) + flatten
    x = jax.nn.relu(x @ params["fc1_w"] + params["fc1_b"])
    return jax.nn.sigmoid(x @ params["fc2_w"] + params["fc2_b"])


if __name__ == "__main__":
    key = jax.random.PRNGKey(0)
    k_x, k_p = jax.random.split(key)
    x = jax.random.normal(k_x, (2, 1, 16, 16), jnp.float32)          # NCHW, 1 channel
    params = init_params(k_p)
    prep = prepare_params(params)                                    # one-time re-layout

    out = jax.block_until_ready(wake_word_forward(x, prep))
    assert out.shape == (2, 1), out.shape
    assert bool(jnp.all(jnp.isfinite(out)))
    assert bool(jnp.all((out >= 0.0) & (out <= 1.0)))                # sigmoid range

    ref = jax.block_until_ready(reference_forward(x, params))
    max_err = float(jnp.max(jnp.abs(out - ref)))
    assert max_err < 2e-2, f"mismatch vs f32 reference: {max_err}"   # bf16-operand tolerance
    print("KERNEL_OK")
</pallas_src>

<mosaic_0001>
module attributes {stable_mosaic.version = 11 : i64} {
  func.func @_wake_word_kernel(%arg0: i32, %arg1: memref<1x18x18x1xf32, #tpu.memory_space<vmem>>, %arg2: memref<9x32xf32, #tpu.memory_space<vmem>>, %arg3: memref<1x32xf32, #tpu.memory_space<vmem>>, %arg4: memref<288x64xbf16, #tpu.memory_space<vmem>>, %arg5: memref<1x64xf32, #tpu.memory_space<vmem>>, %arg6: memref<576x128xbf16, #tpu.memory_space<vmem>>, %arg7: memref<1x128xf32, #tpu.memory_space<vmem>>, %arg8: memref<128x128xbf16, #tpu.memory_space<vmem>>, %arg9: memref<1x128xf32, #tpu.memory_space<vmem>>, %arg10: memref<1x128xf32, #tpu.memory_space<vmem>>, %arg11: memref<1x1xf32, #tpu.memory_space<vmem>>, %arg12: memref<1x1x128xf32, #tpu.memory_space<vmem>>) attributes {dimension_semantics = [#tpu.dimension_semantics<parallel>], iteration_bounds = array<i64: 2>, scalar_prefetch = 0 : i64, scratch_operands = 0 : i64, tpu.core_type = #tpu.core_type<tc>, window_params = [{transform_indices = @transform_0, window_bounds = array<i64: 1, 18, 18, 1>}, {pipeline_mode = #tpu.pipeline_mode<synchronous>, transform_indices = @transform_1, window_bounds = array<i64: 9, 32>}, {pipeline_mode = #tpu.pipeline_mode<synchronous>, transform_indices = @transform_2, window_bounds = array<i64: 1, 32>}, {pipeline_mode = #tpu.pipeline_mode<synchronous>, transform_indices = @transform_3, window_bounds = array<i64: 288, 64>}, {pipeline_mode = #tpu.pipeline_mode<synchronous>, transform_indices = @transform_4, window_bounds = array<i64: 1, 64>}, {pipeline_mode = #tpu.pipeline_mode<synchronous>, transform_indices = @transform_5, window_bounds = array<i64: 576, 128>}, {pipeline_mode = #tpu.pipeline_mode<synchronous>, transform_indices = @transform_6, window_bounds = array<i64: 1, 128>}, {pipeline_mode = #tpu.pipeline_mode<synchronous>, transform_indices = @transform_7, window_bounds = array<i64: 128, 128>}, {pipeline_mode = #tpu.pipeline_mode<synchronous>, transform_indices = @transform_8, window_bounds = array<i64: 1, 128>}, {pipeline_mode = #tpu.pipeline_mode<synchronous>, transform_indices = @transform_9, window_bounds = array<i64: 1, 128>}, {pipeline_mode = #tpu.pipeline_mode<synchronous>, transform_indices = @transform_10, window_bounds = array<i64: 1, 1>}, {transform_indices = @transform_11, window_bounds = array<i64: 1, 1, 128>}]} {
    %c0 = arith.constant 0 : index
    %c0_0 = arith.constant 0 : index
    %c0_1 = arith.constant 0 : index
    %c0_2 = arith.constant 0 : index
    %0 = vector.load %arg1[%c0, %c0_0, %c0_1, %c0_2] : memref<1x18x18x1xf32, #tpu.memory_space<vmem>>, vector<1x18x18x1xf32>
    %1 = vector.shape_cast %0 : vector<1x18x18x1xf32> to vector<18x18x1xf32>
    %2 = vector.shape_cast %1 : vector<18x18x1xf32> to vector<18x18x1xf32>
    %3 = vector.broadcast %2 : vector<18x18x1xf32> to vector<18x18x32xf32>
    %c0_3 = arith.constant 0 : index
    %c0_4 = arith.constant 0 : index
    %4 = vector.load %arg2[%c0_3, %c0_4] : memref<9x32xf32, #tpu.memory_space<vmem>>, vector<9x32xf32>
    %cst = arith.constant 0.000000e+00 : f32
    %5 = vector.broadcast %cst : f32 to vector<16x16x32xf32>
    %6 = vector.extract_strided_slice %3 {offsets = [0, 0, 0], sizes = [16, 16, 32], strides = [1, 1, 1]} : vector<18x18x32xf32> to vector<16x16x32xf32>
    %7 = vector.extract_strided_slice %4 {offsets = [0, 0], sizes = [1, 32], strides = [1, 1]} : vector<9x32xf32> to vector<1x32xf32>
    %8 = vector.shape_cast %7 : vector<1x32xf32> to vector<1x1x32xf32>
    %9 = vector.broadcast %8 : vector<1x1x32xf32> to vector<16x16x32xf32>
    %10 = arith.mulf %6, %9 : vector<16x16x32xf32>
    %11 = arith.addf %5, %10 : vector<16x16x32xf32>
    %12 = vector.extract_strided_slice %3 {offsets = [0, 1, 0], sizes = [16, 16, 32], strides = [1, 1, 1]} : vector<18x18x32xf32> to vector<16x16x32xf32>
    %13 = vector.extract_strided_slice %4 {offsets = [1, 0], sizes = [1, 32], strides = [1, 1]} : vector<9x32xf32> to vector<1x32xf32>
    %14 = vector.shape_cast %13 : vector<1x32xf32> to vector<1x1x32xf32>
    %15 = vector.broadcast %14 : vector<1x1x32xf32> to vector<16x16x32xf32>
    %16 = arith.mulf %12, %15 : vector<16x16x32xf32>
    %17 = arith.addf %11, %16 : vector<16x16x32xf32>
    %18 = vector.extract_strided_slice %3 {offsets = [0, 2, 0], sizes = [16, 16, 32], strides = [1, 1, 1]} : vector<18x18x32xf32> to vector<16x16x32xf32>
    %19 = vector.extract_strided_slice %4 {offsets = [2, 0], sizes = [1, 32], strides = [1, 1]} : vector<9x32xf32> to vector<1x32xf32>
    %20 = vector.shape_cast %19 : vector<1x32xf32> to vector<1x1x32xf32>
    %21 = vector.broadcast %20 : vector<1x1x32xf32> to vector<16x16x32xf32>
    %22 = arith.mulf %18, %21 : vector<16x16x32xf32>
    %23 = arith.addf %17, %22 : vector<16x16x32xf32>
    %24 = vector.extract_strided_slice %3 {offsets = [1, 0, 0], sizes = [16, 16, 32], strides = [1, 1, 1]} : vector<18x18x32xf32> to vector<16x16x32xf32>
    %25 = vector.extract_strided_slice %4 {offsets = [3, 0], sizes = [1, 32], strides = [1, 1]} : vector<9x32xf32> to vector<1x32xf32>
    %26 = vector.shape_cast %25 : vector<1x32xf32> to vector<1x1x32xf32>
    %27 = vector.broadcast %26 : vector<1x1x32xf32> to vector<16x16x32xf32>
    %28 = arith.mulf %24, %27 : vector<16x16x32xf32>
    %29 = arith.addf %23, %28 : vector<16x16x32xf32>
    %30 = vector.extract_strided_slice %3 {offsets = [1, 1, 0], sizes = [16, 16, 32], strides = [1, 1, 1]} : vector<18x18x32xf32> to vector<16x16x32xf32>
    %31 = vector.extract_strided_slice %4 {offsets = [4, 0], sizes = [1, 32], strides = [1, 1]} : vector<9x32xf32> to vector<1x32xf32>
    %32 = vector.shape_cast %31 : vector<1x32xf32> to vector<1x1x32xf32>
    %33 = vector.broadcast %32 : vector<1x1x32xf32> to vector<16x16x32xf32>
    %34 = arith.mulf %30, %33 : vector<16x16x32xf32>
    %35 = arith.addf %29, %34 : vector<16x16x32xf32>
    %36 = vector.extract_strided_slice %3 {offsets = [1, 2, 0], sizes = [16, 16, 32], strides = [1, 1, 1]} : vector<18x18x32xf32> to vector<16x16x32xf32>
    %37 = vector.extract_strided_slice %4 {offsets = [5, 0], sizes = [1, 32], strides = [1, 1]} : vector<9x32xf32> to vector<1x32xf32>
    %38 = vector.shape_cast %37 : vector<1x32xf32> to vector<1x1x32xf32>
    %39 = vector.broadcast %38 : vector<1x1x32xf32> to vector<16x16x32xf32>
    %40 = arith.mulf %36, %39 : vector<16x16x32xf32>
    %41 = arith.addf %35, %40 : vector<16x16x32xf32>
    %42 = vector.extract_strided_slice %3 {offsets = [2, 0, 0], sizes = [16, 16, 32], strides = [1, 1, 1]} : vector<18x18x32xf32> to vector<16x16x32xf32>
    %43 = vector.extract_strided_slice %4 {offsets = [6, 0], sizes = [1, 32], strides = [1, 1]} : vector<9x32xf32> to vector<1x32xf32>
    %44 = vector.shape_cast %43 : vector<1x32xf32> to vector<1x1x32xf32>
    %45 = vector.broadcast %44 : vector<1x1x32xf32> to vector<16x16x32xf32>
    %46 = arith.mulf %42, %45 : vector<16x16x32xf32>
    %47 = arith.addf %41, %46 : vector<16x16x32xf32>
    %48 = vector.extract_strided_slice %3 {offsets = [2, 1, 0], sizes = [16, 16, 32], strides = [1, 1, 1]} : vector<18x18x32xf32> to vector<16x16x32xf32>
    %49 = vector.extract_strided_slice %4 {offsets = [7, 0], sizes = [1, 32], strides = [1, 1]} : vector<9x32xf32> to vector<1x32xf32>
    %50 = vector.shape_cast %49 : vector<1x32xf32> to vector<1x1x32xf32>
    %51 = vector.broadcast %50 : vector<1x1x32xf32> to vector<16x16x32xf32>
    %52 = arith.mulf %48, %51 : vector<16x16x32xf32>
    %53 = arith.addf %47, %52 : vector<16x16x32xf32>
    %54 = vector.extract_strided_slice %3 {offsets = [2, 2, 0], sizes = [16, 16, 32], strides = [1, 1, 1]} : vector<18x18x32xf32> to vector<16x16x32xf32>
    %55 = vector.extract_strided_slice %4 {offsets = [8, 0], sizes = [1, 32], strides = [1, 1]} : vector<9x32xf32> to vector<1x32xf32>
    %56 = vector.shape_cast %55 : vector<1x32xf32> to vector<1x1x32xf32>
    %57 = vector.broadcast %56 : vector<1x1x32xf32> to vector<16x16x32xf32>
    %58 = arith.mulf %54, %57 : vector<16x16x32xf32>
    %59 = arith.addf %53, %58 : vector<16x16x32xf32>
    %c0_5 = arith.constant 0 : index
    %c0_6 = arith.constant 0 : index
    %60 = vector.load %arg3[%c0_5, %c0_6] : memref<1x32xf32, #tpu.memory_space<vmem>>, vector<1x32xf32>
    %61 = vector.shape_cast %60 : vector<1x32xf32> to vector<1x1x32xf32>
    %62 = vector.broadcast %61 : vector<1x1x32xf32> to vector<16x16x32xf32>
    %63 = arith.addf %59, %62 : vector<16x16x32xf32>
    %cst_7 = arith.constant 0.000000e+00 : f32
    %64 = vector.broadcast %cst_7 : f32 to vector<16x16x32xf32>
    %65 = arith.maximumf %63, %64 : vector<16x16x32xf32>
    %66 = vector.shape_cast %65 : vector<16x16x32xf32> to vector<8x2x16x32xf32>
    %67 = vector.extract_strided_slice %66 {offsets = [0, 0, 0, 0], sizes = [8, 1, 16, 32], strides = [1, 1, 1, 1]} : vector<8x2x16x32xf32> to vector<8x1x16x32xf32>
    %68 = vector.shape_cast %67 : vector<8x1x16x32xf32> to vector<8x16x32xf32>
    %69 = vector.extract_strided_slice %66 {offsets = [0, 1, 0, 0], sizes = [8, 1, 16, 32], strides = [1, 1, 1, 1]} : vector<8x2x16x32xf32> to vector<8x1x16x32xf32>
    %70 = vector.shape_cast %69 : vector<8x1x16x32xf32> to vector<8x16x32xf32>
    %71 = arith.maximumf %68, %70 : vector<8x16x32xf32>
    %72 = vector.extract_strided_slice %71 {offsets = [0, 0, 0], sizes = [8, 1, 32], strides = [1, 1, 1]} : vector<8x16x32xf32> to vector<8x1x32xf32>
    %73 = vector.extract_strided_slice %71 {offsets = [0, 1, 0], sizes = [8, 1, 32], strides = [1, 1, 1]} : vector<8x16x32xf32> to vector<8x1x32xf32>
    %74 = arith.maximumf %72, %73 : vector<8x1x32xf32>
    %75 = vector.extract_strided_slice %71 {offsets = [0, 2, 0], sizes = [8, 1, 32], strides = [1, 1, 1]} : vector<8x16x32xf32> to vector<8x1x32xf32>
    %76 = vector.extract_strided_slice %71 {offsets = [0, 3, 0], sizes = [8, 1, 32], strides = [1, 1, 1]} : vector<8x16x32xf32> to vector<8x1x32xf32>
    %77 = arith.maximumf %75, %76 : vector<8x1x32xf32>
    %78 = vector.extract_strided_slice %71 {offsets = [0, 4, 0], sizes = [8, 1, 32], strides = [1, 1, 1]} : vector<8x16x32xf32> to vector<8x1x32xf32>
    %79 = vector.extract_strided_slice %71 {offsets = [0, 5, 0], sizes = [8, 1, 32], strides = [1, 1, 1]} : vector<8x16x32xf32> to vector<8x1x32xf32>
    %80 = arith.maximumf %78, %79 : vector<8x1x32xf32>
    %81 = vector.extract_strided_slice %71 {offsets = [0, 6, 0], sizes = [8, 1, 32], strides = [1, 1, 1]} : vector<8x16x32xf32> to vector<8x1x32xf32>
    %82 = vector.extract_strided_slice %71 {offsets = [0, 7, 0], sizes = [8, 1, 32], strides = [1, 1, 1]} : vector<8x16x32xf32> to vector<8x1x32xf32>
    %83 = arith.maximumf %81, %82 : vector<8x1x32xf32>
    %84 = vector.extract_strided_slice %71 {offsets = [0, 8, 0], sizes = [8, 1, 32], strides = [1, 1, 1]} : vector<8x16x32xf32> to vector<8x1x32xf32>
    %85 = vector.extract_strided_slice %71 {offsets = [0, 9, 0], sizes = [8, 1, 32], strides = [1, 1, 1]} : vector<8x16x32xf32> to vector<8x1x32xf32>
    %86 = arith.maximumf %84, %85 : vector<8x1x32xf32>
    %87 = vector.extract_strided_slice %71 {offsets = [0, 10, 0], sizes = [8, 1, 32], strides = [1, 1, 1]} : vector<8x16x32xf32> to vector<8x1x32xf32>
    %88 = vector.extract_strided_slice %71 {offsets = [0, 11, 0], sizes = [8, 1, 32], strides = [1, 1, 1]} : vector<8x16x32xf32> to vector<8x1x32xf32>
    %89 = arith.maximumf %87, %88 : vector<8x1x32xf32>
    %90 = vector.extract_strided_slice %71 {offsets = [0, 12, 0], sizes = [8, 1, 32], strides = [1, 1, 1]} : vector<8x16x32xf32> to vector<8x1x32xf32>
    %91 = vector.extract_strided_slice %71 {offsets = [0, 13, 0], sizes = [8, 1, 32], strides = [1, 1, 1]} : vector<8x16x32xf32> to vector<8x1x32xf32>
    %92 = arith.maximumf %90, %91 : vector<8x1x32xf32>
    %93 = vector.extract_strided_slice %71 {offsets = [0, 14, 0], sizes = [8, 1, 32], strides = [1, 1, 1]} : vector<8x16x32xf32> to vector<8x1x32xf32>
    %94 = vector.extract_strided_slice %71 {offsets = [0, 15, 0], sizes = [8, 1, 32], strides = [1, 1, 1]} : vector<8x16x32xf32> to vector<8x1x32xf32>
    %95 = arith.maximumf %93, %94 : vector<8x1x32xf32>
    %96 = tpu.concatenate %74, %77, %80, %83, %86, %89, %92, %95 in 1 : vector<8x1x32xf32>, vector<8x1x32xf32>, vector<8x1x32xf32>, vector<8x1x32xf32>, vector<8x1x32xf32>, vector<8x1x32xf32>, vector<8x1x32xf32>, vector<8x1x32xf32> -> vector<8x8x32xf32>
    %97 = arith.truncf %96 : vector<8x8x32xf32> to vector<8x8x32xbf16>
    %cst_8 = arith.constant 0.000000e+00 : bf16
    %98 = vector.broadcast %cst_8 : bf16 to vector<1x8x32xbf16>
    %cst_9 = arith.constant 0.000000e+00 : bf16
    %99 = vector.broadcast %cst_9 : bf16 to vector<8x1x32xbf16>
    %100 = vector.extract_strided_slice %97 {offsets = [0, 0, 0], sizes = [7, 8, 32], strides = [1, 1, 1]} : vector<8x8x32xbf16> to vector<7x8x32xbf16>
    %101 = tpu.concatenate %98, %100 in 0 : vector<1x8x32xbf16>, vector<7x8x32xbf16> -> vector<8x8x32xbf16>
    %102 = vector.extract_strided_slice %97 {offsets = [1, 0, 0], sizes = [7, 8, 32], strides = [1, 1, 1]} : vector<8x8x32xbf16> to vector<7x8x32xbf16>
    %103 = tpu.concatenate %102, %98 in 0 : vector<7x8x32xbf16>, vector<1x8x32xbf16> -> vector<8x8x32xbf16>
    %104 = vector.extract_strided_slice %101 {offsets = [0, 0, 0], sizes = [8, 7, 32], strides = [1, 1, 1]} : vector<8x8x32xbf16> to vector<8x7x32xbf16>
    %105 = tpu.concatenate %99, %104 in 1 : vector<8x1x32xbf16>, vector<8x7x32xbf16> -> vector<8x8x32xbf16>
    %106 = vector.extract_strided_slice %101 {offsets = [0, 1, 0], sizes = [8, 7, 32], strides = [1, 1, 1]} : vector<8x8x32xbf16> to vector<8x7x32xbf16>
    %107 = tpu.concatenate %106, %99 in 1 : vector<8x7x32xbf16>, vector<8x1x32xbf16> -> vector<8x8x32xbf16>
    %108 = vector.extract_strided_slice %97 {offsets = [0, 0, 0], sizes = [8, 7, 32], strides = [1, 1, 1]} : vector<8x8x32xbf16> to vector<8x7x32xbf16>
    %109 = tpu.concatenate %99, %108 in 1 : vector<8x1x32xbf16>, vector<8x7x32xbf16> -> vector<8x8x32xbf16>
    %110 = vector.extract_strided_slice %97 {offsets = [0, 1, 0], sizes = [8, 7, 32], strides = [1, 1, 1]} : vector<8x8x32xbf16> to vector<8x7x32xbf16>
    %111 = tpu.concatenate %110, %99 in 1 : vector<8x7x32xbf16>, vector<8x1x32xbf16> -> vector<8x8x32xbf16>
    %112 = vector.extract_strided_slice %103 {offsets = [0, 0, 0], sizes = [8, 7, 32], strides = [1, 1, 1]} : vector<8x8x32xbf16> to vector<8x7x32xbf16>
    %113 = tpu.concatenate %99, %112 in 1 : vector<8x1x32xbf16>, vector<8x7x32xbf16> -> vector<8x8x32xbf16>
    %114 = vector.extract_strided_slice %103 {offsets = [0, 1, 0], sizes = [8, 7, 32], strides = [1, 1, 1]} : vector<8x8x32xbf16> to vector<8x7x32xbf16>
    %115 = tpu.concatenate %114, %99 in 1 : vector<8x7x32xbf16>, vector<8x1x32xbf16> -> vector<8x8x32xbf16>
    %116 = vector.shape_cast %105 : vector<8x8x32xbf16> to vector<64x32xbf16>
    %117 = vector.shape_cast %101 : vector<8x8x32xbf16> to vector<64x32xbf16>
    %118 = vector.shape_cast %107 : vector<8x8x32xbf16> to vector<64x32xbf16>
    %119 = vector.shape_cast %109 : vector<8x8x32xbf16> to vector<64x32xbf16>
    %120 = vector.shape_cast %97 : vector<8x8x32xbf16> to vector<64x32xbf16>
    %121 = vector.shape_cast %111 : vector<8x8x32xbf16> to vector<64x32xbf16>
    %122 = vector.shape_cast %113 : vector<8x8x32xbf16> to vector<64x32xbf16>
    %123 = vector.shape_cast %103 : vector<8x8x32xbf16> to vector<64x32xbf16>
    %124 = vector.shape_cast %115 : vector<8x8x32xbf16> to vector<64x32xbf16>
    %125 = tpu.concatenate %116, %117, %118, %119, %120, %121, %122, %123, %124 in 1 : vector<64x32xbf16>, vector<64x32xbf16>, vector<64x32xbf16>, vector<64x32xbf16>, vector<64x32xbf16>, vector<64x32xbf16>, vector<64x32xbf16>, vector<64x32xbf16>, vector<64x32xbf16> -> vector<64x288xbf16>
    %c0_10 = arith.constant 0 : index
    %c0_11 = arith.constant 0 : index
    %126 = vector.load %arg4[%c0_10, %c0_11] : memref<288x64xbf16, #tpu.memory_space<vmem>>, vector<288x64xbf16>
    %cst_12 = arith.constant dense<0.000000e+00> : vector<64x64xf32>
    %127 = tpu.matmul %125, %126, %cst_12 {dimension_numbers = #tpu.dot_dimension_numbers<[1], [0], [0], [1], [0, 0, 1, 1], [], []>} : vector<64x288xbf16>, vector<288x64xbf16>, vector<64x64xf32> -> vector<64x64xf32>
    %c0_13 = arith.constant 0 : index
    %c0_14 = arith.constant 0 : index
    %128 = vector.load %arg5[%c0_13, %c0_14] : memref<1x64xf32, #tpu.memory_space<vmem>>, vector<1x64xf32>
    %129 = vector.broadcast %128 : vector<1x64xf32> to vector<64x64xf32>
    %130 = arith.addf %127, %129 : vector<64x64xf32>
    %cst_15 = arith.constant 0.000000e+00 : f32
    %131 = vector.broadcast %cst_15 : f32 to vector<64x64xf32>
    %132 = arith.maximumf %130, %131 : vector<64x64xf32>
    %133 = vector.shape_cast %132 : vector<64x64xf32> to vector<8x8x64xf32>
    %134 = vector.shape_cast %133 : vector<8x8x64xf32> to vector<4x2x8x64xf32>
    %135 = vector.extract_strided_slice %134 {offsets = [0, 0, 0, 0], sizes = [4, 1, 8, 64], strides = [1, 1, 1, 1]} : vector<4x2x8x64xf32> to vector<4x1x8x64xf32>
    %136 = vector.shape_cast %135 : vector<4x1x8x64xf32> to vector<4x8x64xf32>
    %137 = vector.extract_strided_slice %134 {offsets = [0, 1, 0, 0], sizes = [4, 1, 8, 64], strides = [1, 1, 1, 1]} : vector<4x2x8x64xf32> to vector<4x1x8x64xf32>
    %138 = vector.shape_cast %137 : vector<4x1x8x64xf32> to vector<4x8x64xf32>
    %139 = arith.maximumf %136, %138 : vector<4x8x64xf32>
    %140 = vector.extract_strided_slice %139 {offsets = [0, 0, 0], sizes = [4, 1, 64], strides = [1, 1, 1]} : vector<4x8x64xf32> to vector<4x1x64xf32>
    %141 = vector.extract_strided_slice %139 {offsets = [0, 1, 0], sizes = [4, 1, 64], strides = [1, 1, 1]} : vector<4x8x64xf32> to vector<4x1x64xf32>
    %142 = arith.maximumf %140, %141 : vector<4x1x64xf32>
    %143 = vector.extract_strided_slice %139 {offsets = [0, 2, 0], sizes = [4, 1, 64], strides = [1, 1, 1]} : vector<4x8x64xf32> to vector<4x1x64xf32>
    %144 = vector.extract_strided_slice %139 {offsets = [0, 3, 0], sizes = [4, 1, 64], strides = [1, 1, 1]} : vector<4x8x64xf32> to vector<4x1x64xf32>
    %145 = arith.maximumf %143, %144 : vector<4x1x64xf32>
    %146 = vector.extract_strided_slice %139 {offsets = [0, 4, 0], sizes = [4, 1, 64], strides = [1, 1, 1]} : vector<4x8x64xf32> to vector<4x1x64xf32>
    %147 = vector.extract_strided_slice %139 {offsets = [0, 5, 0], sizes = [4, 1, 64], strides = [1, 1, 1]} : vector<4x8x64xf32> to vector<4x1x64xf32>
    %148 = arith.maximumf %146, %147 : vector<4x1x64xf32>
    %149 = vector.extract_strided_slice %139 {offsets = [0, 6, 0], sizes = [4, 1, 64], strides = [1, 1, 1]} : vector<4x8x64xf32> to vector<4x1x64xf32>
    %150 = vector.extract_strided_slice %139 {offsets = [0, 7, 0], sizes = [4, 1, 64], strides = [1, 1, 1]} : vector<4x8x64xf32> to vector<4x1x64xf32>
    %151 = arith.maximumf %149, %150 : vector<4x1x64xf32>
    %152 = tpu.concatenate %142, %145, %148, %151 in 1 : vector<4x1x64xf32>, vector<4x1x64xf32>, vector<4x1x64xf32>, vector<4x1x64xf32> -> vector<4x4x64xf32>
    %153 = arith.truncf %152 : vector<4x4x64xf32> to vector<4x4x64xbf16>
    %cst_16 = arith.constant 0.000000e+00 : bf16
    %154 = vector.broadcast %cst_16 : bf16 to vector<1x4x64xbf16>
    %cst_17 = arith.constant 0.000000e+00 : bf16
    %155 = vector.broadcast %cst_17 : bf16 to vector<4x1x64xbf16>
    %156 = vector.extract_strided_slice %153 {offsets = [0, 0, 0], sizes = [3, 4, 64], strides = [1, 1, 1]} : vector<4x4x64xbf16> to vector<3x4x64xbf16>
    %157 = tpu.concatenate %154, %156 in 0 : vector<1x4x64xbf16>, vector<3x4x64xbf16> -> vector<4x4x64xbf16>
    %158 = vector.extract_strided_slice %153 {offsets = [1, 0, 0], sizes = [3, 4, 64], strides = [1, 1, 1]} : vector<4x4x64xbf16> to vector<3x4x64xbf16>
    %159 = tpu.concatenate %158, %154 in 0 : vector<3x4x64xbf16>, vector<1x4x64xbf16> -> vector<4x4x64xbf16>
    %160 = vector.extract_strided_slice %157 {offsets = [0, 0, 0], sizes = [4, 3, 64], strides = [1, 1, 1]} : vector<4x4x64xbf16> to vector<4x3x64xbf16>
    %161 = tpu.concatenate %155, %160 in 1 : vector<4x1x64xbf16>, vector<4x3x64xbf16> -> vector<4x4x64xbf16>
    %162 = vector.extract_strided_slice %157 {offsets = [0, 1, 0], sizes = [4, 3, 64], strides = [1, 1, 1]} : vector<4x4x64xbf16> to vector<4x3x64xbf16>
    %163 = tpu.concatenate %162, %155 in 1 : vector<4x3x64xbf16>, vector<4x1x64xbf16> -> vector<4x4x64xbf16>
    %164 = vector.extract_strided_slice %153 {offsets = [0, 0, 0], sizes = [4, 3, 64], strides = [1, 1, 1]} : vector<4x4x64xbf16> to vector<4x3x64xbf16>
    %165 = tpu.concatenate %155, %164 in 1 : vector<4x1x64xbf16>, vector<4x3x64xbf16> -> vector<4x4x64xbf16>
    %166 = vector.extract_strided_slice %153 {offsets = [0, 1, 0], sizes = [4, 3, 64], strides = [1, 1, 1]} : vector<4x4x64xbf16> to vector<4x3x64xbf16>
    %167 = tpu.concatenate %166, %155 in 1 : vector<4x3x64xbf16>, vector<4x1x64xbf16> -> vector<4x4x64xbf16>
    %168 = vector.extract_strided_slice %159 {offsets = [0, 0, 0], sizes = [4, 3, 64], strides = [1, 1, 1]} : vector<4x4x64xbf16> to vector<4x3x64xbf16>
    %169 = tpu.concatenate %155, %168 in 1 : vector<4x1x64xbf16>, vector<4x3x64xbf16> -> vector<4x4x64xbf16>
    %170 = vector.extract_strided_slice %159 {offsets = [0, 1, 0], sizes = [4, 3, 64], strides = [1, 1, 1]} : vector<4x4x64xbf16> to vector<4x3x64xbf16>
    %171 = tpu.concatenate %170, %155 in 1 : vector<4x3x64xbf16>, vector<4x1x64xbf16> -> vector<4x4x64xbf16>
    %172 = vector.shape_cast %161 : vector<4x4x64xbf16> to vector<16x64xbf16>
    %173 = vector.shape_cast %157 : vector<4x4x64xbf16> to vector<16x64xbf16>
    %174 = vector.shape_cast %163 : vector<4x4x64xbf16> to vector<16x64xbf16>
    %175 = vector.shape_cast %165 : vector<4x4x64xbf16> to vector<16x64xbf16>
    %176 = vector.shape_cast %153 : vector<4x4x64xbf16> to vector<16x64xbf16>
    %177 = vector.shape_cast %167 : vector<4x4x64xbf16> to vector<16x64xbf16>
    %178 = vector.shape_cast %169 : vector<4x4x64xbf16> to vector<16x64xbf16>
    %179 = vector.shape_cast %159 : vector<4x4x64xbf16> to vector<16x64xbf16>
    %180 = vector.shape_cast %171 : vector<4x4x64xbf16> to vector<16x64xbf16>
    %181 = tpu.concatenate %172, %173, %174, %175, %176, %177, %178, %179, %180 in 1 : vector<16x64xbf16>, vector<16x64xbf16>, vector<16x64xbf16>, vector<16x64xbf16>, vector<16x64xbf16>, vector<16x64xbf16>, vector<16x64xbf16>, vector<16x64xbf16>, vector<16x64xbf16> -> vector<16x576xbf16>
    %c0_18 = arith.constant 0 : index
    %c0_19 = arith.constant 0 : index
    %182 = vector.load %arg6[%c0_18, %c0_19] : memref<576x128xbf16, #tpu.memory_space<vmem>>, vector<576x128xbf16>
    %cst_20 = arith.constant dense<0.000000e+00> : vector<16x128xf32>
    %183 = tpu.matmul %181, %182, %cst_20 {dimension_numbers = #tpu.dot_dimension_numbers<[1], [0], [0], [1], [0, 0, 1, 1], [], []>} : vector<16x576xbf16>, vector<576x128xbf16>, vector<16x128xf32> -> vector<16x128xf32>
    %c0_21 = arith.constant 0 : index
    %c0_22 = arith.constant 0 : index
    %184 = vector.load %arg7[%c0_21, %c0_22] : memref<1x128xf32, #tpu.memory_space<vmem>>, vector<1x128xf32>
    %185 = vector.broadcast %184 : vector<1x128xf32> to vector<16x128xf32>
    %186 = arith.addf %183, %185 : vector<16x128xf32>
    %cst_23 = arith.constant 0.000000e+00 : f32
    %187 = vector.broadcast %cst_23 : f32 to vector<16x128xf32>
    %188 = arith.maximumf %186, %187 : vector<16x128xf32>
    %189 = vector.shape_cast %188 : vector<16x128xf32> to vector<4x4x128xf32>
    %190 = vector.shape_cast %189 : vector<4x4x128xf32> to vector<2x2x4x128xf32>
    %191 = vector.extract_strided_slice %190 {offsets = [0, 0, 0, 0], sizes = [2, 1, 4, 128], strides = [1, 1, 1, 1]} : vector<2x2x4x128xf32> to vector<2x1x4x128xf32>
    %192 = vector.shape_cast %191 : vector<2x1x4x128xf32> to vector<2x4x128xf32>
    %193 = vector.extract_strided_slice %190 {offsets = [0, 1, 0, 0], sizes = [2, 1, 4, 128], strides = [1, 1, 1, 1]} : vector<2x2x4x128xf32> to vector<2x1x4x128xf32>
    %194 = vector.shape_cast %193 : vector<2x1x4x128xf32> to vector<2x4x128xf32>
    %195 = arith.maximumf %192, %194 : vector<2x4x128xf32>
    %196 = vector.extract_strided_slice %195 {offsets = [0, 0, 0], sizes = [2, 1, 128], strides = [1, 1, 1]} : vector<2x4x128xf32> to vector<2x1x128xf32>
    %197 = vector.extract_strided_slice %195 {offsets = [0, 1, 0], sizes = [2, 1, 128], strides = [1, 1, 1]} : vector<2x4x128xf32> to vector<2x1x128xf32>
    %198 = arith.maximumf %196, %197 : vector<2x1x128xf32>
    %199 = vector.extract_strided_slice %195 {offsets = [0, 2, 0], sizes = [2, 1, 128], strides = [1, 1, 1]} : vector<2x4x128xf32> to vector<2x1x128xf32>
    %200 = vector.extract_strided_slice %195 {offsets = [0, 3, 0], sizes = [2, 1, 128], strides = [1, 1, 1]} : vector<2x4x128xf32> to vector<2x1x128xf32>
    %201 = arith.maximumf %199, %200 : vector<2x1x128xf32>
    %202 = tpu.concatenate %198, %201 in 1 : vector<2x1x128xf32>, vector<2x1x128xf32> -> vector<2x2x128xf32>
    %203 = vector.shape_cast %202 : vector<2x2x128xf32> to vector<4x128xf32>
    %cst_24 = arith.constant dense<0.000000e+00> : vector<128xf32>
    %204 = vector.multi_reduction <add>, %203, %cst_24 [0] : vector<4x128xf32> to vector<128xf32>
    %205 = vector.shape_cast %204 : vector<128xf32> to vector<1x128xf32>
    %cst_25 = arith.constant 2.500000e-01 : f32
    %206 = vector.broadcast %cst_25 : f32 to vector<1x128xf32>
    %207 = arith.mulf %205, %206 : vector<1x128xf32>
    %208 = arith.truncf %207 : vector<1x128xf32> to vector<1x128xbf16>
    %c0_26 = arith.constant 0 : index
    %c0_27 = arith.constant 0 : index
    %209 = vector.load %arg8[%c0_26, %c0_27] : memref<128x128xbf16, #tpu.memory_space<vmem>>, vector<128x128xbf16>
    %cst_28 = arith.constant dense<0.000000e+00> : vector<1x128xf32>
    %210 = tpu.matmul %208, %209, %cst_28 {dimension_numbers = #tpu.dot_dimension_numbers<[1], [0], [0], [1], [0, 0, 1, 1], [], []>} : vector<1x128xbf16>, vector<128x128xbf16>, vector<1x128xf32> -> vector<1x128xf32>
    %c0_29 = arith.constant 0 : index
    %c0_30 = arith.constant 0 : index
    %211 = vector.load %arg9[%c0_29, %c0_30] : memref<1x128xf32, #tpu.memory_space<vmem>>, vector<1x128xf32>
    %212 = arith.addf %210, %211 : vector<1x128xf32>
    %cst_31 = arith.constant 0.000000e+00 : f32
    %213 = vector.broadcast %cst_31 : f32 to vector<1x128xf32>
    %214 = arith.maximumf %212, %213 : vector<1x128xf32>
    %c0_32 = arith.constant 0 : index
    %c0_33 = arith.constant 0 : index
    %215 = vector.load %arg10[%c0_32, %c0_33] : memref<1x128xf32, #tpu.memory_space<vmem>>, vector<1x128xf32>
    %216 = arith.mulf %214, %215 : vector<1x128xf32>
    %cst_34 = arith.constant dense<0.000000e+00> : vector<1xf32>
    %217 = vector.multi_reduction <add>, %216, %cst_34 [1] : vector<1x128xf32> to vector<1xf32>
    %218 = vector.shape_cast %217 : vector<1xf32> to vector<1x1xf32>
    %c0_35 = arith.constant 0 : index
    %c0_36 = arith.constant 0 : index
    %219 = vector.load %arg11[%c0_35, %c0_36] : memref<1x1xf32, #tpu.memory_space<vmem>>, vector<1x1xf32>
    %220 = arith.addf %218, %219 : vector<1x1xf32>
    %221 = arith.negf %220 : vector<1x1xf32>
    %222 = math.exp %221 : vector<1x1xf32>
    %cst_37 = arith.constant 1.000000e+00 : f32
    %223 = vector.broadcast %cst_37 : f32 to vector<1x1xf32>
    %224 = arith.addf %223, %222 : vector<1x1xf32>
    %225 = arith.divf %223, %224 : vector<1x1xf32>
    %226 = vector.shape_cast %225 : vector<1x1xf32> to vector<1x1xf32>
    %227 = vector.broadcast %226 : vector<1x1xf32> to vector<1x128xf32>
    %c0_38 = arith.constant 0 : index
    %c0_39 = arith.constant 0 : index
    %c0_40 = arith.constant 0 : index
    %228 = vector.load %arg12[%c0_38, %c0_39, %c0_40] : memref<1x1x128xf32, #tpu.memory_space<vmem>>, vector<1x1x128xf32>
    %229 = vector.shape_cast %228 : vector<1x1x128xf32> to vector<1x128xf32>
    %230 = vector.shape_cast %227 : vector<1x128xf32> to vector<1x1x128xf32>
    tpu.vector_store %arg12[%c0_38, %c0_39, %c0_40], %230 {strides = array<i32>} : memref<1x1x128xf32, #tpu.memory_space<vmem>>, vector<1x1x128xf32>,
    return
  }
  func.func @transform_0(%arg0: i32) -> (i32, i32, i32, i32) {
    %c0_i32 = arith.constant 0 : i32
    %c0_i32_0 = arith.constant 0 : i32
    %c0_i32_1 = arith.constant 0 : i32
    %c0_i32_2 = arith.constant 0 : i32
    return %arg0, %c0_i32, %c0_i32_0, %c0_i32_1 : i32, i32, i32, i32
  }
  func.func @transform_1(%arg0: i32) -> (i32, i32) {
    %c0_i32 = arith.constant 0 : i32
    %c0_i32_0 = arith.constant 0 : i32
    %c0_i32_1 = arith.constant 0 : i32
    return %c0_i32, %c0_i32_0 : i32, i32
  }
  func.func @transform_2(%arg0: i32) -> (i32, i32) {
    %c0_i32 = arith.constant 0 : i32
    %c0_i32_0 = arith.constant 0 : i32
    %c0_i32_1 = arith.constant 0 : i32
    return %c0_i32, %c0_i32_0 : i32, i32
  }
  func.func @transform_3(%arg0: i32) -> (i32, i32) {
    %c0_i32 = arith.constant 0 : i32
    %c0_i32_0 = arith.constant 0 : i32
    %c0_i32_1 = arith.constant 0 : i32
    return %c0_i32, %c0_i32_0 : i32, i32
  }
  func.func @transform_4(%arg0: i32) -> (i32, i32) {
    %c0_i32 = arith.constant 0 : i32
    %c0_i32_0 = arith.constant 0 : i32
    %c0_i32_1 = arith.constant 0 : i32
    return %c0_i32, %c0_i32_0 : i32, i32
  }
  func.func @transform_5(%arg0: i32) -> (i32, i32) {
    %c0_i32 = arith.constant 0 : i32
    %c0_i32_0 = arith.constant 0 : i32
    %c0_i32_1 = arith.constant 0 : i32
    return %c0_i32, %c0_i32_0 : i32, i32
  }
  func.func @transform_6(%arg0: i32) -> (i32, i32) {
    %c0_i32 = arith.constant 0 : i32
    %c0_i32_0 = arith.constant 0 : i32
    %c0_i32_1 = arith.constant 0 : i32
    return %c0_i32, %c0_i32_0 : i32, i32
  }
  func.func @transform_7(%arg0: i32) -> (i32, i32) {
    %c0_i32 = arith.constant 0 : i32
    %c0_i32_0 = arith.constant 0 : i32
    %c0_i32_1 = arith.constant 0 : i32
    return %c0_i32, %c0_i32_0 : i32, i32
  }
  func.func @transform_8(%arg0: i32) -> (i32, i32) {
    %c0_i32 = arith.constant 0 : i32
    %c0_i32_0 = arith.constant 0 : i32
    %c0_i32_1 = arith.constant 0 : i32
    return %c0_i32, %c0_i32_0 : i32, i32
  }
  func.func @transform_9(%arg0: i32) -> (i32, i32) {
    %c0_i32 = arith.constant 0 : i32
    %c0_i32_0 = arith.constant 0 : i32
    %c0_i32_1 = arith.constant 0 : i32
    return %c0_i32, %c0_i32_0 : i32, i32
  }
  func.func @transform_10(%arg0: i32) -> (i32, i32) {
    %c0_i32 = arith.constant 0 : i32
    %c0_i32_0 = arith.constant 0 : i32
    %c0_i32_1 = arith.constant 0 : i32
    return %c0_i32, %c0_i32_0 : i32, i32
  }
  func.func @transform_11(%arg0: i32) -> (i32, i32, i32) {
    %c0_i32 = arith.constant 0 : i32
    %c0_i32_0 = arith.constant 0 : i32
    %c0_i32_1 = arith.constant 0 : i32
    return %arg0, %c0_i32, %c0_i32_0 : i32, i32, i32
  }
}

</mosaic_0001>

<bundles_post_ra>
// kernel: wake_word_forward.1
= control target key start
LH: loop header
LB: loop body
LE: loop exit
PB: predicated region body
PF: predicated region fallthrough
CT: control target
= control target key end

     0   :  { %s4716_s19 = smov 0   ;;  %s7351_s0 = inlined_call_operand.vmem [shape: f32[2,18,18,1], index: 0, kind: input, shape index: {}]   ;;  %s7352_s1 = inlined_call_operand.vmem [shape: f32[9,32], index: 1, kind: input, shape index: {}]   ;;  %s7353_s2 = inlined_call_operand.vmem [shape: f32[1,32], index: 2, kind: input, shape index: {}]   ;;  %s7354_s3 = inlined_call_operand.vmem [shape: bf16[288,64], index: 3, kind: input, shape index: {}]   ;;  %s7355_s4 = inlined_call_operand.vmem [shape: f32[1,64], index: 4, kind: input, shape index: {}]   ;;  %s7356_s5 = inlined_call_operand.vmem [shape: bf16[576,128], index: 5, kind: input, shape index: {}]   ;;  %s7357_s6 = inlined_call_operand.vmem [shape: f32[1,128], index: 6, kind: input, shape index: {}]   ;;  %s7358_s7 = inlined_call_operand.vmem [shape: bf16[128,128], index: 7, kind: input, shape index: {}]   ;;  %s7359_s8 = inlined_call_operand.vmem [shape: f32[1,128], index: 8, kind: input, shape index: {}]   ;;  %s7360_s9 = inlined_call_operand.vmem [shape: f32[1,128], index: 9, kind: input, shape index: {}]   ;;  %s7361_s10 = inlined_call_operand.<no memory space> [shape: f32[1,1], index: 10, kind: input, shape index: {}]   ;;  %s7362_s11 = inlined_call_operand.vmem [shape: f32[2,1,128], index: 11, kind: output, shape index: {}]  }
   0x1   :  { %v16_v0 = vstv %s7361_s10 }
   0x2   :  { %17 = vst [vmem:[#allocation2] sm:$0x1] %v16_v0 }
   0x3 LB: > { %s4283_s20 = sadd.s32 4294967295, %s4644_s19   ;;  %p4287_p0 = scmp.ge.s32.totalorder %s4644_s19, 1  ;;  %s4644_s19 = sphi %s4716_s19, %s23_s19  }
   0x4   : > { %p339_p1 = scmp.lt.s32.totalorder %s4644_s19, 3 }
   0x6   : > { %p340_p2 = pnand %p4287_p0, %p339_p1 }
   0x8   : > { %343 = sbr.rel (%p340_p2) target bundleno = 1812 (0x714), region = 64 }
   0xf   : > { %p377_p3 = scmp.lt.s32.totalorder %s4283_s20, 1  ;;  %v7363_v1 = vmov 0   ;;  %v602_v56 = vlaneseq  ;;  %v440_v62 = vld [vmem:[%s7352_s1] sm:$0xff]  ;;  %vm850_vm0 = vcmask 1046528   ;;  %vm1095_vm1 = vcmask 1045504   ;;  %s4647_s26 = smov 32  }
  0x10   : > { %4567 = vset.pattern.permute.xlu1 %v7363_v1  ;;  %4566 = vset.pattern.permute.xlu0 %v7363_v1  ;;  %vm2661_vm2 = vcmask 1040384   ;;  %vm2670_vm3 = vcmask 1041408   ;;  %vm2679_vm4 = vcmask 1042432   ;;  %vm2688_vm5 = vcmask 1043456   ;;  %s4648_s27 = smov 96   ;;  %s4649_s24 = smov 64  }
  0x11   : > { %s7697_s20 = smov (!%p377_p3, %s4283_s20), 1  ;;  %v4788_v57 = vshrl.u32 %v602_v56, 7  ;;  %vm2697_vm6 = vcmask 1044480   ;;  %vm2830_vm7 = vsmask.f32 3328  ;;  %vm2982_vm9 = vcmask 261120  }
  0x12   : > { %s4550_s10 = smul.u32 432, %s7697_s20  ;;  %vm6611_vm8 = vmand %vm2688_vm5, %vm2830_vm7  ;;  %vm2795_vm10 = vsmask.f32 256  ;;  %vm2995_vm12 = vcmask 523264   ;;  %vm3004_vm13 = vcmask 785408   ;;  %s384_s17 = scalar_lea.vmem %s7362_s11, %s7697_s20 }
  0x13   : > { %7437 = vst [vmem:[#allocation3_spill] sm:$0xff] %v4788_v57  ;;  %v1325_v58 = vsub.s32 4, %v4788_v57  ;;  %v1569_v59 = vsub.s32 5, %v4788_v57  ;;  %v752_v60 = vsub.s32 1, %v4788_v57  ;;  %v4794_v61 = vsub.s32 2, %v4788_v57  ;;  %vm6909_vm11 = vmand %vm2661_vm2, %vm2795_vm10 }
  0x14   : > { %s4732_s23 = scalar_lea.vmem %s7351_s0, %s4550_s10  ;;  %v604_v63 = vsub.s32 0, %v4788_v57  ;;  %v1252_v0 = vsub.s32 3, %v4788_v57  ;;  %vm3451_vm14 = vsmask.f32 1280 }
  0x15   : > { %v389_v2 = vld [vmem:[%s4732_s23 + $0x18] sm:$0xff]  ;;  %v386_v3 = vld [vmem:[%s4732_s23] sm:$0xff]  ;;  %v387_v5 = vld [vmem:[%s4732_s23 + $0x8] sm:$0xff]  ;;  %7438 = vst [vmem:[#allocation4_spill] sm:$0xff] %v4794_v61 }
  0x16   : > { %454 = vperm.xlu1 %4567, %v389_v2   ;;  %444 = vperm.xlu0 %4566, %v386_v3   ;;  %v390_v4 = vld [vmem:[%s4732_s23 + $0x20] sm:$0xff]  ;;  %v393_v6 = vld [vmem:[%s4732_s23 + $0x38] sm:$0xff]  ;;  %v392_v7 = vld [vmem:[%s4732_s23 + $0x30] sm:$0xff]  ;;  %v4801_v2 = vrot.slane %v440_v62, %v1325_v58  ;;  %v4803_v3 = vrot.slane %v440_v62, %v1569_v59 }
  0x17   : > { %v396_v8 = vld [vmem:[%s4732_s23 + $0x50] sm:$0xff]  ;;  %v395_v9 = vld [vmem:[%s4732_s23 + $0x48] sm:$0xff]  ;;  %v398_v11 = vld [vmem:[%s4732_s23 + $0x60] sm:$0xff] }
  0x18   : > { %v399_v10 = vld [vmem:[%s4732_s23 + $0x68] sm:$0xff]  ;;  %v402_v12 = vld [vmem:[%s4732_s23 + $0x80] sm:$0xff]  ;;  %v401_v13 = vld [vmem:[%s4732_s23 + $0x78] sm:$0xff] }
  0x19   : > { %v391_v14 = vld [vmem:[%s4732_s23 + $0x28] sm:$0x3]  ;;  %v388_v15 = vld [vmem:[%s4732_s23 + $0x10] sm:$0x3]  ;;  %v397_v16 = vld [vmem:[%s4732_s23 + $0x58] sm:$0x3] }
  0x1a   : > { %459 = vperm.xlu1 %4567, %v390_v4   ;;  %449 = vperm.xlu0 %4566, %v387_v5   ;;  %v394_v17 = vld [vmem:[%s4732_s23 + $0x40] sm:$0x3]  ;;  %v403_v18 = vld [vmem:[%s4732_s23 + $0x88] sm:$0x3]  ;;  %v400_v19 = vld [vmem:[%s4732_s23 + $0x70] sm:$0x3]  ;;  %v4805_v4 = vrot.slane %v440_v62, %v752_v60  ;;  %v4808_v5 = vrot.slane %v440_v62, %v4794_v61 }
  0x1b   : > { %v405_v20 = vld [vmem:[%s4732_s23 + $0x98] sm:$0xff]  ;;  %v404_v21 = vld [vmem:[%s4732_s23 + $0x90] sm:$0xff]  ;;  %v407_v23 = vld [vmem:[%s4732_s23 + $0xa8] sm:$0xff] }
  0x1c   : > { %v408_v22 = vld [vmem:[%s4732_s23 + $0xb0] sm:$0xff]  ;;  %v411_v24 = vld [vmem:[%s4732_s23 + $0xc8] sm:$0xff]  ;;  %v410_v25 = vld [vmem:[%s4732_s23 + $0xc0] sm:$0xff] }
  0x1d   : > { %v414_v26 = vld [vmem:[%s4732_s23 + $0xe0] sm:$0xff]  ;;  %v413_v27 = vld [vmem:[%s4732_s23 + $0xd8] sm:$0xff]  ;;  %v415_v30 = vld [vmem:[%s4732_s23 + $0xe8] sm:$0x3] }
  0x1e   : > { %469 = vperm.xlu1 %4567, %v393_v6   ;;  %464 = vperm.xlu0 %4566, %v392_v7   ;;  %v409_v28 = vld [vmem:[%s4732_s23 + $0xb8] sm:$0x3]  ;;  %v406_v29 = vld [vmem:[%s4732_s23 + $0xa0] sm:$0x3]  ;;  %v412_v31 = vld [vmem:[%s4732_s23 + $0xd0] sm:$0x3] }
  0x1f   : > { %v417_v32 = vld [vmem:[%s4732_s23 + $0xf8] sm:$0xff]  ;;  %v416_v33 = vld [vmem:[%s4732_s23 + $0xf0] sm:$0xff]  ;;  %v419_v35 = vld [vmem:[%s4732_s23 + $0x108] sm:$0xff]  ;;  %v1896_v6 = vsub.s32 7, %v4788_v57 }
  0x20   : > { %v420_v34 = vld [vmem:[%s4732_s23 + $0x110] sm:$0xff]  ;;  %v423_v36 = vld [vmem:[%s4732_s23 + $0x128] sm:$0xff]  ;;  %v422_v37 = vld [vmem:[%s4732_s23 + $0x120] sm:$0xff] }
  0x21   : > { %v426_v38 = vld [vmem:[%s4732_s23 + $0x140] sm:$0xff]  ;;  %v425_v39 = vld [vmem:[%s4732_s23 + $0x138] sm:$0xff]  ;;  %v427_v42 = vld [vmem:[%s4732_s23 + $0x148] sm:$0x3] }
  0x22   : > { %479 = vperm.xlu1 %4567, %v396_v8   ;;  %474 = vperm.xlu0 %4566, %v395_v9   ;;  %v421_v40 = vld [vmem:[%s4732_s23 + $0x118] sm:$0x3]  ;;  %v418_v41 = vld [vmem:[%s4732_s23 + $0x100] sm:$0x3]  ;;  %v424_v43 = vld [vmem:[%s4732_s23 + $0x130] sm:$0x3] }
  0x23   : > { %v429_v44 = vld [vmem:[%s4732_s23 + $0x158] sm:$0xff]  ;;  %v428_v45 = vld [vmem:[%s4732_s23 + $0x150] sm:$0xff]  ;;  %v431_v47 = vld [vmem:[%s4732_s23 + $0x168] sm:$0xff] }
  0x24   : > { %v432_v46 = vld [vmem:[%s4732_s23 + $0x170] sm:$0xff]  ;;  %v433_v48 = vld [vmem:[%s4732_s23 + $0x178] sm:$0x3]  ;;  %v430_v49 = vld [vmem:[%s4732_s23 + $0x160] sm:$0x3] }
  0x25   : > { %v435_v50 = vld [vmem:[%s4732_s23 + $0x188] sm:$0xff]  ;;  %v434_v51 = vld [vmem:[%s4732_s23 + $0x180] sm:$0xff]  ;;  %v437_v52 = vld [vmem:[%s4732_s23 + $0x198] sm:$0xff] }
  0x26   : > { %489 = vperm.xlu1 %4567, %v399_v10   ;;  %484 = vperm.xlu0 %4566, %v398_v11   ;;  %v436_v53 = vld [vmem:[%s4732_s23 + $0x190] sm:$0x3]  ;;  %v439_v54 = vld [vmem:[%s4732_s23 + $0x1a8] sm:$0x3]  ;;  %v438_v55 = vld [vmem:[%s4732_s23 + $0x1a0] sm:$0xff]  ;;  %v4813_v11 = vrot.slane %v440_v62, %v604_v63 }
  0x27   : > { %vm7138_vm15 = vmand %vm2670_vm3, %vm3451_vm14 }
  0x2a   : > { %499 = vperm.xlu1 %4567, %v402_v12   ;;  %494 = vperm.xlu0 %4566, %v401_v13   ;;  %v4815_v12 = vrot.slane %v440_v62, %v1252_v0 }
  0x2e   : > { %677 = vperm.xlu1 %4567, %v391_v14   ;;  %672 = vperm.xlu0 %4566, %v388_v15   ;;  %v1823_v15 = vsub.s32 6, %v4788_v57 }
  0x32   : > { %687 = vperm.xlu1 %4567, %v397_v16   ;;  %682 = vperm.xlu0 %4566, %v394_v17   ;;  %v4820_v16 = vrot.slane %v440_v62, %v1896_v6 }
  0x36   : > { %697 = vperm.xlu1 %4567, %v403_v18   ;;  %692 = vperm.xlu0 %4566, %v400_v19  }
  0x3a   : > { %509 = vperm.xlu1 %4567, %v405_v20   ;;  %504 = vperm.xlu0 %4566, %v404_v21  }
  0x3e   : > { %519 = vperm.xlu1 %4567, %v408_v22   ;;  %514 = vperm.xlu0 %4566, %v407_v23  }
  0x42   : > { %529 = vperm.xlu1 %4567, %v411_v24   ;;  %524 = vperm.xlu0 %4566, %v410_v25  }
  0x46   : > { %539 = vperm.xlu1 %4567, %v414_v26   ;;  %534 = vperm.xlu0 %4566, %v413_v27  }
  0x4a   : > { %707 = vperm.xlu1 %4567, %v409_v28   ;;  %702 = vperm.xlu0 %4566, %v406_v29  }
  0x4e   : > { %717 = vperm.xlu1 %4567, %v415_v30   ;;  %712 = vperm.xlu0 %4566, %v412_v31  }
  0x52   : > { %549 = vperm.xlu1 %4567, %v417_v32   ;;  %544 = vperm.xlu0 %4566, %v416_v33  }
  0x56   : > { %559 = vperm.xlu1 %4567, %v420_v34   ;;  %554 = vperm.xlu0 %4566, %v419_v35  }
  0x5a   : > { %569 = vperm.xlu1 %4567, %v423_v36   ;;  %564 = vperm.xlu0 %4566, %v422_v37  }
  0x5e   : > { %579 = vperm.xlu1 %4567, %v426_v38   ;;  %574 = vperm.xlu0 %4566, %v425_v39  }
  0x62   : > { %727 = vperm.xlu1 %4567, %v421_v40   ;;  %722 = vperm.xlu0 %4566, %v418_v41  }
  0x66   : > { %737 = vperm.xlu1 %4567, %v427_v42   ;;  %732 = vperm.xlu0 %4566, %v424_v43  }
  0x6a   : > { %589 = vperm.xlu1 %4567, %v429_v44   ;;  %584 = vperm.xlu0 %4566, %v428_v45  }
  0x6e   : > { %599 = vperm.xlu1 %4567, %v432_v46   ;;  %594 = vperm.xlu0 %4566, %v431_v47  }
  0x72   : > { %747 = vperm.xlu1 %4567, %v433_v48   ;;  %742 = vperm.xlu0 %4566, %v430_v49  }
  0x76   : > { %1247 = vperm.xlu1 %4567, %v435_v50   ;;  %1242 = vperm.xlu0 %4566, %v434_v51   ;;  %v4870_v51 = vrot.slane %v440_v62, %v1823_v15  ;;  %v4885_v62 = vld [vmem:[%s7352_s1 + $0x8] ss:$0 sm:$0xff] }
  0x7a   : > { %1813 = vperm.xlu1 %4567, %v437_v52   ;;  %1320 = vperm.xlu0 %4566, %v436_v53  }
  0x7e   : > { %1891 = vperm.xlu1 %4567, %v439_v54   ;;  %1818 = vperm.xlu0 %4566, %v438_v55  }
  0x95   : > { %v455_v7 = vpop.permute.xlu1 %454  ;;  %v445_v8 = vpop.permute.xlu0 %444 }
  0x96   : > { %v757_v9 = vmul.f32 %v4805_v4, %v455_v7  ;;  %v1002_v10 = vmul.f32 %v4808_v5, %v455_v7  ;;  %v1327_v13 = vmul.f32 %v4801_v2, %v455_v7  ;;  %v1571_v14 = vmul.f32 %v4803_v3, %v455_v7 }
  0x97   : > { %v608_v17 = vmul.f32 %v4813_v11, %v455_v7  ;;  %v754_v20 = vmul.f32 %v4805_v4, %v445_v8  ;;  %v999_v24 = vmul.f32 %v4808_v5, %v445_v8  ;;  %v606_v31 = vmul.f32 %v4813_v11, %v445_v8 }
  0x98   : > { %v856_v18 = vrot.slane %v757_v9, 1  ;;  %v1101_v19 = vrot.slane %v1002_v10, 2  ;;  %v1423_v23 = vrot.slane %v1327_v13, 1  ;;  %v1667_v27 = vrot.slane %v1571_v14, 2 }
  0x99   : > { %v460_v21 = vpop.permute.xlu1 %459  ;;  %v450_v22 = vpop.permute.xlu0 %449  ;;  %v851_v35 = vrot.slane %v754_v20, 1  ;;  %v1096_v41 = vrot.slane %v999_v24, 2  ;;  %v1254_v59 = vmul.f32 %v4815_v12, %v455_v7 }
  0x9a   : > { %v4826_v25 = vmul.f32 %v4805_v4, %v460_v21  ;;  %v4829_v26 = vmul.f32 %v4808_v5, %v460_v21  ;;  %v4832_v28 = vmul.f32 %v4801_v2, %v460_v21  ;;  %v4835_v29 = vmul.f32 %v4803_v3, %v460_v21 }
  0x9b   : > { %v4838_v30 = vmul.f32 %v4805_v4, %v450_v22  ;;  %v4844_v34 = vmul.f32 %v4808_v5, %v450_v22  ;;  %v4894_v6 = vmul.f32 %v4813_v11, %v460_v21  ;;  %v4902_v7 = vmul.f32 %v4813_v11, %v450_v22 }
  0x9c   : > { %v7370_v32 = vrot.slane %v4826_v25, 1  ;;  %v7369_v33 = vrot.slane %v4829_v26, 2  ;;  %v7368_v36 = vrot.slane %v4832_v28, 1  ;;  %v7367_v37 = vrot.slane %v4835_v29, 2 }
  0x9d   : > { %v7366_v38 = vrot.slane %v4838_v30, 1  ;;  %v4849_v39 = vpop.permute.xlu1 %469  ;;  %v465_v40 = vpop.permute.xlu0 %464  ;;  %v7365_v44 = vrot.slane %v4844_v34, 2  ;;  %v4908_v14 = vmul.f32 %v4815_v12, %v460_v21 }
  0x9e   : > { %v858_v42 = vsel %vm850_vm0, %v856_v18, %v7370_v32  ;;  %v1103_v43 = vsel %vm1095_vm1, %v1101_v19, %v7369_v33  ;;  %v1425_v46 = vsel %vm850_vm0, %v1423_v23, %v7368_v36  ;;  %v1669_v47 = vsel %vm1095_vm1, %v1667_v27, %v7367_v37 }
  0x9f   : > { %v965_v45 = vadd.f32 %v858_v42, %v608_v17  ;;  %v853_v48 = vsel %vm850_vm0, %v851_v35, %v7366_v38  ;;  %v1098_v50 = vsel %vm1095_vm1, %v1096_v41, %v7365_v44  ;;  %v4873_v53 = vmul.f32 %v4805_v4, %v465_v40 }
  0xa0   : > { %v963_v49 = vadd.f32 %v853_v48, %v606_v31  ;;  %v4876_v54 = vmul.f32 %v4808_v5, %v465_v40  ;;  %v1256_v55 = vmul.f32 %v4815_v12, %v465_v40  ;;  %v4888_v63 = vmul.f32 %v4801_v2, %v465_v40 }
  0xa1   : > { %v1210_v52 = vadd.f32 %v1103_v43, %v965_v45  ;;  %v4879_v56 = vpop.permute.xlu1 %479  ;;  %v475_v58 = vpop.permute.xlu0 %474  ;;  %v4891_v0 = vmul.f32 %v4803_v3, %v465_v40  ;;  %v4899_v9 = vmul.f32 %v4820_v16, %v465_v40  ;;  %v4905_v13 = vmul.f32 %v4813_v11, %v465_v40 }
  0xa2   : > { %v1208_v60 = vadd.f32 %v1098_v50, %v963_v49  ;;  %v4913_v18 = vmul.f32 %v4885_v62, %v465_v40  ;;  %v4916_v19 = vmul.f32 %v4805_v4, %v475_v58  ;;  %v1825_v21 = vmul.f32 %v4870_v51, %v465_v40 }
  0xa3   : > { %v4896_v8 = vadd.f32 %v1256_v55, %v1210_v52  ;;  %v4925_v35 = vmul.f32 %v4813_v11, %v475_v58  ;;  %v4928_v41 = vmul.f32 %v4808_v5, %v475_v58  ;;  %v4931_v42 = vmul.f32 %v4801_v2, %v475_v58 }
  0xa4   : > { %v1286_v10 = vadd.f32 %v1254_v59, %v1208_v60  ;;  %v4934_v45 = vmul.f32 %v4815_v12, %v475_v58  ;;  %v4940_v40 = vmul.f32 %v4820_v16, %v475_v58  ;;  %v4945_v50 = vmul.f32 %v4885_v62, %v475_v58 }
  0xa5   : > { %v4918_v20 = vpop.permute.xlu1 %489  ;;  %v485_v22 = vpop.permute.xlu0 %484  ;;  %v4966_v31 = vmul.f32 %v4870_v51, %v475_v58 }
  0xa6   : > { %7439 = vst [vmem:[#allocation5_spill] sm:$0xff] %v4918_v20  ;;  %v1535_v23 = vadd.f32 %v1425_v46, %v1286_v10  ;;  %v4937_v46 = vmul.f32 %v4803_v3, %v475_v58  ;;  %v4948_v52 = vmul.f32 %v4805_v4, %v485_v22  ;;  %v4955_v60 = vmul.f32 %v4808_v5, %v485_v22 }
  0xa7   : > { %v4958_v10 = vmul.f32 %v4801_v2, %v485_v22  ;;  %v4969_v27 = vmul.f32 %v4820_v16, %v485_v22  ;;  %v4974_v24 = vmul.f32 %v4813_v11, %v485_v22  ;;  %v4977_v17 = vmul.f32 %v4885_v62, %v485_v22 }
  0xa8   : > { %v1779_v43 = vadd.f32 %v1669_v47, %v1535_v23  ;;  %7440 = vst [vmem:[#allocation6_spill] sm:$0xff] %v4948_v52  ;;  %7441 = vst [vmem:[#allocation7_spill] sm:$0xff] %v4955_v60  ;;  %v4961_v23 = vmul.f32 %v4803_v3, %v485_v22  ;;  %v4982_v58 = vmul.f32 %v4815_v12, %v485_v22 }
  0xa9   : > { %v4950_v47 = vpop.permute.xlu1 %499  ;;  %v495_v55 = vpop.permute.xlu0 %494  ;;  %7442 = vst [vmem:[#allocation8_spill] sm:$0xff] %v4958_v10  ;;  %7444 = vst [vmem:[#allocation10_spill] sm:$0xff] %v4969_v27  ;;  %v4991_v38 = vmul.f32 %v4870_v51, %v485_v22 }
  0xaa   : > { %v4952_v59 = vadd.f32 %v1825_v21, %v1779_v43  ;;  %7443 = vst [vmem:[#allocation9_spill] sm:$0xff] %v4961_v23  ;;  %7445 = vst [vmem:[#allocation11_spill] sm:$0xff] %v4974_v24  ;;  %v4985_v1 = vmul.f32 %v4805_v4, %v495_v55  ;;  %v4995_v48 = vmul.f32 %v4813_v11, %v495_v55 }
  0xab   : > { %7446 = vst [vmem:[#allocation12_spill] sm:$0xff] %v4977_v17  ;;  %7447 = vst [vmem:[#allocation13_spill] sm:$0xff] %v4991_v38  ;;  %v4998_v37 = vmul.f32 %v4808_v5, %v495_v55  ;;  %v5001_v36 = vmul.f32 %v4815_v12, %v495_v55  ;;  %v5005_v43 = vmul.f32 %v4801_v2, %v495_v55  ;;  %v7453_v38 = vrot.slane %v4829_v26, 2 }
  0xac   : > { %7448 = vst [vmem:[#allocation14_spill] sm:$0xff] %v4995_v48  ;;  %v5008_v22 = vmul.f32 %v4803_v3, %v495_v55  ;;  %v5013_v32 = vmul.f32 %v4870_v51, %v495_v55  ;;  %v1257_v23 = vmul.f32 %v4815_v12, %v4849_v39 }
  0xad   : > { %v678_v49 = vpop.permute.xlu1 %677  ;;  %7449 = vst [vmem:[#allocation15_spill] sm:$0xff] %v5001_v36  ;;  %v673_v33 = vpop.permute.xlu0 %672  ;;  %v5018_v36 = vmul.f32 %v4820_v16, %v495_v55 }
  0xae   : > { %v759_v15 = vmul.f32 %v4805_v4, %v678_v49  ;;  %7450 = vst [vmem:[#allocation16_spill] sm:$0xff] %v5013_v32  ;;  %v1004_v61 = vmul.f32 %v4808_v5, %v678_v49  ;;  %v1329_v57 = vmul.f32 %v4801_v2, %v678_v49  ;;  %v1573_v17 = vmul.f32 %v4803_v3, %v678_v49 }
  0xaf   : > { %7451 = vst [vmem:[#allocation17_spill] sm:$0xff] %v5018_v36  ;;  %v756_v27 = vmul.f32 %v4805_v4, %v673_v33  ;;  %v1001_v10 = vmul.f32 %v4808_v5, %v673_v33  ;;  %v7452_v32 = vrot.slane %v4826_v25, 1  ;;  %v7455_v25 = vrot.slane %v4835_v29, 2 }
  0xb0   : > { %v859_v21 = vrot.slane %v759_v15, 1  ;;  %v1104_v60 = vrot.slane %v1004_v61, 2  ;;  %v1426_v44 = vrot.slane %v1329_v57, 1  ;;  %v1670_v52 = vrot.slane %v1573_v17, 2 }
  0xb1   : > { %v854_v20 = vrot.slane %v756_v27, 1  ;;  %v764_v15 = vmul.f32 %v4805_v4, %v4879_v56  ;;  %v7454_v61 = vrot.slane %v4832_v28, 1  ;;  %v1099_v33 = vrot.slane %v1001_v10, 2  ;;  %v688_v26 = vpop.permute.xlu1 %687 }
  0xb2   : > { %v860_v24 = vsel %vm850_vm0, %v7452_v32, %v859_v21  ;;  %v1105_v48 = vsel %vm1095_vm1, %v7453_v38, %v1104_v60  ;;  %v1671_v32 = vsel %vm1095_vm1, %v7455_v25, %v1670_v52  ;;  %v7456_v17 = vrot.slane %v4838_v30, 1 }
  0xb3   : > { %v966_v49 = vadd.f32 %v860_v24, %v4894_v6  ;;  %v1427_v57 = vsel %vm850_vm0, %v7454_v61, %v1426_v44  ;;  %v867_v21 = vrot.slane %v764_v15, 1  ;;  %v5045_v6 = vmul.f32 %v4808_v5, %v4879_v56 }
  0xb4   : > { %v855_v27 = vsel %vm850_vm0, %v7456_v17, %v854_v20  ;;  %v7457_v44 = vrot.slane %v4844_v34, 2  ;;  %v5053_v29 = vmul.f32 %v4801_v2, %v4879_v56  ;;  %v5058_v52 = vmul.f32 %v4885_v62, %v495_v55 }
  0xb5   : > { %v1211_v38 = vadd.f32 %v1105_v48, %v966_v49  ;;  %v964_v28 = vadd.f32 %v855_v27, %v4902_v7  ;;  %v1902_v48 = vmul.f32 %v4820_v16, %v4879_v56  ;;  %v2146_v34 = vmul.f32 %v4885_v62, %v4879_v56 }
  0xb6   : > { %v1100_v24 = vsel %vm1095_vm1, %v7457_v44, %v1099_v33  ;;  %7458 = vst [vmem:[#allocation18_spill] sm:$0xff] %v5058_v52  ;;  %v765_v10 = vmul.f32 %v4805_v4, %v688_v26  ;;  %v7383_v49 = vrot.slane %v5045_v6, 2  ;;  %v5071_v61 = vmul.f32 %v4803_v3, %v4879_v56 }
  0xb7   : > { %v5062_v60 = vadd.f32 %v1257_v23, %v1211_v38  ;;  %v1209_v7 = vadd.f32 %v1100_v24, %v964_v28  ;;  %v7459_v55 = vrot.slane %v4916_v19, 1  ;;  %v7381_v17 = vrot.slane %v5053_v29, 1 }
  0xb8   : > { %v869_v27 = vrot.slane %v765_v10, 1  ;;  %v2000_v28 = vrot.slane %v1902_v48, 1  ;;  %v1010_v24 = vmul.f32 %v4808_v5, %v688_v26  ;;  %v1826_v15 = vmul.f32 %v4870_v51, %v4849_v39 }
  0xb9   : > { %v868_v33 = vsel %vm850_vm0, %v7459_v55, %v867_v21  ;;  %v1287_v25 = vadd.f32 %v4908_v14, %v1209_v7  ;;  %v2244_v20 = vrot.slane %v2146_v34, 2  ;;  %v613_v14 = vmul.f32 %v4813_v11, %v4879_v56 }
  0xba   : > { %v969_v44 = vadd.f32 %v868_v33, %v4925_v35  ;;  %v870_v55 = vsel %vm850_vm0, %v867_v21, %v869_v27  ;;  %v7382_v7 = vrot.slane %v5071_v61, 2  ;;  %v7460_v48 = vrot.slane %v4928_v41, 2 }
  0xbb   : > { %v1536_v19 = vadd.f32 %v1427_v57, %v1287_v25  ;;  %v5094_v10 = vmul.f32 %v4801_v2, %v688_v26  ;;  %v7461_v57 = vrot.slane %v4931_v42, 1  ;;  %v5104_v34 = vmul.f32 %v4803_v3, %v688_v26 }
  0xbc   : > { %v1113_v35 = vsel %vm1095_vm1, %v7460_v48, %v7383_v49  ;;  %v1903_v25 = vmul.f32 %v4820_v16, %v688_v26  ;;  %v970_v27 = vadd.f32 %v870_v55, %v613_v14  ;;  %v1114_v41 = vrot.slane %v1010_v24, 2 }
  0xbd   : > { %v1780_v33 = vadd.f32 %v1671_v32, %v1536_v19  ;;  %v5101_v21 = vsel %vm850_vm0, %v7461_v57, %v7381_v17  ;;  %v1214_v38 = vadd.f32 %v1113_v35, %v969_v44  ;;  %v7462_v48 = vrot.slane %v4940_v40, 1 }
  0xbe   : > { %v2002_v19 = vrot.slane %v1903_v25, 1  ;;  %v2147_v42 = vmul.f32 %v4885_v62, %v688_v26  ;;  %v7463_v57 = vrot.slane %v4945_v50, 2  ;;  %v1436_v17 = vrot.slane %v5094_v10, 1 }
  0xbf   : > { %v2001_v23 = vsel %vm850_vm0, %v7462_v48, %v2000_v28  ;;  %v5110_v32 = vadd.f32 %v1826_v15, %v1780_v33  ;;  %v7464_v24 = vrot.slane %v4937_v46, 2  ;;  %v761_v40 = vmul.f32 %v4805_v4, %v4849_v39  ;;  %v683_v46 = vpop.permute.xlu0 %682 }
  0xc0   : > { %v2245_v30 = vsel %vm1095_vm1, %v7463_v57, %v2244_v20  ;;  %v1006_v15 = vmul.f32 %v4808_v5, %v4849_v39  ;;  %v5129_v26 = vsel %vm850_vm0, %v2000_v28, %v2002_v19  ;;  %v2246_v50 = vrot.slane %v2147_v42, 2 }
  0xc1   : > { %v5122_v44 = vsel %vm1095_vm1, %v7464_v24, %v7382_v7  ;;  %v1331_v55 = vmul.f32 %v4801_v2, %v4849_v39  ;;  %v1575_v14 = vmul.f32 %v4803_v3, %v4849_v39  ;;  %v862_v10 = vrot.slane %v761_v40, 1 }
  0xc2   : > { %v1107_v33 = vrot.slane %v1006_v15, 2  ;;  %v1899_v25 = vmul.f32 %v4820_v16, %v4849_v39  ;;  %v5139_v48 = vsel %vm1095_vm1, %v2244_v20, %v2246_v50  ;;  %v2143_v42 = vmul.f32 %v4885_v62, %v4849_v39 }
  0xc3   : > { %v1429_v28 = vrot.slane %v1331_v55, 1  ;;  %v1673_v19 = vrot.slane %v1575_v14, 2  ;;  %v7465_v57 = vrot.slane %v4873_v53, 1  ;;  %v7466_v7 = vrot.slane %v4876_v54, 2 }
  0xc4   : > { %v1995_v15 = vrot.slane %v1899_v25, 1  ;;  %v762_v35 = vmul.f32 %v4805_v4, %v683_v46  ;;  %v7467_v20 = vrot.slane %v4888_v63, 1  ;;  %v7468_v55 = vrot.slane %v4891_v0, 2 }
  0xc5   : > { %v863_v24 = vsel %vm850_vm0, %v7465_v57, %v862_v10  ;;  %v1108_v40 = vsel %vm1095_vm1, %v7466_v7, %v1107_v33  ;;  %v2239_v53 = vrot.slane %v2143_v42, 2  ;;  %v7469_v54 = vrot.slane %v4899_v9, 1  ;;  %v5173_v9 = vld [vmem:[%s7353_s2] ss:$0 sm:$0xff] }
  0xc6   : > { %v967_v49 = vadd.f32 %v863_v24, %v4905_v13  ;;  %v1430_v50 = vsel %vm850_vm0, %v7467_v20, %v1429_v28  ;;  %v1674_v14 = vsel %vm1095_vm1, %v7468_v55, %v1673_v19  ;;  %v864_v25 = vrot.slane %v762_v35, 1 }
  0xc7   : > { %v1537_v57 = vadd.f32 %v1430_v50, %v4896_v8  ;;  %v1996_v7 = vsel %vm850_vm0, %v7469_v54, %v1995_v15  ;;  %v1007_v52 = vmul.f32 %v4808_v5, %v683_v46  ;;  %v7470_v63 = vrot.slane %v4913_v18, 2 }
  0xc8   : > { %v1212_v36 = vadd.f32 %v1108_v40, %v967_v49  ;;  %v2106_v13 = vadd.f32 %v1996_v7, %v4952_v59  ;;  %v1332_v0 = vmul.f32 %v4801_v2, %v683_v46  ;;  %v7471_v42 = vrot.slane %v5045_v6, 2 }
  0xc9   : > { %v2240_v24 = vsel %vm1095_vm1, %v7470_v63, %v2239_v53  ;;  %v1781_v20 = vadd.f32 %v1674_v14, %v1537_v57  ;;  %v865_v49 = vsel %vm850_vm0, %v862_v10, %v864_v25  ;;  %v1576_v59 = vmul.f32 %v4803_v3, %v683_v46 }
  0xca   : > { %v1115_v8 = vsel %vm1095_vm1, %v7471_v42, %v1114_v41  ;;  %v5178_v18 = vadd.f32 %v4982_v58, %v1214_v38  ;;  %v611_v35 = vmul.f32 %v4813_v11, %v4849_v39  ;;  %v2350_v40 = vadd.f32 %v2240_v24, %v2106_v13 }
  0xcb   : > { %v1431_v6 = vrot.slane %v1332_v0, 1  ;;  %v1859_v41 = vadd.f32 %v4966_v31, %v1781_v20  ;;  %v1109_v50 = vrot.slane %v1007_v52, 2  ;;  %v1675_v55 = vrot.slane %v1576_v59, 2  ;;  %v698_v59 = vpop.permute.xlu1 %697 }
  0xcc   : > { %v1900_v14 = vmul.f32 %v4820_v16, %v683_v46  ;;  %v1290_v57 = vadd.f32 %v4934_v45, %v1212_v36  ;;  %v2389_v10 = vadd.f32 %v5173_v9, %v2350_v40  ;;  %v968_v54 = vadd.f32 %v865_v49, %v611_v35 }
  0xcd   : > { %v1432_v7 = vsel %vm850_vm0, %v1429_v28, %v1431_v6  ;;  %v2108_v58 = vadd.f32 %v2001_v23, %v1859_v41  ;;  %v1676_v39 = vsel %vm1095_vm1, %v1673_v19, %v1675_v55  ;;  %v5189_v13 = vadd.f32 %v1115_v8, %v970_v27 }
  0xce   : > { %v1538_v38 = vadd.f32 %v1432_v7, %v5062_v60  ;;  %v1997_v25 = vrot.slane %v1900_v14, 1  ;;  %v7472_v31 = vrot.slane %v5053_v29, 1  ;;  %v1828_v36 = vmul.f32 %v4870_v51, %v4879_v56 }
  0xcf   : > { %v2144_v45 = vmul.f32 %v4885_v62, %v683_v46  ;;  %v2352_v63 = vadd.f32 %v2245_v30, %v2108_v58  ;;  %v1110_v28 = vsel %vm1095_vm1, %v1107_v33, %v1109_v50  ;;  %v1539_v19 = vadd.f32 %v5101_v21, %v1290_v57 }
  0xd0   : > { %v1437_v52 = vsel %vm850_vm0, %v7472_v31, %v1436_v17  ;;  %v1782_v23 = vadd.f32 %v1676_v39, %v1538_v38  ;;  %v1998_v60 = vsel %vm850_vm0, %v1995_v15, %v1997_v25  ;;  %v1213_v24 = vadd.f32 %v1110_v28, %v968_v54 }
  0xd1   : > { %v2107_v27 = vadd.f32 %v1998_v60, %v5110_v32  ;;  %v2241_v0 = vrot.slane %v2144_v45, 2  ;;  %v2391_v29 = vadd.f32 %v5173_v9, %v2352_v63  ;;  %v2421_v17 = vmax.f32 %v2389_v10, 0.0  ;;  %v7476_v45 = vld [vmem:[#allocation14_spill] sm:$0xff] }
  0xd2   : > { %v1860_v42 = vadd.f32 %v1828_v36, %v1782_v23  ;;  %v770_v8 = vmul.f32 %v4805_v4, %v4950_v47  ;;  %v1259_v30 = vmul.f32 %v4815_v12, %v4879_v56  ;;  %v1015_v33 = vmul.f32 %v4808_v5, %v4950_v47 }
  0xd3   : > { %v2242_v46 = vsel %vm1095_vm1, %v2239_v53, %v2241_v0  ;;  %v1340_v21 = vmul.f32 %v4801_v2, %v4950_v47  ;;  %v2423_v32 = vmax.f32 %v2391_v29, 0.0  ;;  %v7473_v35 = vrot.slane %v5104_v34, 2 }
  0xd4   : > { %v2109_v15 = vadd.f32 %v5129_v26, %v1860_v42  ;;  %v2351_v20 = vadd.f32 %v2242_v46, %v2107_v27  ;;  %v877_v49 = vrot.slane %v770_v8, 1  ;;  %v7474_v40 = vrot.slane %v5071_v61, 2  ;;  %v7477_v27 = vld [vmem:[#allocation13_spill] sm:$0xff] }
  0xd5   : > { %v1783_v53 = vadd.f32 %v5122_v44, %v1539_v19  ;;  %v1291_v6 = vadd.f32 %v1259_v30, %v1213_v24  ;;  %v617_v41 = vmul.f32 %v4813_v11, %v4950_v47  ;;  %v2453_v50 = vmax.f32 %v2421_v17, %v2423_v32 }
  0xd6   : > { %v5217_v56 = vsel %vm1095_vm1, %v7474_v40, %v7473_v35  ;;  %v2353_v55 = vadd.f32 %v5139_v48, %v2109_v15  ;;  %v2390_v26 = vadd.f32 %v5173_v9, %v2351_v20  ;;  %v1584_v14 = vmul.f32 %v4803_v3, %v4950_v47 }
  0xd7   : > { %v5228_v61 = vmul.f32 %v4820_v16, %v4950_v47  ;;  %v771_v34 = vmul.f32 %v4805_v4, %v698_v59  ;;  %v7475_v44 = vrot.slane %v4985_v1, 1  ;;  %v1016_v10 = vmul.f32 %v4808_v5, %v698_v59 }
  0xd8   : > { %v2392_v54 = vadd.f32 %v5173_v9, %v2353_v55  ;;  %v2422_v48 = vmax.f32 %v2390_v26, 0.0  ;;  %v1122_v7 = vrot.slane %v1015_v33, 2  ;;  %v1444_v58 = vrot.slane %v1340_v21, 1 }
  0xd9   : > { %v878_v57 = vsel %vm850_vm0, %v7475_v44, %v877_v49  ;;  %v2477_v38 = vrot.slane %v2453_v50, 1  ;;  %v5238_v39 = vmul.f32 %v4885_v62, %v4950_v47  ;;  %v879_v25 = vrot.slane %v771_v34, 1 }
  0xda   : > { %v1341_v31 = vmul.f32 %v4801_v2, %v698_v59  ;;  %v2424_v36 = vmax.f32 %v2392_v54, 0.0  ;;  %v973_v1 = vadd.f32 %v878_v57, %v7476_v45  ;;  %v1124_v63 = vrot.slane %v1016_v10, 2 }
  0xdb   : > { %v1585_v28 = vmul.f32 %v4803_v3, %v698_v59  ;;  %v1688_v23 = vrot.slane %v1584_v14, 2  ;;  %v2010_v60 = vrot.slane %v5228_v61, 1  ;;  %v880_v19 = vsel %vm850_vm0, %v877_v49, %v879_v25  ;;  %v693_v25 = vpop.permute.xlu0 %692 }
  0xdc   : > { %v1446_v24 = vrot.slane %v1341_v31, 1  ;;  %v1861_v0 = vadd.f32 %v7477_v27, %v1783_v53  ;;  %v1540_v29 = vadd.f32 %v1437_v52, %v1291_v6  ;;  %v5246_v17 = vmax.f32 %v2422_v48, %v2424_v36  ;;  %v7482_v53 = vld [vmem:[#allocation17_spill] sm:$0xff]  ;;  %v7485_v48 = vld [vmem:[#allocation18_spill] sm:$0xff] }
  0xdd   : > { %v974_v42 = vadd.f32 %v880_v19, %v617_v41  ;;  %v5248_v8 = vmax.f32 %v2453_v50, %v2477_v38  ;;  %v2254_v30 = vrot.slane %v5238_v39, 2  ;;  %v7479_v46 = vrot.slane %v4998_v37, 2  ;;  %v7484_v41 = vld [vmem:[#allocation5_spill] sm:$0xff]  ;;  %v7487_v36 = vld [vmem:[#allocation6_spill] sm:$0xff] }
  0xde   : > { %v1690_v21 = vrot.slane %v1585_v28, 2  ;;  %v1125_v32 = vsel %vm1095_vm1, %v1122_v7, %v1124_v63  ;;  %v7480_v20 = vrot.slane %v5005_v43, 1  ;;  %v5263_v49 = vmul.f32 %v4820_v16, %v698_v59 }
  0xdf   : > { %7478 = vst [vmem:[#allocation14_spill] sm:$0xff] %v5248_v8  ;;  %v1123_v33 = vsel %vm1095_vm1, %v7479_v46, %v1122_v7  ;;  %v5266_v35 = vsel %vm850_vm0, %v1444_v58, %v1446_v24  ;;  %v7481_v37 = vrot.slane %v5008_v22, 2  ;;  %v7483_v6 = vrot.slane %v7482_v53, 1  ;;  %v7490_v46 = vld [vmem:[#allocation8_spill] sm:$0xff] }
  0xe0   : > { %v5255_v15 = vadd.f32 %v1123_v33, %v973_v1  ;;  %v5260_v52 = vsel %vm850_vm0, %v7480_v20, %v1444_v58  ;;  %v767_v50 = vmul.f32 %v4805_v4, %v7484_v41  ;;  %v2509_v55 = vrot.slane %v5246_v17, 1 }
  0xe1   : > { %v5271_v40 = vsel %vm1095_vm1, %v7481_v37, %v1688_v23  ;;  %v5278_v43 = vsel %vm850_vm0, %v7483_v6, %v2010_v60  ;;  %v5283_v26 = vadd.f32 %v1125_v32, %v974_v42  ;;  %v5286_v14 = vmul.f32 %v4885_v62, %v698_v59 }
  0xe2   : > { %v1012_v22 = vmul.f32 %v4808_v5, %v7484_v41  ;;  %v5291_v34 = vsel %vm1095_vm1, %v1688_v23, %v1690_v21  ;;  %v872_v44 = vrot.slane %v767_v50, 1  ;;  %v1261_v57 = vmul.f32 %v4815_v12, %v7484_v41  ;;  %v7489_v23 = vld [vmem:[#allocation11_spill] sm:$0xff] }
  0xe3   : > { %v1337_v10 = vmul.f32 %v4801_v2, %v7484_v41  ;;  %v2012_v54 = vrot.slane %v5263_v49, 1  ;;  %v7486_v59 = vrot.slane %v7485_v48, 2  ;;  %v1581_v38 = vmul.f32 %v4803_v3, %v7484_v41  ;;  %v7492_v49 = vld [vmem:[#allocation7_spill] sm:$0xff] }
  0xe4   : > { %v1117_v58 = vrot.slane %v1012_v22, 2  ;;  %v615_v31 = vmul.f32 %v4813_v11, %v7484_v41  ;;  %v7488_v45 = vrot.slane %v7487_v36, 1  ;;  %v1293_v63 = vadd.f32 %v1261_v57, %v5189_v13  ;;  %v7496_v36 = vld [vmem:[#allocation10_spill] sm:$0xff] }
  0xe5   : > { %v5303_v7 = vsel %vm1095_vm1, %v7486_v59, %v2254_v30  ;;  %v1439_v28 = vrot.slane %v1337_v10, 1  ;;  %v1683_v24 = vrot.slane %v1581_v38, 2  ;;  %v1784_v27 = vadd.f32 %v5217_v56, %v1540_v29  ;;  %v7494_v29 = vld [vmem:[#allocation9_spill] sm:$0xff] }
  0xe6   : > { %v873_v1 = vsel %vm850_vm0, %v7488_v45, %v872_v44  ;;  %v1905_v42 = vmul.f32 %v4820_v16, %v7484_v41  ;;  %v7491_v33 = vrot.slane %v7490_v46, 1  ;;  %v1830_v32 = vmul.f32 %v4870_v51, %v7484_v41 }
  0xe7   : > { %v971_v19 = vadd.f32 %v873_v1, %v7489_v23  ;;  %v2149_v20 = vmul.f32 %v4885_v62, %v7484_v41  ;;  %v768_v13 = vmul.f32 %v4805_v4, %v693_v25  ;;  %v7493_v37 = vrot.slane %v7492_v49, 2 }
  0xe8   : > { %v1440_v21 = vsel %vm850_vm0, %v7491_v33, %v1439_v28  ;;  %v7495_v6 = vrot.slane %v7494_v29, 2  ;;  %v2005_v22 = vrot.slane %v1905_v42, 1  ;;  %v1013_v48 = vmul.f32 %v4808_v5, %v693_v25 }
  0xe9   : > { %v1118_v53 = vsel %vm1095_vm1, %v7493_v37, %v1117_v58  ;;  %v1541_v56 = vadd.f32 %v1440_v21, %v5178_v18  ;;  %v2249_v57 = vrot.slane %v2149_v20, 2  ;;  %v874_v10 = vrot.slane %v768_v13, 1  ;;  %v505_v18 = vpop.permute.xlu0 %504  ;;  %v5339_v20 = vpop.permute.xlu1 %509  ;;  %v7498_v13 = vld [vmem:[#allocation16_spill] sm:$0xff] }
  0xea   : > { %v1684_v50 = vsel %vm1095_vm1, %v7495_v6, %v1683_v24  ;;  %v1338_v59 = vmul.f32 %v4801_v2, %v693_v25  ;;  %v1216_v41 = vadd.f32 %v1118_v53, %v971_v19  ;;  %v7497_v45 = vrot.slane %v7496_v36, 1  ;;  %v7499_v53 = vld [vmem:[#allocation12_spill] sm:$0xff] }
  0xeb   : > { %v1785_v38 = vadd.f32 %v1684_v50, %v1541_v56  ;;  %v1582_v23 = vmul.f32 %v4803_v3, %v693_v25  ;;  %v1862_v46 = vadd.f32 %v1830_v32, %v1784_v27  ;;  %v875_v21 = vsel %vm850_vm0, %v872_v44, %v874_v10  ;;  %v7501_v27 = vld [vmem:[#allocation15_spill] sm:$0xff] }
  0xec   : > { %v2006_v1 = vsel %vm850_vm0, %v7497_v45, %v2005_v22  ;;  %v1119_v42 = vrot.slane %v1013_v48, 2  ;;  %v972_v37 = vadd.f32 %v875_v21, %v615_v31  ;;  %v1441_v29 = vrot.slane %v1338_v59, 1 }
  0xed   : > { %v2110_v33 = vadd.f32 %v2006_v1, %v1861_v0  ;;  %v1863_v49 = vadd.f32 %v7498_v13, %v1785_v38  ;;  %v1685_v19 = vrot.slane %v1582_v23, 2  ;;  %v7500_v56 = vrot.slane %v7499_v53, 2 }
  0xee   : > { %v1120_v50 = vsel %vm1095_vm1, %v1117_v58, %v1119_v42  ;;  %v1906_v36 = vmul.f32 %v4820_v16, %v693_v25  ;;  %v2150_v0 = vmul.f32 %v4885_v62, %v693_v25  ;;  %v1294_v44 = vadd.f32 %v7501_v27, %v1216_v41  ;;  %v515_v41 = vpop.permute.xlu0 %514 }
  0xef   : > { %v2250_v6 = vsel %vm1095_vm1, %v7500_v56, %v2249_v57  ;;  %v1217_v10 = vadd.f32 %v1120_v50, %v972_v37  ;;  %v1442_v48 = vsel %vm850_vm0, %v1439_v28, %v1441_v29  ;;  %v2256_v31 = vrot.slane %v5286_v14, 2 }
  0xf0   : > { %v2354_v32 = vadd.f32 %v2250_v6, %v2110_v33  ;;  %v1542_v59 = vadd.f32 %v1442_v48, %v1293_v63  ;;  %v2007_v38 = vrot.slane %v1906_v36, 1  ;;  %v2251_v45 = vrot.slane %v2150_v0, 2 }
  0xf1   : > { %v5352_v1 = vmax.f32 %v5246_v17, %v2509_v55  ;;  %v1263_v58 = vmul.f32 %v4815_v12, %v4950_v47  ;;  %v2112_v23 = vadd.f32 %v5278_v43, %v1863_v49  ;;  %v1686_v25 = vsel %vm1095_vm1, %v1683_v24, %v1685_v19  ;;  %v5364_v17 = vpop.permute.xlu1 %519 }
  0xf2   : > { %v2013_v28 = vsel %vm850_vm0, %v2010_v60, %v2012_v54  ;;  %v1832_v14 = vmul.f32 %v4870_v51, %v4950_v47  ;;  %v1786_v63 = vadd.f32 %v1686_v25, %v1542_v59  ;;  %v2008_v33 = vsel %vm850_vm0, %v2005_v22, %v2007_v38  ;;  %v525_v19 = vpop.permute.xlu0 %524 }
  0xf3   : > { %7502 = vst [vmem:[#allocation13_spill] sm:$0xff] %v5352_v1  ;;  %v5367_v55 = vadd.f32 %v5173_v9, %v2354_v32  ;;  %v1295_v21 = vadd.f32 %v1263_v58, %v1217_v10  ;;  %v2111_v43 = vadd.f32 %v2008_v33, %v1862_v46  ;;  %v1543_v24 = vadd.f32 %v5260_v52, %v1294_v44 }
  0xf4   : > { %v1864_v42 = vadd.f32 %v1832_v14, %v1786_v63  ;;  %v2252_v61 = vsel %vm1095_vm1, %v2249_v57, %v2251_v45  ;;  %v5372_v60 = vmul.f32 %v4805_v4, %v505_v18  ;;  %v5375_v47 = vmul.f32 %v4808_v5, %v505_v18 }
  0xf5   : > { %7503 = vst [vmem:[#allocation17_spill] sm:$0xff] %v5367_v55  ;;  %v2257_v54 = vsel %vm1095_vm1, %v2254_v30, %v2256_v31  ;;  %v5381_v22 = vadd.f32 %v5303_v7, %v2112_v23  ;;  %v2355_v13 = vadd.f32 %v2252_v61, %v2111_v43  ;;  %v1264_v46 = vmul.f32 %v4815_v12, %v505_v18  ;;  %v5407_v36 = vpop.permute.xlu1 %529 }
  0xf6   : > { %v5385_v52 = vmul.f32 %v4813_v11, %v505_v18  ;;  %v5388_v57 = vmul.f32 %v4801_v2, %v505_v18  ;;  %v5391_v49 = vmul.f32 %v4803_v3, %v505_v18  ;;  %v1833_v37 = vmul.f32 %v4870_v51, %v505_v18  ;;  %7506 = vst [vmem:[#allocation6_spill] sm:$0xff] %v5407_v36  ;;  %v535_v33 = vpop.permute.xlu0 %534 }
  0xf7   : > { %7504 = vst [vmem:[#allocation5_spill] sm:$0xff] %v5381_v22  ;;  %v5396_v30 = vadd.f32 %v5266_v35, %v1295_v21  ;;  %v2113_v7 = vadd.f32 %v2013_v28, %v1864_v42  ;;  %v5399_v29 = vadd.f32 %v5173_v9, %v2355_v13  ;;  %v1787_v53 = vadd.f32 %v5271_v40, %v1543_v24 }
  0xf8   : > { %v5405_v50 = vmul.f32 %v4820_v16, %v505_v18  ;;  %v5410_v0 = vadd.f32 %v1264_v46, %v5255_v15  ;;  %v5413_v35 = vmul.f32 %v4885_v62, %v505_v18  ;;  %v5416_v27 = vmul.f32 %v4805_v4, %v515_v41 }
  0xf9   : > { %7505 = vst [vmem:[#allocation18_spill] sm:$0xff] %v5399_v29  ;;  %v5419_v40 = vmul.f32 %v4808_v5, %v515_v41  ;;  %v5423_v10 = vadd.f32 %v1833_v37, %v1787_v53  ;;  %v5426_v48 = vmul.f32 %v4801_v2, %v515_v41  ;;  %v5428_v15 = vadd.f32 %v2257_v54, %v2113_v7  ;;  %v5461_v61 = vpop.permute.xlu1 %539 }
  0xfa   : > { %v620_v31 = vmul.f32 %v4813_v11, %v515_v41  ;;  %v5433_v59 = vmul.f32 %v4803_v3, %v515_v41  ;;  %v5437_v45 = vmul.f32 %v4815_v12, %v515_v41  ;;  %v5440_v58 = vmul.f32 %v4820_v16, %v515_v41 }
  0xfb   : > { %7507 = vst [vmem:[#allocation11_spill] sm:$0xff] %v5428_v15  ;;  %v5443_v23 = vmul.f32 %v4885_v62, %v515_v41  ;;  %v886_v28 = vrot.slane %v5416_v27, 1  ;;  %v1131_v14 = vrot.slane %v5419_v40, 2  ;;  %v5449_v63 = vmul.f32 %v4805_v4, %v525_v19 }
  0xfc   : > { %v5453_v43 = vmul.f32 %v4870_v51, %v515_v41  ;;  %v5456_v24 = vmul.f32 %v4808_v5, %v525_v19  ;;  %v5459_v42 = vmul.f32 %v4801_v2, %v525_v19  ;;  %v1697_v54 = vrot.slane %v5433_v59, 2 }
  0xfd   : > { %7508 = vst [vmem:[#allocation8_spill] sm:$0xff] %v5449_v63  ;;  %v5465_v13 = vmul.f32 %v4803_v3, %v525_v19  ;;  %v5468_v46 = vmul.f32 %v4820_v16, %v525_v19  ;;  %v5471_v37 = vmul.f32 %v4885_v62, %v525_v19  ;;  %v2019_v41 = vrot.slane %v5440_v58, 1  ;;  %v708_v21 = vpop.permute.xlu1 %707 }
  0xfe   : > { %7509 = vst [vmem:[#allocation7_spill] sm:$0xff] %v5456_v24  ;;  %7510 = vst [vmem:[#allocation9_spill] sm:$0xff] %v5459_v42  ;;  %v5476_v53 = vmul.f32 %v4813_v11, %v525_v19  ;;  %v5479_v27 = vmul.f32 %v4805_v4, %v535_v33  ;;  %v1268_v59 = vmul.f32 %v4815_v12, %v525_v19 }
  0xff   : > { %7511 = vst [vmem:[#allocation10_spill] sm:$0xff] %v5465_v13  ;;  %7512 = vst [vmem:[#allocation16_spill] sm:$0xff] %v5468_v46  ;;  %v5484_v18 = vmul.f32 %v4870_v51, %v525_v19  ;;  %v5487_v39 = vmul.f32 %v4808_v5, %v535_v33  ;;  %v5492_v38 = vmul.f32 %v4813_v11, %v535_v33 }
 0x100   : > { %7513 = vst [vmem:[#allocation12_spill] sm:$0xff] %v5471_v37  ;;  %7514 = vst [vmem:[#allocation15_spill] sm:$0xff] %v5476_v53  ;;  %v5495_v32 = vmul.f32 %v4801_v2, %v535_v33  ;;  %v5501_v6 = vmul.f32 %v4815_v12, %v535_v33  ;;  %v776_v25 = vmul.f32 %v4805_v4, %v5364_v17 }
 0x101   : > { %7515 = vst [vmem:[#allocation19_spill] sm:$0xff] %v5487_v39  ;;  %7516 = vst [vmem:[#allocation20_spill] sm:$0xff] %v5492_v38  ;;  %v1021_v58 = vmul.f32 %v4808_v5, %v5364_v17  ;;  %v1346_v7 = vmul.f32 %v4801_v2, %v5364_v17  ;;  %v5512_v44 = vmul.f32 %v4803_v3, %v535_v33 }
 0x102   : > { %7517 = vst [vmem:[#allocation21_spill] sm:$0xff] %v5495_v32  ;;  %7518 = vst [vmem:[#allocation22_spill] sm:$0xff] %v5501_v6  ;;  %v1590_v19 = vmul.f32 %v4803_v3, %v5364_v17  ;;  %v1914_v56 = vmul.f32 %v4820_v16, %v5364_v17  ;;  %v5520_v8 = vmul.f32 %v4870_v51, %v535_v33  ;;  %v887_v29 = vrot.slane %v776_v25, 1 }
 0x103   : > { %v1132_v55 = vrot.slane %v1021_v58, 2  ;;  %v5523_v15 = vmul.f32 %v4820_v16, %v535_v33  ;;  %v5526_v40 = vmul.f32 %v4885_v62, %v535_v33  ;;  %v777_v22 = vmul.f32 %v4805_v4, %v708_v21 }
 0x104   : > { %7519 = vst [vmem:[#allocation23_spill] sm:$0xff] %v5520_v8  ;;  %v1022_v6 = vmul.f32 %v4808_v5, %v708_v21  ;;  %v1454_v37 = vrot.slane %v1346_v7, 1  ;;  %v5532_v46 = vmul.f32 %v4885_v62, %v5364_v17  ;;  %v888_v1 = vsel %vm850_vm0, %v886_v28, %v887_v29 }
 0x105   : > { %v1347_v25 = vmul.f32 %v4801_v2, %v708_v21  ;;  %v1698_v58 = vrot.slane %v1590_v19, 2  ;;  %v2020_v8 = vrot.slane %v1914_v56, 1  ;;  %v889_v13 = vrot.slane %v777_v22, 1 }
 0x106   : > { %v977_v42 = vadd.f32 %v888_v1, %v620_v31  ;;  %v1133_v33 = vsel %vm1095_vm1, %v1131_v14, %v1132_v55  ;;  %v1134_v24 = vrot.slane %v1022_v6, 2  ;;  %v1591_v53 = vmul.f32 %v4803_v3, %v708_v21 }
 0x107   : > { %v1915_v63 = vmul.f32 %v4820_v16, %v708_v21  ;;  %v621_v7 = vmul.f32 %v4813_v11, %v5364_v17  ;;  %v890_v36 = vsel %vm850_vm0, %v887_v29, %v889_v13  ;;  %v1456_v28 = vrot.slane %v1347_v25, 1 }
 0x108   : > { %v1222_v32 = vadd.f32 %v1133_v33, %v977_v42  ;;  %v7399_v22 = vrot.slane %v5532_v46, 2  ;;  %v7520_v31 = vrot.slane %v5426_v48, 1  ;;  %v5550_v19 = vsel %vm1095_vm1, %v1697_v54, %v1698_v58 }
 0x109   : > { %v978_v6 = vadd.f32 %v890_v36, %v621_v7  ;;  %v1700_v38 = vrot.slane %v1591_v53, 2  ;;  %v1135_v29 = vsel %vm1095_vm1, %v1132_v55, %v1134_v24  ;;  %v5554_v42 = vsel %vm850_vm0, %v2019_v41, %v2020_v8 }
 0x10a   : > { %v1455_v14 = vsel %vm850_vm0, %v7520_v31, %v1454_v37  ;;  %v2022_v13 = vrot.slane %v1915_v63, 1  ;;  %v773_v25 = vmul.f32 %v4805_v4, %v5339_v20  ;;  %v5558_v33 = vadd.f32 %v1268_v59, %v1222_v32 }
 0x10b   : > { %v5561_v36 = vsel %vm850_vm0, %v1454_v37, %v1456_v28  ;;  %v5564_v48 = vmul.f32 %v4885_v62, %v708_v21  ;;  %v1018_v54 = vmul.f32 %v4808_v5, %v5339_v20  ;;  %v7521_v55 = vrot.slane %v5443_v23, 2  ;;  %v703_v23 = vpop.permute.xlu0 %702 }
 0x10c   : > { %v882_v24 = vrot.slane %v773_v25, 1  ;;  %v1343_v32 = vmul.f32 %v4801_v2, %v5339_v20  ;;  %v1587_v37 = vmul.f32 %v4803_v3, %v5339_v20  ;;  %v5579_v41 = vadd.f32 %v1135_v29, %v978_v6 }
 0x10d   : > { %v5573_v63 = vsel %vm1095_vm1, %v7521_v55, %v7399_v22  ;;  %v5582_v21 = vsel %vm1095_vm1, %v1698_v58, %v1700_v38  ;;  %v619_v53 = vmul.f32 %v4813_v11, %v5339_v20  ;;  %v1127_v59 = vrot.slane %v1018_v54, 2 }
 0x10e   : > { %v5587_v7 = vsel %vm850_vm0, %v2020_v8, %v2022_v13  ;;  %v7522_v28 = vrot.slane %v5372_v60, 1  ;;  %v1449_v25 = vrot.slane %v1343_v32, 1  ;;  %v1693_v55 = vrot.slane %v1587_v37, 2 }
 0x10f   : > { %v1265_v38 = vmul.f32 %v4815_v12, %v5339_v20  ;;  %v1788_v58 = vadd.f32 %v5291_v34, %v5396_v30  ;;  %v1911_v29 = vmul.f32 %v4820_v16, %v5339_v20  ;;  %v7523_v8 = vrot.slane %v5375_v47, 2 }
 0x110   : > { %v883_v31 = vsel %vm850_vm0, %v7522_v28, %v882_v24  ;;  %v7524_v60 = vrot.slane %v5388_v57, 1  ;;  %v774_v32 = vmul.f32 %v4805_v4, %v703_v23  ;;  %v1019_v30 = vmul.f32 %v4808_v5, %v703_v23 }
 0x111   : > { %v975_v6 = vadd.f32 %v883_v31, %v5385_v52  ;;  %v1128_v13 = vsel %vm1095_vm1, %v7523_v8, %v1127_v59  ;;  %v2155_v52 = vmul.f32 %v4885_v62, %v5339_v20  ;;  %v2015_v34 = vrot.slane %v1911_v29, 1 }
 0x112   : > { %v1450_v54 = vsel %vm850_vm0, %v7524_v60, %v1449_v25  ;;  %v7525_v31 = vrot.slane %v5391_v49, 2  ;;  %v884_v8 = vrot.slane %v774_v32, 1  ;;  %v1344_v57 = vmul.f32 %v4801_v2, %v703_v23 }
 0x113   : > { %v1220_v37 = vadd.f32 %v1128_v13, %v975_v6  ;;  %v1545_v28 = vadd.f32 %v1450_v54, %v5410_v0  ;;  %v1588_v60 = vmul.f32 %v4803_v3, %v703_v23  ;;  %v1297_v1 = vadd.f32 %v1265_v38, %v5283_v26 }
 0x114   : > { %v1694_v47 = vsel %vm1095_vm1, %v7525_v31, %v1693_v55  ;;  %v7526_v6 = vrot.slane %v5405_v50, 1  ;;  %v1834_v29 = vmul.f32 %v4870_v51, %v5339_v20  ;;  %v2259_v49 = vrot.slane %v2155_v52, 2 }
 0x115   : > { %v1298_v56 = vadd.f32 %v5437_v45, %v1220_v37  ;;  %v1789_v39 = vadd.f32 %v1694_v47, %v1545_v28  ;;  %v885_v13 = vsel %vm850_vm0, %v882_v24, %v884_v8  ;;  %v1451_v54 = vrot.slane %v1344_v57, 1 }
 0x116   : > { %v2016_v0 = vsel %vm850_vm0, %v7526_v6, %v2015_v34  ;;  %v1129_v26 = vrot.slane %v1019_v30, 2  ;;  %v976_v38 = vadd.f32 %v885_v13, %v619_v53  ;;  %v1695_v37 = vrot.slane %v1588_v60, 2 }
 0x117   : > { %v1547_v32 = vadd.f32 %v1455_v14, %v1298_v56  ;;  %v1867_v31 = vadd.f32 %v5453_v43, %v1789_v39  ;;  %v2114_v22 = vadd.f32 %v2016_v0, %v5423_v10  ;;  %v1452_v45 = vsel %vm850_vm0, %v1449_v25, %v1451_v54 }
 0x118   : > { %v1912_v50 = vmul.f32 %v4820_v16, %v703_v23  ;;  %v2266_v28 = vrot.slane %v5564_v48, 2  ;;  %v1836_v20 = vmul.f32 %v4870_v51, %v5364_v17  ;;  %v1866_v52 = vadd.f32 %v1834_v29, %v1788_v58 }
 0x119   : > { %v1546_v24 = vadd.f32 %v1452_v45, %v1297_v1  ;;  %v7527_v56 = vrot.slane %v5413_v35, 2  ;;  %v1696_v10 = vsel %vm1095_vm1, %v1693_v55, %v1695_v37  ;;  %v2156_v14 = vmul.f32 %v4885_v62, %v703_v23  ;;  %v718_v23 = vpop.permute.xlu1 %717 }
 0x11a   : > { %v2017_v43 = vrot.slane %v1912_v50, 1  ;;  %v1791_v53 = vadd.f32 %v5550_v19, %v1547_v32  ;;  %v1130_v30 = vsel %vm1095_vm1, %v1127_v59, %v1129_v26  ;;  %v2116_v47 = vadd.f32 %v5554_v42, %v1867_v31 }
 0x11b   : > { %v2260_v39 = vsel %vm1095_vm1, %v7527_v56, %v2259_v49  ;;  %v1790_v48 = vadd.f32 %v1696_v10, %v1546_v24  ;;  %v1221_v8 = vadd.f32 %v1130_v30, %v976_v38  ;;  %v2261_v58 = vrot.slane %v2156_v14, 2  ;;  %v7552_v56 = vld [vmem:[#allocation16_spill] sm:$0xff] }
 0x11c   : > { %v2358_v25 = vadd.f32 %v2260_v39, %v2114_v22  ;;  %v2018_v1 = vsel %vm850_vm0, %v2015_v34, %v2017_v43  ;;  %v1267_v35 = vmul.f32 %v4815_v12, %v5364_v17  ;;  %v782_v62 = vmul.f32 %v4805_v4, %v5461_v61 }
 0x11d   : > { %v1868_v57 = vadd.f32 %v1836_v20, %v1790_v48  ;;  %v2115_v55 = vadd.f32 %v2018_v1, %v1866_v52  ;;  %v2262_v19 = vsel %vm1095_vm1, %v2259_v49, %v2261_v58  ;;  %v1027_v22 = vmul.f32 %v4808_v5, %v5461_v61  ;;  %v7533_v20 = vld [vmem:[#allocation20_spill] sm:$0xff] }
 0x11e   : > { %v1352_v42 = vmul.f32 %v4801_v2, %v5461_v61  ;;  %v5650_v59 = vmul.f32 %v4803_v3, %v5461_v61  ;;  %v7528_v17 = vrot.slane %v5532_v46, 2  ;;  %v5656_v60 = vadd.f32 %v5173_v9, %v2358_v25 }
 0x11f   : > { %v2359_v6 = vadd.f32 %v2262_v19, %v2115_v55  ;;  %v897_v0 = vrot.slane %v782_v62, 1  ;;  %v5659_v29 = vadd.f32 %v5484_v18, %v1791_v53  ;;  %v5662_v49 = vadd.f32 %v5573_v63, %v2116_v47  ;;  %v5674_v18 = vld [vmem:[%s7352_s1 + $0x8] ss:$0 sm:$0xff] }
 0x120   : > { %v2267_v34 = vsel %vm1095_vm1, %v7528_v17, %v2266_v28  ;;  %7529 = vst [vmem:[#allocation24_spill] sm:$0xff] %v5656_v60  ;;  %v1299_v13 = vadd.f32 %v1267_v35, %v1221_v8  ;;  %v2117_v54 = vadd.f32 %v5587_v7, %v1868_v57  ;;  %v1142_v32 = vrot.slane %v1027_v22, 2  ;;  %v7535_v47 = vld [vmem:[#allocation19_spill] sm:$0xff]  ;;  %v7537_v57 = vld [vmem:[#allocation21_spill] sm:$0xff] }
 0x121   : > { %7530 = vst [vmem:[#allocation25_spill] sm:$0xff] %v5662_v49  ;;  %v1464_v31 = vrot.slane %v1352_v42, 1  ;;  %v5667_v46 = vmul.f32 %v4820_v16, %v5461_v61  ;;  %v783_v26 = vmul.f32 %v4805_v4, %v718_v23  ;;  %v7402_v38 = vrot.slane %v5650_v59, 2 }
 0x122   : > { %v5678_v63 = vmul.f32 %v5674_v18, %v5461_v61  ;;  %v7531_v7 = vrot.slane %v5479_v27, 1  ;;  %v1028_v37 = vmul.f32 %v4808_v5, %v718_v23  ;;  %v5685_v50 = vadd.f32 %v5173_v9, %v2359_v6  ;;  %v7540_v6 = vld [vmem:[#allocation6_spill] sm:$0xff] }
 0x123   : > { %v899_v28 = vrot.slane %v783_v26, 1  ;;  %v1353_v24 = vmul.f32 %v4801_v2, %v718_v23  ;;  %v1548_v39 = vadd.f32 %v5561_v36, %v1299_v13  ;;  %v625_v10 = vmul.f32 %v4813_v11, %v5461_v61 }
 0x124   : > { %v898_v45 = vsel %vm850_vm0, %v7531_v7, %v897_v0  ;;  %7532 = vst [vmem:[#allocation26_spill] sm:$0xff] %v5685_v50  ;;  %v1144_v27 = vrot.slane %v1028_v37, 2  ;;  %v7401_v43 = vrot.slane %v5667_v46, 1  ;;  %v5696_v25 = vmul.f32 %v4803_v3, %v718_v23 }
 0x125   : > { %v981_v52 = vadd.f32 %v898_v45, %v7533_v20  ;;  %v900_v14 = vsel %vm850_vm0, %v897_v0, %v899_v28  ;;  %v1466_v53 = vrot.slane %v1353_v24, 1  ;;  %v5698_v30 = vadd.f32 %v2267_v34, %v2117_v54 }
 0x126   : > { %v7400_v48 = vrot.slane %v5678_v63, 2  ;;  %v7536_v8 = vrot.slane %v7535_v47, 2  ;;  %v5705_v1 = vmul.f32 %v4820_v16, %v718_v23  ;;  %v7538_v55 = vrot.slane %v7537_v57, 1 }
 0x127   : > { %7534 = vst [vmem:[#allocation20_spill] sm:$0xff] %v5698_v30  ;;  %v7539_v19 = vrot.slane %v5512_v44, 2  ;;  %v5722_v42 = vadd.f32 %v900_v14, %v625_v10  ;;  %v5725_v17 = vsel %vm1095_vm1, %v1142_v32, %v1144_v27  ;;  %v5728_v34 = vmul.f32 %v5674_v18, %v718_v23  ;;  %v7543_v10 = vld [vmem:[#allocation8_spill] sm:$0xff]  ;;  %v7556_v23 = vld [vmem:[#allocation23_spill] sm:$0xff] }
 0x128   : > { %v1143_v36 = vsel %vm1095_vm1, %v7536_v8, %v1142_v32  ;;  %v5713_v62 = vsel %vm850_vm0, %v7538_v55, %v1464_v31  ;;  %v779_v0 = vmul.f32 %v4805_v4, %v7540_v6  ;;  %v5733_v13 = vsel %vm850_vm0, %v1464_v31, %v1466_v53  ;;  %v713_v8 = vpop.permute.xlu0 %712 }
 0x129   : > { %v5708_v35 = vadd.f32 %v1143_v36, %v981_v52  ;;  %v5720_v22 = vsel %vm1095_vm1, %v7539_v19, %v7402_v38  ;;  %v7541_v44 = vrot.slane %v5523_v15, 1  ;;  %v1024_v32 = vmul.f32 %v4808_v5, %v7540_v6  ;;  %v7545_v36 = vld [vmem:[#allocation15_spill] sm:$0xff] }
 0x12a   : > { %v892_v7 = vrot.slane %v779_v0, 1  ;;  %v1349_v45 = vmul.f32 %v4801_v2, %v7540_v6  ;;  %v1593_v31 = vmul.f32 %v4803_v3, %v7540_v6  ;;  %v7542_v37 = vrot.slane %v5526_v40, 2  ;;  %v7546_v0 = vld [vmem:[#allocation7_spill] sm:$0xff] }
 0x12b   : > { %v2031_v26 = vsel %vm850_vm0, %v7541_v44, %v7401_v43  ;;  %v623_v28 = vmul.f32 %v4813_v11, %v7540_v6  ;;  %v1137_v20 = vrot.slane %v1024_v32, 2  ;;  %v1269_v52 = vmul.f32 %v4815_v12, %v7540_v6  ;;  %v7548_v32 = vld [vmem:[#allocation9_spill] sm:$0xff] }
 0x12c   : > { %v2275_v15 = vsel %vm1095_vm1, %v7542_v37, %v7400_v48  ;;  %v2276_v24 = vrot.slane %v5728_v34, 2  ;;  %v7544_v27 = vrot.slane %v7543_v10, 1  ;;  %v1459_v53 = vrot.slane %v1349_v45, 1 }
 0x12d   : > { %v1703_v47 = vrot.slane %v1593_v31, 2  ;;  %v1301_v57 = vadd.f32 %v1269_v52, %v5579_v41  ;;  %v1792_v55 = vadd.f32 %v5582_v21, %v1548_v39  ;;  %v1917_v19 = vmul.f32 %v4820_v16, %v7540_v6  ;;  %v7550_v21 = vld [vmem:[#allocation10_spill] sm:$0xff] }
 0x12e   : > { %v893_v14 = vsel %vm850_vm0, %v7544_v27, %v892_v7  ;;  %v7547_v44 = vrot.slane %v7546_v0, 2  ;;  %v7549_v37 = vrot.slane %v7548_v32, 1  ;;  %v1838_v45 = vmul.f32 %v4870_v51, %v7540_v6 }
 0x12f   : > { %v979_v40 = vadd.f32 %v893_v14, %v7545_v36  ;;  %v2161_v31 = vmul.f32 %v5674_v18, %v7540_v6  ;;  %v7551_v39 = vrot.slane %v7550_v21, 2  ;;  %v2025_v27 = vrot.slane %v1917_v19, 1 }
 0x130   : > { %v1138_v34 = vsel %vm1095_vm1, %v7547_v44, %v1137_v20  ;;  %v1460_v10 = vsel %vm850_vm0, %v7549_v37, %v1459_v53  ;;  %v780_v14 = vmul.f32 %v4805_v4, %v713_v8  ;;  %v1025_v0 = vmul.f32 %v4808_v5, %v713_v8 }
 0x131   : > { %v1549_v41 = vadd.f32 %v1460_v10, %v5558_v33  ;;  %v1704_v52 = vsel %vm1095_vm1, %v7551_v39, %v1703_v47  ;;  %v2269_v36 = vrot.slane %v2161_v31, 2  ;;  %v1350_v44 = vmul.f32 %v4801_v2, %v713_v8  ;;  %v7554_v39 = vld [vmem:[#allocation12_spill] sm:$0xff] }
 0x132   : > { %v1594_v32 = vmul.f32 %v4803_v3, %v713_v8  ;;  %v1224_v37 = vadd.f32 %v1138_v34, %v979_v40  ;;  %v7553_v6 = vrot.slane %v7552_v56, 1  ;;  %v894_v10 = vrot.slane %v780_v14, 1  ;;  %v5795_v14 = vpop.permute.xlu1 %549 }
 0x133   : > { %v1793_v58 = vadd.f32 %v1704_v52, %v1549_v41  ;;  %v7555_v19 = vrot.slane %v7554_v39, 2  ;;  %v1139_v31 = vrot.slane %v1025_v0, 2  ;;  %v1461_v43 = vrot.slane %v1350_v44, 1 }
 0x134   : > { %v2026_v33 = vsel %vm850_vm0, %v7553_v6, %v2025_v27  ;;  %v895_v54 = vsel %vm850_vm0, %v892_v7, %v894_v10  ;;  %v1705_v50 = vrot.slane %v1594_v32, 2  ;;  %v1918_v40 = vmul.f32 %v4820_v16, %v713_v8 }
 0x135   : > { %v2118_v21 = vadd.f32 %v2026_v33, %v5659_v29  ;;  %v2270_v48 = vsel %vm1095_vm1, %v7555_v19, %v2269_v36  ;;  %v1871_v38 = vadd.f32 %v7556_v23, %v1793_v58  ;;  %v1870_v34 = vadd.f32 %v1838_v45, %v1792_v55  ;;  %v545_v29 = vpop.permute.xlu0 %544  ;;  %v7557_v58 = vld [vmem:[#allocation22_spill] sm:$0xff] }
 0x136   : > { %v980_v41 = vadd.f32 %v895_v54, %v623_v28  ;;  %v1462_v52 = vsel %vm850_vm0, %v1459_v53, %v1461_v43  ;;  %v1840_v6 = vmul.f32 %v4870_v51, %v5461_v61  ;;  %v2027_v33 = vrot.slane %v1918_v40, 1 }
 0x137   : > { %v2362_v56 = vadd.f32 %v2270_v48, %v2118_v21  ;;  %v2120_v0 = vadd.f32 %v2031_v26, %v1871_v38  ;;  %v1550_v44 = vadd.f32 %v1462_v52, %v1301_v57  ;;  %v1302_v23 = vadd.f32 %v7557_v58, %v1224_v37  ;;  %v5829_v21 = vpop.permute.xlu1 %559 }
 0x138   : > { %v1140_v7 = vsel %vm1095_vm1, %v1137_v20, %v1139_v31  ;;  %v1706_v32 = vsel %vm1095_vm1, %v1703_v47, %v1705_v50  ;;  %v2162_v48 = vmul.f32 %v5674_v18, %v713_v8  ;;  %v2028_v53 = vsel %vm850_vm0, %v2025_v27, %v2027_v33 }
 0x139   : > { %v2364_v54 = vadd.f32 %v2275_v15, %v2120_v0  ;;  %v2401_v43 = vadd.f32 %v5173_v9, %v2362_v56  ;;  %v1794_v28 = vadd.f32 %v1706_v32, %v1550_v44  ;;  %v5807_v55 = vadd.f32 %v5725_v17, %v5722_v42 }
 0x13a   : > { %v1225_v38 = vadd.f32 %v1140_v7, %v980_v41  ;;  %v2119_v26 = vadd.f32 %v2028_v53, %v1870_v34  ;;  %v2271_v57 = vrot.slane %v2162_v48, 2  ;;  %v7558_v45 = vrot.slane %v5696_v25, 2 }
 0x13b   : > { %v7559_v20 = vrot.slane %v5650_v59, 2  ;;  %v7560_v15 = vrot.slane %v5705_v1, 1  ;;  %v7561_v47 = vrot.slane %v5667_v46, 1  ;;  %v2403_v27 = vadd.f32 %v5173_v9, %v2364_v54  ;;  %v555_v1 = vpop.permute.xlu0 %554 }
 0x13c   : > { %v1872_v42 = vadd.f32 %v1840_v6, %v1794_v28  ;;  %v7562_v17 = vrot.slane %v5678_v63, 2  ;;  %v1271_v25 = vmul.f32 %v4815_v12, %v5461_v61  ;;  %v2272_v59 = vsel %vm1095_vm1, %v2269_v36, %v2271_v57 }
 0x13d   : > { %v5814_v50 = vsel %vm1095_vm1, %v7559_v20, %v7558_v45  ;;  %v2033_v8 = vsel %vm850_vm0, %v7561_v47, %v7560_v15  ;;  %v1551_v10 = vadd.f32 %v5713_v62, %v1302_v23  ;;  %v2433_v46 = vmax.f32 %v2401_v43, 0.0  ;;  %v5862_v43 = vpop.permute.xlu1 %569 }
 0x13e   : > { %v2277_v37 = vsel %vm1095_vm1, %v7562_v17, %v2276_v24  ;;  %v2435_v39 = vmax.f32 %v2403_v27, 0.0  ;;  %v2121_v19 = vadd.f32 %v2033_v8, %v1872_v42  ;;  %v2363_v31 = vadd.f32 %v2272_v59, %v2119_v26  ;;  %7563 = vst [vmem:[#allocation19_spill] sm:$0xff] %v5862_v43 }
 0x13f   : > { %v1303_v40 = vadd.f32 %v1271_v25, %v1225_v38  ;;  %v5832_v34 = vmul.f32 %v4805_v4, %v545_v29  ;;  %v5835_v63 = vmul.f32 %v4808_v5, %v545_v29  ;;  %v1272_v61 = vmul.f32 %v4815_v12, %v545_v29  ;;  %v565_v28 = vpop.permute.xlu0 %564 }
 0x140   : > { %v2459_v24 = vmax.f32 %v2433_v46, %v2435_v39  ;;  %v2365_v36 = vadd.f32 %v2277_v37, %v2121_v19  ;;  %v2402_v62 = vadd.f32 %v5173_v9, %v2363_v31  ;;  %v5840_v56 = vmul.f32 %v4801_v2, %v545_v29 }
 0x141   : > { %v5843_v41 = vmul.f32 %v4813_v11, %v545_v29  ;;  %v5846_v52 = vmul.f32 %v4803_v3, %v545_v29  ;;  %v1841_v6 = vmul.f32 %v4870_v51, %v545_v29  ;;  %v5850_v0 = vmul.f32 %v4820_v16, %v545_v29  ;;  %v5911_v31 = vpop.permute.xlu1 %579 }
 0x142   : > { %v2404_v44 = vadd.f32 %v5173_v9, %v2365_v36  ;;  %v2434_v33 = vmax.f32 %v2402_v62, 0.0  ;;  %v1795_v58 = vadd.f32 %v5720_v22, %v1551_v10  ;;  %v5855_v23 = vmul.f32 %v5674_v18, %v545_v29 }
 0x143   : > { %v2480_v7 = vrot.slane %v2459_v24, 1  ;;  %v5858_v32 = vadd.f32 %v5733_v13, %v1303_v40  ;;  %v5865_v9 = vadd.f32 %v1272_v61, %v5708_v35  ;;  %v5869_v29 = vmul.f32 %v4805_v4, %v555_v1  ;;  %v575_v40 = vpop.permute.xlu0 %574 }
 0x144   : > { %v2436_v53 = vmax.f32 %v2404_v44, 0.0  ;;  %v5872_v13 = vadd.f32 %v1841_v6, %v1795_v58  ;;  %v5876_v57 = vmul.f32 %v4808_v5, %v555_v1  ;;  %v5880_v35 = vmul.f32 %v4801_v2, %v555_v1 }
 0x145   : > { %v5883_v15 = vmul.f32 %v4803_v3, %v555_v1  ;;  %v5885_v47 = vmax.f32 %v2459_v24, %v2480_v7  ;;  %v628_v8 = vmul.f32 %v4813_v11, %v555_v1  ;;  %v5889_v27 = vmul.f32 %v4820_v16, %v555_v1 }
 0x146   : > { %v2460_v45 = vmax.f32 %v2434_v33, %v2436_v53  ;;  %v5892_v42 = vmul.f32 %v5674_v18, %v555_v1  ;;  %v906_v37 = vrot.slane %v5869_v29, 1  ;;  %v5896_v25 = vmul.f32 %v4815_v12, %v555_v1 }
 0x147   : > { %7564 = vst [vmem:[#allocation21_spill] sm:$0xff] %v5885_v47  ;;  %v5899_v59 = vmul.f32 %v4805_v4, %v565_v28  ;;  %v1151_v10 = vrot.slane %v5876_v57, 2  ;;  %v5903_v46 = vmul.f32 %v4870_v51, %v555_v1  ;;  %v5906_v39 = vmul.f32 %v4808_v5, %v565_v28 }
 0x148   : > { %v2512_v17 = vrot.slane %v2460_v45, 1  ;;  %v5909_v19 = vmul.f32 %v4801_v2, %v565_v28  ;;  %v1473_v61 = vrot.slane %v5880_v35, 1  ;;  %v1717_v24 = vrot.slane %v5883_v15, 2 }
 0x149   : > { %7565 = vst [vmem:[#allocation6_spill] sm:$0xff] %v5899_v59  ;;  %7566 = vst [vmem:[#allocation8_spill] sm:$0xff] %v5906_v39  ;;  %v5916_v36 = vmul.f32 %v4803_v3, %v565_v28  ;;  %v5919_v62 = vmul.f32 %v4820_v16, %v565_v28  ;;  %v2039_v1 = vrot.slane %v5889_v27, 1  ;;  %v5924_v44 = vmul.f32 %v4813_v11, %v565_v28 }
 0x14a   : > { %7567 = vst [vmem:[#allocation15_spill] sm:$0xff] %v5909_v19  ;;  %v5927_v33 = vmul.f32 %v5674_v18, %v565_v28  ;;  %v5929_v58 = vmax.f32 %v2460_v45, %v2512_v17  ;;  %v1276_v53 = vmul.f32 %v4815_v12, %v565_v28  ;;  %v5934_v29 = vmul.f32 %v4805_v4, %v575_v40  ;;  %v728_v45 = vpop.permute.xlu1 %727 }
 0x14b   : > { %7568 = vst [vmem:[#allocation7_spill] sm:$0xff] %v5916_v36  ;;  %7569 = vst [vmem:[#allocation9_spill] sm:$0xff] %v5919_v62  ;;  %v5939_v15 = vmul.f32 %v4870_v51, %v565_v28  ;;  %v5942_v27 = vmul.f32 %v4808_v5, %v575_v40  ;;  %v5947_v7 = vmul.f32 %v4813_v11, %v575_v40 }
 0x14c   : > { %7570 = vst [vmem:[#allocation10_spill] sm:$0xff] %v5924_v44  ;;  %7571 = vst [vmem:[#allocation16_spill] sm:$0xff] %v5927_v33  ;;  %v5950_v20 = vmul.f32 %v4815_v12, %v575_v40  ;;  %v5954_v35 = vmul.f32 %v4801_v2, %v575_v40  ;;  %v5957_v28 = vmul.f32 %v4803_v3, %v575_v40 }
 0x14d   : > { %7572 = vst [vmem:[#allocation12_spill] sm:$0xff] %v5929_v58  ;;  %v788_v26 = vmul.f32 %v4805_v4, %v5829_v21  ;;  %v5963_v38 = vmul.f32 %v4870_v51, %v575_v40  ;;  %v1033_v22 = vmul.f32 %v4808_v5, %v5829_v21  ;;  %v1358_v57 = vmul.f32 %v4801_v2, %v5829_v21 }
 0x14e   : > { %7573 = vst [vmem:[#allocation23_spill] sm:$0xff] %v5950_v20  ;;  %7574 = vst [vmem:[#allocation22_spill] sm:$0xff] %v5954_v35  ;;  %v5971_v48 = vmul.f32 %v4820_v16, %v575_v40  ;;  %v5975_v58 = vmul.f32 %v4803_v3, %v5829_v21  ;;  %v1926_v47 = vmul.f32 %v4820_v16, %v5829_v21 }
 0x14f   : > { %7575 = vst [vmem:[#allocation27_spill] sm:$0xff] %v5963_v38  ;;  %v907_v6 = vrot.slane %v788_v26, 1  ;;  %v1152_v17 = vrot.slane %v1033_v22, 2  ;;  %v789_v60 = vmul.f32 %v4805_v4, %v728_v45  ;;  %v1034_v30 = vmul.f32 %v4808_v5, %v728_v45 }
 0x150   : > { %v5983_v54 = vmul.f32 %v5674_v18, %v575_v40  ;;  %v5987_v26 = vmul.f32 %v5674_v18, %v5829_v21  ;;  %v629_v22 = vmul.f32 %v4813_v11, %v5829_v21  ;;  %v1474_v38 = vrot.slane %v1358_v57, 1 }
 0x151   : > { %v908_v20 = vsel %vm850_vm0, %v906_v37, %v907_v6  ;;  %v909_v33 = vrot.slane %v789_v60, 1  ;;  %v1154_v39 = vrot.slane %v1034_v30, 2  ;;  %v1359_v49 = vmul.f32 %v4801_v2, %v728_v45 }
 0x152   : > { %v985_v62 = vadd.f32 %v908_v20, %v628_v8  ;;  %v5995_v40 = vmul.f32 %v4803_v3, %v728_v45  ;;  %v2040_v19 = vrot.slane %v1926_v47, 1  ;;  %v1153_v59 = vsel %vm1095_vm1, %v1151_v10, %v1152_v17 }
 0x153   : > { %v910_v44 = vsel %vm850_vm0, %v907_v6, %v909_v33  ;;  %v1927_v37 = vmul.f32 %v4820_v16, %v728_v45  ;;  %v1475_v36 = vsel %vm850_vm0, %v1473_v61, %v1474_v38  ;;  %v1476_v35 = vrot.slane %v1359_v49, 1 }
 0x154   : > { %v1230_v8 = vadd.f32 %v1153_v59, %v985_v62  ;;  %v986_v57 = vadd.f32 %v910_v44, %v629_v22  ;;  %v1155_v47 = vsel %vm1095_vm1, %v1152_v17, %v1154_v39  ;;  %v7576_v6 = vrot.slane %v5975_v58, 2 }
 0x155   : > { %v2042_v43 = vrot.slane %v1927_v37, 1  ;;  %v2041_v60 = vsel %vm850_vm0, %v2039_v1, %v2040_v19  ;;  %v6012_v20 = vmul.f32 %v5674_v18, %v728_v45  ;;  %v785_v59 = vmul.f32 %v4805_v4, %v5795_v14 }
 0x156   : > { %v1719_v10 = vsel %vm1095_vm1, %v1717_v24, %v7576_v6  ;;  %v6018_v49 = vmul.f32 %v4808_v5, %v5795_v14  ;;  %v6020_v39 = vadd.f32 %v1276_v53, %v1230_v8  ;;  %v7578_v61 = vrot.slane %v5987_v26, 2 }
 0x157   : > { %v7579_v24 = vrot.slane %v5892_v42, 2  ;;  %v1355_v1 = vmul.f32 %v4801_v2, %v5795_v14  ;;  %v1599_v44 = vmul.f32 %v4803_v3, %v5795_v14  ;;  %v6031_v45 = vadd.f32 %v1155_v47, %v986_v57 }
 0x158   : > { %7577 = vst [vmem:[#allocation28_spill] sm:$0xff] %v6020_v39  ;;  %v6034_v17 = vsel %vm850_vm0, %v1474_v38, %v1476_v35  ;;  %v902_v22 = vrot.slane %v785_v59, 1  ;;  %v1147_v53 = vrot.slane %v6018_v49, 2  ;;  %v6038_v37 = vsel %vm850_vm0, %v2040_v19, %v2042_v43 }
 0x159   : > { %v2285_v62 = vsel %vm1095_vm1, %v7579_v24, %v7578_v61  ;;  %7580 = vst [vmem:[#allocation29_spill] sm:$0xff] %v6031_v45  ;;  %v627_v42 = vmul.f32 %v4813_v11, %v5795_v14  ;;  %v1469_v8 = vrot.slane %v1355_v1, 1  ;;  %v1713_v6 = vrot.slane %v1599_v44, 2  ;;  %v723_v61 = vpop.permute.xlu0 %722 }
 0x15a   : > { %v7581_v57 = vrot.slane %v5832_v34, 1  ;;  %v1273_v38 = vmul.f32 %v4815_v12, %v5795_v14  ;;  %v1923_v35 = vmul.f32 %v4820_v16, %v5795_v14  ;;  %v7582_v19 = vrot.slane %v5835_v63, 2 }
 0x15b   : > { %v7583_v49 = vrot.slane %v5840_v56, 1  ;;  %v7584_v34 = vrot.slane %v5846_v52, 2  ;;  %v2167_v24 = vmul.f32 %v5674_v18, %v5795_v14  ;;  %v1031_v63 = vmul.f32 %v4808_v5, %v723_v61 }
 0x15c   : > { %v903_v47 = vsel %vm850_vm0, %v7581_v57, %v902_v22  ;;  %v1148_v59 = vsel %vm1095_vm1, %v7582_v19, %v1147_v53  ;;  %v2035_v30 = vrot.slane %v1923_v35, 1  ;;  %v1356_v19 = vmul.f32 %v4801_v2, %v723_v61 }
 0x15d   : > { %v983_v43 = vadd.f32 %v903_v47, %v5843_v41  ;;  %v1470_v1 = vsel %vm850_vm0, %v7583_v49, %v1469_v8  ;;  %v1714_v44 = vsel %vm1095_vm1, %v7584_v34, %v1713_v6  ;;  %v786_v41 = vmul.f32 %v4805_v4, %v723_v61 }
 0x15e   : > { %v1553_v57 = vadd.f32 %v1470_v1, %v5865_v9  ;;  %v1600_v56 = vmul.f32 %v4803_v3, %v723_v61  ;;  %v7585_v52 = vrot.slane %v5850_v0, 1  ;;  %v2279_v33 = vrot.slane %v2167_v24, 2 }
 0x15f   : > { %v1228_v47 = vadd.f32 %v1148_v59, %v983_v43  ;;  %v904_v9 = vrot.slane %v786_v41, 1  ;;  %v1796_v1 = vadd.f32 %v5814_v50, %v5858_v32  ;;  %v1471_v59 = vrot.slane %v1356_v19, 1 }
 0x160   : > { %v1797_v49 = vadd.f32 %v1714_v44, %v1553_v57  ;;  %v2036_v34 = vsel %vm850_vm0, %v7585_v52, %v2035_v30  ;;  %v7586_v45 = vrot.slane %v5855_v23, 2  ;;  %v1715_v57 = vrot.slane %v1600_v56, 2  ;;  %v6087_v23 = vld [vmem:[%s7353_s2] ss:$0 sm:$0xff] }
 0x161   : > { %v1306_v35 = vadd.f32 %v5896_v25, %v1228_v47  ;;  %v2122_v43 = vadd.f32 %v2036_v34, %v5872_v13  ;;  %v905_v0 = vsel %vm850_vm0, %v902_v22, %v904_v9  ;;  %v1305_v24 = vadd.f32 %v1273_v38, %v5807_v55 }
 0x162   : > { %v1875_v39 = vadd.f32 %v5903_v46, %v1797_v49  ;;  %v2280_v44 = vsel %vm1095_vm1, %v7586_v45, %v2279_v33  ;;  %v1149_v25 = vrot.slane %v1031_v63, 2  ;;  %v1842_v50 = vmul.f32 %v4870_v51, %v5795_v14 }
 0x163   : > { %v1555_v41 = vadd.f32 %v1475_v36, %v1306_v35  ;;  %v2366_v52 = vadd.f32 %v2280_v44, %v2122_v43  ;;  %v1472_v13 = vsel %vm850_vm0, %v1469_v8, %v1471_v59  ;;  %v1924_v46 = vmul.f32 %v4820_v16, %v723_v61 }
 0x164   : > { %v2124_v32 = vadd.f32 %v2041_v60, %v1875_v39  ;;  %v984_v55 = vadd.f32 %v905_v0, %v627_v42  ;;  %v1554_v36 = vadd.f32 %v1472_v13, %v1305_v24  ;;  %v1716_v38 = vsel %vm1095_vm1, %v1713_v6, %v1715_v57 }
 0x165   : > { %v1799_v47 = vadd.f32 %v1719_v10, %v1555_v41  ;;  %v2405_v45 = vadd.f32 %v6087_v23, %v2366_v52  ;;  %v2037_v63 = vrot.slane %v1924_v46, 1  ;;  %v2168_v14 = vmul.f32 %v5674_v18, %v723_v61 }
 0x166   : > { %v2368_v22 = vadd.f32 %v2285_v62, %v2124_v32  ;;  %v1844_v60 = vmul.f32 %v4870_v51, %v5829_v21  ;;  %v1874_v39 = vadd.f32 %v1842_v50, %v1796_v1  ;;  %v1150_v10 = vsel %vm1095_vm1, %v1147_v53, %v1149_v25  ;;  %v738_v1 = vpop.permute.xlu1 %737 }
 0x167   : > { %v1798_v8 = vadd.f32 %v1716_v38, %v1554_v36  ;;  %v2038_v56 = vsel %vm850_vm0, %v2035_v30, %v2037_v63  ;;  %v2281_v49 = vrot.slane %v2168_v14, 2  ;;  %v794_v62 = vmul.f32 %v4805_v4, %v5911_v31 }
 0x168   : > { %v2407_v19 = vadd.f32 %v6087_v23, %v2368_v22  ;;  %v2437_v42 = vmax.f32 %v2405_v45, 0.0  ;;  %v1229_v6 = vadd.f32 %v1150_v10, %v984_v55  ;;  %v2123_v9 = vadd.f32 %v2038_v56, %v1874_v39 }
 0x169   : > { %v1876_v34 = vadd.f32 %v1844_v60, %v1798_v8  ;;  %v2282_v35 = vsel %vm1095_vm1, %v2279_v33, %v2281_v49  ;;  %v917_v43 = vrot.slane %v794_v62, 1  ;;  %v1039_v53 = vmul.f32 %v4808_v5, %v5911_v31 }
 0x16a   : > { %v2439_v61 = vmax.f32 %v2407_v19, 0.0  ;;  %v7587_v59 = vrot.slane %v5995_v40, 2  ;;  %v7588_v30 = vrot.slane %v5975_v58, 2  ;;  %v2367_v57 = vadd.f32 %v2282_v35, %v2123_v9 }
 0x16b   : > { %v2125_v0 = vadd.f32 %v6038_v37, %v1876_v34  ;;  %v1364_v24 = vmul.f32 %v4801_v2, %v5911_v31  ;;  %v7589_v33 = vrot.slane %v6012_v20, 2  ;;  %v7590_v41 = vrot.slane %v5987_v26, 2 }
 0x16c   : > { %v6107_v44 = vsel %vm1095_vm1, %v7588_v30, %v7587_v59  ;;  %v1275_v40 = vmul.f32 %v4815_v12, %v5829_v21  ;;  %v2461_v25 = vmax.f32 %v2437_v42, %v2439_v61  ;;  %v1608_v58 = vmul.f32 %v4803_v3, %v5911_v31  ;;  %v7593_v30 = vld [vmem:[#allocation22_spill] sm:$0xff] }
 0x16d   : > { %v2287_v52 = vsel %vm1095_vm1, %v7590_v41, %v7589_v33  ;;  %v2406_v37 = vadd.f32 %v6087_v23, %v2367_v57  ;;  %v633_v32 = vmul.f32 %v4813_v11, %v5911_v31  ;;  %v795_v13 = vmul.f32 %v4805_v4, %v738_v1 }
 0x16e   : > { %v2369_v50 = vadd.f32 %v2287_v52, %v2125_v0  ;;  %v1307_v20 = vadd.f32 %v1275_v40, %v1229_v6  ;;  %v1162_v46 = vrot.slane %v1039_v53, 2  ;;  %v6127_v26 = vmul.f32 %v4820_v16, %v5911_v31 }
 0x16f   : > { %v7591_v21 = vrot.slane %v5934_v29, 1  ;;  %v1484_v36 = vrot.slane %v1364_v24, 1  ;;  %v6135_v22 = vmul.f32 %v5674_v18, %v5911_v31  ;;  %v919_v38 = vrot.slane %v795_v13, 1 }
 0x170   : > { %v2408_v55 = vadd.f32 %v6087_v23, %v2369_v50  ;;  %v2481_v63 = vrot.slane %v2461_v25, 1  ;;  %v1728_v14 = vrot.slane %v1608_v58, 2  ;;  %v1040_v60 = vmul.f32 %v4808_v5, %v738_v1  ;;  %v7597_v58 = vld [vmem:[#allocation19_spill] sm:$0xff] }
 0x171   : > { %v918_v45 = vsel %vm850_vm0, %v7591_v21, %v917_v43  ;;  %v1365_v39 = vmul.f32 %v4801_v2, %v738_v1  ;;  %v2438_v10 = vmax.f32 %v2406_v37, 0.0  ;;  %v920_v29 = vsel %vm850_vm0, %v917_v43, %v919_v38 }
 0x172   : > { %v2440_v8 = vmax.f32 %v2408_v55, 0.0  ;;  %v989_v19 = vadd.f32 %v918_v45, %v5947_v7  ;;  %v2050_v56 = vrot.slane %v6127_v26, 1  ;;  %v1164_v49 = vrot.slane %v1040_v60, 2 }
 0x173   : > { %v1486_v62 = vrot.slane %v1365_v39, 1  ;;  %v1609_v42 = vmul.f32 %v4803_v3, %v738_v1  ;;  %v1877_v6 = vadd.f32 %v5939_v15, %v1799_v47  ;;  %v1556_v34 = vadd.f32 %v6034_v17, %v1307_v20  ;;  %v4568_v15 = vld [vmem:[%s7354_s3 + $0x80] sm:$0xff]   ;;  %v4569_v17 = vld [vmem:[%s7354_s3 + $0x88] sm:$0xff]  }
 0x174   : > { %v6145_v9 = vmax.f32 %v2438_v10, %v2440_v8  ;;  %v990_v61 = vadd.f32 %v920_v29, %v633_v32  ;;  %v6147_v35 = vmax.f32 %v2461_v25, %v2481_v63  ;;  %v2294_v53 = vrot.slane %v6135_v22, 2  ;;  %4506 = vmatprep.subr.bf16.mxu1 %v4568_v15  ;;  %v733_v63 = vpop.permute.xlu0 %732  ;;  %v7599_v39 = vld [vmem:[#allocation6_spill] sm:$0xff]  ;;  %v7601_v8 = vld [vmem:[#allocation29_spill] sm:$0xff] }
 0x175   : > { %v7592_v43 = vrot.slane %v5942_v27, 2  ;;  %v6154_v59 = vmul.f32 %v4820_v16, %v738_v1  ;;  %v7594_v0 = vrot.slane %v7593_v30, 1  ;;  %v7595_v27 = vrot.slane %v5957_v28, 2  ;;  %4507 = vmatpush3.bf16.msra.mxu1 %v4568_v15 }
 0x176   : > { %v1730_v33 = vrot.slane %v1609_v42, 2  ;;  %v1165_v41 = vsel %vm1095_vm1, %v1162_v46, %v1164_v49  ;;  %v6176_v52 = vsel %vm850_vm0, %v1484_v36, %v1486_v62  ;;  %v7596_v40 = vrot.slane %v5971_v48, 1  ;;  %4508 = vmatprep.subr.bf16.mxu1 %v4569_v17  ;;  %v7602_v49 = vld [vmem:[#allocation10_spill] sm:$0xff] }
 0x177   : > { %v1163_v7 = vsel %vm1095_vm1, %v7592_v43, %v1162_v46  ;;  %v6167_v57 = vsel %vm850_vm0, %v7594_v0, %v1484_v36  ;;  %v6172_v24 = vsel %vm1095_vm1, %v7595_v27, %v1728_v14  ;;  %v791_v50 = vmul.f32 %v4805_v4, %v7597_v58  ;;  %v7603_v43 = vld [vmem:[#allocation15_spill] sm:$0xff] }
 0x178   : > { %v6162_v47 = vadd.f32 %v1163_v7, %v989_v19  ;;  %v6183_v25 = vsel %vm850_vm0, %v7596_v40, %v2050_v56  ;;  %v2513_v28 = vrot.slane %v6145_v9, 1  ;;  %v6188_v37 = vadd.f32 %v1165_v41, %v990_v61 }
 0x179   : > { %v6191_v32 = vmul.f32 %v5674_v18, %v738_v1  ;;  %v1036_v13 = vmul.f32 %v4808_v5, %v7597_v58  ;;  %v2052_v48 = vrot.slane %v6154_v59, 1  ;;  %v912_v20 = vrot.slane %v791_v50, 1  ;;  %4509 = vmatpush3.bf16.msra.mxu1 %v4569_v17  ;;  %v7608_v50 = vld [vmem:[#allocation7_spill] sm:$0xff] }
 0x17a   : > { %v1277_v46 = vmul.f32 %v4815_v12, %v7597_v58  ;;  %v1361_v21 = vmul.f32 %v4801_v2, %v7597_v58  ;;  %v6201_v45 = vsel %vm1095_vm1, %v1728_v14, %v1730_v33  ;;  %v7598_v1 = vrot.slane %v5983_v54, 2  ;;  %v7605_v33 = vld [vmem:[#allocation8_spill] sm:$0xff] }
 0x17b   : > { %v1157_v36 = vrot.slane %v1036_v13, 2  ;;  %v1605_v38 = vmul.f32 %v4803_v3, %v7597_v58  ;;  %v631_v60 = vmul.f32 %v4813_v11, %v7597_v58  ;;  %v7600_v10 = vrot.slane %v7599_v39, 1 }
 0x17c   : > { %v6208_v55 = vsel %vm1095_vm1, %v7598_v1, %v2294_v53  ;;  %v1309_v29 = vadd.f32 %v1277_v46, %v7601_v8  ;;  %v1479_v19 = vrot.slane %v1361_v21, 1  ;;  %v1800_v42 = vadd.f32 %v6107_v44, %v1556_v34  ;;  %v7607_v34 = vld [vmem:[#allocation28_spill] sm:$0xff] }
 0x17d   : > { %v913_v14 = vsel %vm850_vm0, %v7600_v10, %v912_v20  ;;  %v1723_v62 = vrot.slane %v1605_v38, 2  ;;  %v1929_v61 = vmul.f32 %v4820_v16, %v7597_v58  ;;  %v7604_v7 = vrot.slane %v7603_v43, 1 }
 0x17e   : > { %v987_v54 = vadd.f32 %v913_v14, %v7602_v49  ;;  %v1846_v30 = vmul.f32 %v4870_v51, %v7597_v58  ;;  %v2173_v0 = vmul.f32 %v5674_v18, %v7597_v58  ;;  %v792_v27 = vmul.f32 %v4805_v4, %v733_v63  ;;  %v7610_v14 = vld [vmem:[#allocation9_spill] sm:$0xff] }
 0x17f   : > { %v1480_v15 = vsel %vm850_vm0, %v7604_v7, %v1479_v19  ;;  %v7606_v41 = vrot.slane %v7605_v33, 2  ;;  %v7609_v17 = vrot.slane %v7608_v50, 2  ;;  %v2045_v46 = vrot.slane %v1929_v61, 1 }
 0x180   : > { %v1557_v40 = vadd.f32 %v1480_v15, %v7607_v34  ;;  %v2289_v21 = vrot.slane %v2173_v0, 2  ;;  %v914_v1 = vrot.slane %v792_v27, 1  ;;  %v1037_v38 = vmul.f32 %v4808_v5, %v733_v63  ;;  %v7612_v15 = vld [vmem:[#allocation16_spill] sm:$0xff]  ;;  %v7614_v27 = vld [vmem:[#allocation27_spill] sm:$0xff] }
 0x181   : > { %v1158_v44 = vsel %vm1095_vm1, %v7606_v41, %v1157_v36  ;;  %v1724_v13 = vsel %vm1095_vm1, %v7609_v17, %v1723_v62  ;;  %v1362_v39 = vmul.f32 %v4801_v2, %v733_v63  ;;  %v7611_v8 = vrot.slane %v7610_v14, 1 }
 0x182   : > { %v1232_v58 = vadd.f32 %v1158_v44, %v987_v54  ;;  %v1801_v10 = vadd.f32 %v1724_v13, %v1557_v40  ;;  %v1606_v43 = vmul.f32 %v4803_v3, %v733_v63  ;;  %v7613_v33 = vrot.slane %v7612_v15, 2 }
 0x183   : > { %v2046_v49 = vsel %vm850_vm0, %v7611_v8, %v2045_v46  ;;  %v915_v61 = vsel %vm850_vm0, %v912_v20, %v914_v1  ;;  %v1159_v0 = vrot.slane %v1037_v38, 2  ;;  %v1481_v17 = vrot.slane %v1362_v39, 1  ;;  %v585_v39 = vpop.permute.xlu0 %584 }
 0x184   : > { %v2126_v7 = vadd.f32 %v2046_v49, %v1877_v6  ;;  %v2290_v41 = vsel %vm1095_vm1, %v7613_v33, %v2289_v21  ;;  %v1879_v34 = vadd.f32 %v7614_v27, %v1801_v10  ;;  %v988_v50 = vadd.f32 %v915_v61, %v631_v60  ;;  %v7615_v6 = vld [vmem:[#allocation23_spill] sm:$0xff]  ;;  %v6288_v61 = vpop.permute.xlu1 %589 }
 0x185   : > { %v1725_v54 = vrot.slane %v1606_v43, 2  ;;  %v1160_v40 = vsel %vm1095_vm1, %v1157_v36, %v1159_v0  ;;  %v1930_v13 = vmul.f32 %v4820_v16, %v733_v63  ;;  %v2174_v14 = vmul.f32 %v5674_v18, %v733_v63 }
 0x186   : > { %v2370_v44 = vadd.f32 %v2290_v41, %v2126_v7  ;;  %v1310_v8 = vadd.f32 %v7615_v6, %v1232_v58  ;;  %v1878_v49 = vadd.f32 %v1846_v30, %v1800_v42  ;;  %v1233_v15 = vadd.f32 %v1160_v40, %v988_v50  ;;  %v7618_v50 = vld [vmem:[#allocation5_spill] sm:$0xff] }
 0x187   : > { %v1482_v33 = vsel %vm850_vm0, %v1479_v19, %v1481_v17  ;;  %v2296_v20 = vrot.slane %v6191_v32, 2  ;;  %v2047_v38 = vrot.slane %v1930_v13, 1  ;;  %v2291_v60 = vrot.slane %v2174_v14, 2  ;;  %v7622_v14 = vld [vmem:[#allocation20_spill] sm:$0xff] }
 0x188   : > { %v1558_v1 = vadd.f32 %v1482_v33, %v1309_v29  ;;  %v6255_v10 = vmax.f32 %v6145_v9, %v2513_v28  ;;  %v1279_v36 = vmul.f32 %v4815_v12, %v5911_v31  ;;  %v2128_v63 = vadd.f32 %v6183_v25, %v1879_v34 }
 0x189   : > { %v1726_v58 = vsel %vm1095_vm1, %v1723_v62, %v1725_v54  ;;  %v1848_v42 = vmul.f32 %v4870_v51, %v5911_v31  ;;  %v6264_v19 = vadd.f32 %v6087_v23, %v2370_v44  ;;  %v2048_v29 = vsel %vm850_vm0, %v2045_v46, %v2047_v38  ;;  %v7619_v54 = vld [vmem:[#allocation11_spill] sm:$0xff] }
 0x18a   : > { %v1802_v32 = vadd.f32 %v1726_v58, %v1558_v1  ;;  %v1311_v30 = vadd.f32 %v1279_v36, %v1233_v15  ;;  %v2127_v43 = vadd.f32 %v2048_v29, %v1878_v49  ;;  %v1559_v9 = vadd.f32 %v6167_v57, %v1310_v8  ;;  %v7624_v58 = vld [vmem:[#allocation17_spill] sm:$0xff]  ;;  %v7626_v29 = vld [vmem:[#allocation18_spill] sm:$0xff] }
 0x18b   : > { %7616 = vst [vmem:[#allocation22_spill] sm:$0xff] %v6264_v19  ;;  %v6269_v28 = vmul.f32 %v4805_v4, %v585_v39  ;;  %v2053_v25 = vsel %vm850_vm0, %v2050_v56, %v2052_v48  ;;  %v2292_v62 = vsel %vm1095_vm1, %v2289_v21, %v2291_v60  ;;  %v6278_v7 = vmul.f32 %v4808_v5, %v585_v39  ;;  %v4570_v49 = vld [vmem:[%s7354_s3 + $0x40] sm:$0xff]  }
 0x18c   : > { %v1880_v31 = vadd.f32 %v1848_v42, %v1802_v32  ;;  %v2297_v46 = vsel %vm1095_vm1, %v2294_v53, %v2296_v20  ;;  %v6284_v57 = vadd.f32 %v6208_v55, %v2128_v63  ;;  %v2371_v41 = vadd.f32 %v2292_v62, %v2127_v43  ;;  %v6322_v20 = vpop.permute.xlu0 %594  ;;  %4402 = vmatprep.subr.bf16.mxu0 %v4570_v49 }
 0x18d   : > { %v1280_v59 = vmul.f32 %v4815_v12, %v585_v39  ;;  %v6291_v56 = vmul.f32 %v4813_v11, %v585_v39  ;;  %v6294_v48 = vmul.f32 %v4801_v2, %v585_v39  ;;  %v6297_v22 = vmul.f32 %v4803_v3, %v585_v39 }
 0x18e   : > { %7617 = vst [vmem:[#allocation19_spill] sm:$0xff] %v6284_v57  ;;  %v6300_v53 = vadd.f32 %v6176_v52, %v1311_v30  ;;  %v1803_v55 = vadd.f32 %v6172_v24, %v1559_v9  ;;  %v1849_v0 = vmul.f32 %v4870_v51, %v585_v39  ;;  %v2129_v27 = vadd.f32 %v2053_v25, %v1880_v31  ;;  %v7621_v24 = vld [vmem:[#allocation25_spill] sm:$0xff]  ;;  %v6338_v9 = vpop.permute.xlu1 %599  ;;  %v7628_v31 = vld [vmem:[#allocation24_spill] sm:$0xff] }
 0x18f   : > { %v2395_v17 = vadd.f32 %v6087_v23, %v7618_v50  ;;  %v2396_v44 = vadd.f32 %v6087_v23, %v7619_v54  ;;  %v6311_v40 = vadd.f32 %v6087_v23, %v2371_v41  ;;  %v6314_v52 = vadd.f32 %v1280_v59, %v6162_v47  ;;  %v7630_v59 = vld [vmem:[#allocation26_spill] sm:$0xff] }
 0x190   : > { %v2399_v13 = vadd.f32 %v6087_v23, %v7621_v24  ;;  %v2400_v6 = vadd.f32 %v6087_v23, %v7622_v14  ;;  %v1488_v8 = vrot.slane %v6294_v48, 1  ;;  %v6324_v1 = vadd.f32 %v1849_v0, %v1803_v55 }
 0x191   : > { %7620 = vst [vmem:[#allocation6_spill] sm:$0xff] %v6311_v40  ;;  %v2427_v15 = vmax.f32 %v2395_v17, 0.0  ;;  %v2428_v33 = vmax.f32 %v2396_v44, 0.0  ;;  %v6327_v38 = vmul.f32 %v4820_v16, %v585_v39  ;;  %v6329_v36 = vadd.f32 %v2297_v46, %v2129_v27 }
 0x192   : > { %v2431_v47 = vmax.f32 %v2399_v13, 0.0  ;;  %v2432_v60 = vmax.f32 %v2400_v6, 0.0  ;;  %v6332_v63 = vmul.f32 %v5674_v18, %v585_v39  ;;  %v7625_v42 = vmax.f32 %v7624_v58, 0.0 }
 0x193   : > { %7623 = vst [vmem:[#allocation29_spill] sm:$0xff] %v6329_v36  ;;  %v7627_v30 = vmax.f32 %v7626_v29, 0.0  ;;  %v7629_v62 = vmax.f32 %v7628_v31, 0.0  ;;  %v7631_v55 = vmax.f32 %v7630_v59, 0.0  ;;  %v6347_v39 = vmul.f32 %v4820_v16, %v6322_v20  ;;  %v748_v59 = vpop.permute.xlu1 %747 }
 0x194   : > { %v2455_v32 = vmax.f32 %v7625_v42, %v2427_v15  ;;  %v6351_v50 = vmul.f32 %v5674_v18, %v6322_v20  ;;  %v6355_v44 = vmul.f32 %v4801_v2, %v6338_v9  ;;  %v6361_v58 = vmul.f32 %v4820_v16, %v6338_v9 }
 0x195   : > { %v2456_v43 = vmax.f32 %v7627_v30, %v2428_v33  ;;  %v2457_v41 = vmax.f32 %v7629_v62, %v2431_v47  ;;  %v2458_v46 = vmax.f32 %v7631_v55, %v2432_v60  ;;  %v2059_v15 = vrot.slane %v6347_v39, 1 }
 0x196   : > { %v2478_v0 = vrot.slane %v2455_v32, 1  ;;  %v2303_v60 = vrot.slane %v6351_v50, 2  ;;  %v6366_v30 = vmul.f32 %v5674_v18, %v6338_v9  ;;  %v1371_v21 = vmul.f32 %v4801_v2, %v748_v59 }
 0x197   : > { %v2510_v27 = vrot.slane %v2456_v43, 1  ;;  %v2479_v17 = vrot.slane %v2457_v41, 1  ;;  %v2511_v54 = vrot.slane %v2458_v46, 1  ;;  %v2054_v49 = vrot.slane %v6327_v38, 1  ;;  %v6421_v38 = vld [vmem:[%s7352_s1 + $0x8] ss:$0 sm:$0xff] }
 0x198   : > { %v2494_v24 = vmax.f32 %v2455_v32, %v2478_v0  ;;  %v7415_v32 = vrot.slane %v6355_v44, 1 }
 0x199   : > { %v2526_v13 = vmax.f32 %v2456_v43, %v2510_v27  ;;  %v2495_v14 = vmax.f32 %v2457_v41, %v2479_v17  ;;  %v2527_v6 = vmax.f32 %v2458_v46, %v2511_v54 }
 0x19a   : > { %v2542_v33 = vrot.slane %v2494_v24, 1  ;;  %v2558_v47 = vrot.slane %v2494_v24, 2  ;;  %v2574_v43 = vrot.slane %v2494_v24, 3 }
 0x19b   : > { %v2543_v42 = vrot.slane %v2495_v14, 1  ;;  %v2559_v29 = vrot.slane %v2495_v14, 2  ;;  %v2575_v31 = vrot.slane %v2495_v14, 3  ;;  %v2598_v62 = vrot.slane %v2526_v13, 4 }
 0x19c   : > { %v2599_v41 = vrot.slane %v2527_v6, 4  ;;  %v2614_v55 = vrot.slane %v2526_v13, 5  ;;  %v2615_v46 = vrot.slane %v2527_v6, 5  ;;  %v2663_v39 = vsel %vm2661_vm2, %v2494_v24, %v2542_v33  ;;  %v4571_v24 = vld [vmem:[%s7354_s3] sm:$0xff]  }
 0x19d   : > { %v2664_v0 = vsel %vm2661_vm2, %v2495_v14, %v2543_v42  ;;  %v2630_v27 = vrot.slane %v2526_v13, 6  ;;  %v2631_v17 = vrot.slane %v2527_v6, 6  ;;  %v2672_v54 = vsel %vm2670_vm3, %v2663_v39, %v2558_v47  ;;  %4403 = vmatpush3.bf16.msra.mxu0 %v4571_v24 }
 0x19e   : > { %v2673_v25 = vsel %vm2670_vm3, %v2664_v0, %v2559_v29  ;;  %v2646_v26 = vrot.slane %v2526_v13, 7  ;;  %v2681_v18 = vsel %vm2679_vm4, %v2672_v54, %v2574_v43  ;;  %v2647_v14 = vrot.slane %v2527_v6, 7 }
 0x19f   : > { %v2682_v34 = vsel %vm2679_vm4, %v2673_v25, %v2575_v31  ;;  %v2690_v33 = vsel %vm2688_vm5, %v2681_v18, %v2598_v62  ;;  %v6384_v13 = vmul.f32 %v4805_v4, %v748_v59  ;;  %v6389_v29 = vmul.f32 %v4808_v5, %v748_v59 }
 0x1a0   : > { %v2691_v47 = vsel %vm2688_vm5, %v2682_v34, %v2599_v41  ;;  %v2699_v25 = vsel %vm2697_vm6, %v2690_v33, %v2614_v55  ;;  %v1496_v43 = vrot.slane %v1371_v21, 1  ;;  %v7417_v62 = vrot.slane %v6361_v58, 1 }
 0x1a1   : > { %7632 = vst [vmem:[#allocation10_spill] sm:$0xff] %v6384_v13  ;;  %v2700_v42 = vsel %vm2697_vm6, %v2691_v47, %v2615_v46  ;;  %7633 = vst [vmem:[#allocation15_spill] sm:$0xff] %v6389_v29  ;;  %v2707_v31 = vsel %vm1095_vm1, %v2699_v25, %v2630_v27  ;;  %v6395_v34 = vmul.f32 %v4803_v3, %v748_v59  ;;  %v7416_v46 = vrot.slane %v6366_v30, 2  ;;  %v743_v47 = vpop.permute.xlu0 %742 }
 0x1a2   : > { %v2708_v6 = vsel %vm1095_vm1, %v2700_v42, %v2631_v17  ;;  %v6398_v41 = vsel %vm850_vm0, %v2707_v31, %v2646_v26  ;;  %v1939_v21 = vmul.f32 %v4820_v16, %v748_v59  ;;  %v2298_v39 = vrot.slane %v6332_v63, 2 }
 0x1a3   : > { %7634 = vst [vmem:[#allocation8_spill] sm:$0xff] %v6395_v34  ;;  %7635 = vst [vmem:[#allocation28_spill] sm:$0xff] %v6398_v41  ;;  %v6401_v55 = vsel %vm850_vm0, %v2708_v6, %v2647_v14  ;;  %v1851_v27 = vmul.f32 %v4870_v51, %v6322_v20  ;;  %v6416_v54 = vsel %vm850_vm0, %v7415_v32, %v1496_v43  ;;  %v7637_v32 = vrot.slane %v6297_v22, 2 }
 0x1a4   : > { %7636 = vst [vmem:[#allocation7_spill] sm:$0xff] %v6401_v55  ;;  %v4395_v0 = vpack.c.bf16 %v6401_v55, %v6398_v41  ;;  %v2183_v63 = vmul.f32 %v6421_v38, %v748_v59  ;;  %v2061_v24 = vsel %vm850_vm0, %v2059_v15, %v7417_v62  ;;  %v1367_v14 = vmul.f32 %v4801_v2, %v6288_v61 }
 0x1a5   : > { %v1611_v33 = vmul.f32 %v4803_v3, %v6288_v61  ;;  %v2062_v59 = vrot.slane %v1939_v21, 1  ;;  %v6439_v25 = vsel %vm1095_vm1, %v2303_v60, %v7416_v46  ;;  %v635_v42 = vmul.f32 %v4813_v11, %v6288_v61 }
 0x1a6   : > { %2895 = vrot.lane.b32.xlu1 %v4395_v0, %s4647_s26  ;;  %2973 = vrot.lane.b32.xlu0 %v4395_v0, %s4648_s27  ;;  %v6445_v15 = vmul.f32 %v4805_v4, %v6288_v61  ;;  %v6449_v43 = vmul.f32 %v4808_v5, %v6288_v61  ;;  %v1281_v31 = vmul.f32 %v4815_v12, %v6288_v61  ;;  %v1489_v6 = vrot.slane %v1367_v14, 1 }
 0x1a7   : > { %v1733_v21 = vrot.slane %v1611_v33, 2  ;;  %v2306_v50 = vrot.slane %v2183_v63, 2  ;;  %v1935_v60 = vmul.f32 %v4820_v16, %v6288_v61  ;;  %v2179_v0 = vmul.f32 %v6421_v38, %v6288_v61 }
 0x1a8   : > { %v798_v17 = vmul.f32 %v4805_v4, %v743_v47  ;;  %v1490_v26 = vsel %vm850_vm0, %v1488_v8, %v1489_v6  ;;  %v1804_v18 = vadd.f32 %v6201_v45, %v6300_v53  ;;  %v1850_v14 = vmul.f32 %v4870_v51, %v6288_v61 }
 0x1a9   : > { %v1043_v63 = vmul.f32 %v4808_v5, %v743_v47  ;;  %v1561_v33 = vadd.f32 %v1490_v26, %v6314_v52  ;;  %v1734_v46 = vsel %vm1095_vm1, %v7637_v32, %v1733_v21  ;;  %v2055_v62 = vrot.slane %v1935_v60, 1 }
 0x1aa   : > { %v2299_v40 = vrot.slane %v2179_v0, 2  ;;  %v924_v19 = vrot.slane %v798_v17, 1  ;;  %v1368_v48 = vmul.f32 %v4801_v2, %v743_v47  ;;  %v1612_v8 = vmul.f32 %v4803_v3, %v743_v47 }
 0x1ab   : > { %v1936_v45 = vmul.f32 %v4820_v16, %v743_v47  ;;  %v922_v53 = vrot.slane %v6445_v15, 1  ;;  %v1313_v61 = vadd.f32 %v1281_v31, %v6188_v37  ;;  %v1805_v36 = vadd.f32 %v1734_v46, %v1561_v33 }
 0x1ac   : > { %v2056_v52 = vsel %vm850_vm0, %v2054_v49, %v2055_v62  ;;  %v1882_v26 = vadd.f32 %v1850_v14, %v1804_v18  ;;  %v1169_v32 = vrot.slane %v1043_v63, 2  ;;  %v1491_v60 = vrot.slane %v1368_v48, 1 }
 0x1ad   : > { %v2130_v22 = vadd.f32 %v2056_v52, %v6324_v1  ;;  %v2300_v17 = vsel %vm1095_vm1, %v2298_v39, %v2299_v40  ;;  %v1735_v0 = vrot.slane %v1612_v8, 2  ;;  %v2057_v57 = vrot.slane %v1936_v45, 1 }
 0x1ae   : > { %v2180_v29 = vmul.f32 %v6421_v38, %v743_v47  ;;  %v1883_v13 = vadd.f32 %v1851_v27, %v1805_v36  ;;  %v925_v37 = vsel %vm850_vm0, %v922_v53, %v924_v19  ;;  %v1492_v46 = vsel %vm850_vm0, %v1489_v6, %v1491_v60 }
 0x1af   : > { %v2374_v34 = vadd.f32 %v2300_v17, %v2130_v22  ;;  %v7638_v49 = vrot.slane %v6361_v58, 1  ;;  %v1167_v18 = vrot.slane %v6449_v43, 2  ;;  %v1562_v31 = vadd.f32 %v1492_v46, %v1313_v61 }
 0x1b0   : > { %v2058_v39 = vsel %vm850_vm0, %v2055_v62, %v2057_v57  ;;  %v7639_v14 = vrot.slane %v6366_v30, 2  ;;  %v1736_v27 = vsel %vm1095_vm1, %v1733_v21, %v1735_v0  ;;  %v2301_v19 = vrot.slane %v2180_v29, 2  ;;  %v7640_v30 = vld [vmem:[#allocation14_spill] sm:$0xff] }
 0x1b1   : > { %v2063_v1 = vsel %vm850_vm0, %v7638_v49, %v2062_v59  ;;  %v2131_v47 = vadd.f32 %v2058_v39, %v1882_v26  ;;  %v1852_v6 = vmul.f32 %v4870_v51, %v6338_v9  ;;  %v992_v58 = vadd.f32 %v925_v37, %v635_v42  ;;  %v7642_v26 = vld [vmem:[#allocation13_spill] sm:$0xff] }
 0x1b2   : > { %v6491_v36 = vsel %vm1095_vm1, %v7639_v14, %v2306_v50  ;;  %v1170_v59 = vsel %vm1095_vm1, %v1167_v18, %v1169_v32  ;;  %v1806_v63 = vadd.f32 %v1736_v27, %v1562_v31  ;;  %v2132_v33 = vadd.f32 %v2061_v24, %v1883_v13  ;;  %v7641_v50 = vld [vmem:[#allocation21_spill] sm:$0xff]  ;;  %v7643_v32 = vld [vmem:[#allocation12_spill] sm:$0xff] }
 0x1b3   : > { %v6500_v57 = vadd.f32 %v6087_v23, %v2374_v34  ;;  %v2541_v62 = vrot.slane %v7640_v30, 1  ;;  %v2544_v48 = vrot.slane %v7641_v50, 1  ;;  %v2302_v21 = vsel %vm1095_vm1, %v2299_v40, %v2301_v19 }
 0x1b4   : > { %v2545_v29 = vrot.slane %v6147_v35, 1  ;;  %v2557_v8 = vrot.slane %v7640_v30, 2  ;;  %v2560_v42 = vrot.slane %v7641_v50, 2  ;;  %v1884_v45 = vadd.f32 %v1852_v6, %v1806_v63 }
 0x1b5   : > { %v2375_v61 = vadd.f32 %v2302_v21, %v2131_v47  ;;  %v2561_v52 = vrot.slane %v6147_v35, 2  ;;  %v2573_v13 = vrot.slane %v7640_v30, 3  ;;  %v2576_v34 = vrot.slane %v7641_v50, 3 }
 0x1b6   : > { %v2577_v24 = vrot.slane %v6147_v35, 3  ;;  %v2597_v22 = vrot.slane %v7642_v26, 4  ;;  %v2600_v40 = vrot.slane %v7643_v32, 4  ;;  %v2601_v60 = vrot.slane %v6255_v10, 4 }
 0x1b7   : > { %v2613_v17 = vrot.slane %v7642_v26, 5  ;;  %v2616_v0 = vrot.slane %v7643_v32, 5  ;;  %v2617_v37 = vrot.slane %v6255_v10, 5  ;;  %v2629_v46 = vrot.slane %v7642_v26, 6 }
 0x1b8   : > { %v2632_v49 = vrot.slane %v7643_v32, 6  ;;  %v2633_v31 = vrot.slane %v6255_v10, 6  ;;  %v2645_v39 = vrot.slane %v7642_v26, 7  ;;  %v2648_v14 = vrot.slane %v7643_v32, 7 }
 0x1b9   : > { %v2662_v27 = vsel %vm2661_vm2, %v7640_v30, %v2541_v62  ;;  %v2665_v47 = vsel %vm2661_vm2, %v7641_v50, %v2544_v48  ;;  %v2666_v19 = vsel %vm2661_vm2, %v6147_v35, %v2545_v29  ;;  %v6534_v26 = vpack.c.bf16 %v6398_v41, %v6398_v41 }
 0x1ba   : > { %v2671_v6 = vsel %vm2670_vm3, %v2662_v27, %v2557_v8  ;;  %v2674_v63 = vsel %vm2670_vm3, %v2665_v47, %v2560_v42  ;;  %v2675_v21 = vsel %vm2670_vm3, %v2666_v19, %v2561_v52  ;;  %v2649_v32 = vrot.slane %v6255_v10, 7 }
 0x1bb   : > { %v2680_v30 = vsel %vm2679_vm4, %v2671_v6, %v2573_v13  ;;  %v2683_v62 = vsel %vm2679_vm4, %v2674_v63, %v2576_v34  ;;  %v2684_v50 = vsel %vm2679_vm4, %v2675_v21, %v2577_v24  ;;  %v6545_v8 = vpack.c.bf16 %v6401_v55, %v6401_v55 }
 0x1bc   : > { %v2689_v35 = vsel %vm2688_vm5, %v2680_v30, %v2597_v22  ;;  %v2692_v48 = vsel %vm2688_vm5, %v2683_v62, %v2600_v40  ;;  %v2693_v29 = vsel %vm2688_vm5, %v2684_v50, %v2601_v60  ;;  %v7430_v13 = vshll.u32 %v6534_v26, 16 }
 0x1bd   : > { %v2698_v42 = vsel %vm2697_vm6, %v2689_v35, %v2613_v17  ;;  %v2701_v10 = vsel %vm2697_vm6, %v2692_v48, %v2616_v0  ;;  %v2702_v52 = vsel %vm2697_vm6, %v2693_v29, %v2617_v37  ;;  %v2133_v34 = vadd.f32 %v2063_v1, %v1884_v45 }
 0x1be   : > { %v2706_v24 = vsel %vm1095_vm1, %v2698_v42, %v2629_v46  ;;  %v2709_v22 = vsel %vm1095_vm1, %v2701_v10, %v2632_v49  ;;  %v2710_v40 = vsel %vm1095_vm1, %v2702_v52, %v2633_v31  ;;  %v6555_v60 = vadd.f32 %v6087_v23, %v2375_v61 }
 0x1bf   : > { %v6558_v27 = vsel %vm850_vm0, %v2706_v24, %v2645_v39  ;;  %v6561_v17 = vsel %vm850_vm0, %v2709_v22, %v2648_v14  ;;  %v6564_v0 = vsel %vm850_vm0, %v2710_v40, %v2649_v32  ;;  %v7429_v61 = vshll.u32 %v6545_v8, 16 }
 0x1c0   : > { %7644 = vst [vmem:[#allocation9_spill] sm:$0xff] %v6558_v27  ;;  %v6568_v1 = vpack.c.bf16 %v6558_v27, %v6558_v27  ;;  %v6572_v45 = vpack.c.bf16 %v6561_v17, %v6561_v17  ;;  %v6576_v23 = vpack.c.bf16 %v6564_v0, %v6564_v0  ;;  %v6580_v37 = vadd.f32 %v6439_v25, %v2132_v33 }
 0x1c1   : > { %v6582_v46 = vadd.f32 %v1170_v59, %v992_v58  ;;  %v2745_v49 = vshrl.u32 %v6534_v26, 16  ;;  %v2809_v31 = vrot.slane %v7430_v13, 1  ;;  %v2752_v47 = vshrl.u32 %v6545_v8, 16  ;;  %v1248_v58 = vpop.permute.xlu1 %1247 }
 0x1c2   : > { %v7425_v14 = vshll.u32 %v6568_v1, 16  ;;  %v7424_v19 = vshll.u32 %v6572_v45, 16  ;;  %v7423_v6 = vshll.u32 %v6576_v23, 16  ;;  %v2811_v25 = vrot.slane %v7429_v61, 1 }
 0x1c3   : > { %v2810_v63 = vor.u32 %v2809_v31, %v2745_v49  ;;  %v6595_v59 = vadd.f32 %v6491_v36, %v2133_v34  ;;  %v7427_v21 = vshrl.u32 %v6572_v45, 16  ;;  %v7426_v30 = vshrl.u32 %v6576_v23, 16 }
 0x1c4   : > { %v2813_v32 = vrot.slane %v7424_v19, 1  ;;  %v2807_v62 = vrot.slane %v7425_v14, 1  ;;  %v2812_v50 = vor.u32 %v2811_v25, %v2752_v47  ;;  %v2815_v35 = vrot.slane %v7423_v6, 1  ;;  %v1243_v6 = vpop.permute.xlu0 %1242 }
 0x1c5   : > { %v6606_v48 = vrot.slane %v2745_v49, 7  ;;  %v6616_v42 = vmul.f32 %v4801_v2, %v1248_v58  ;;  %v7428_v10 = vshrl.u32 %v6568_v1, 16  ;;  %v6623_v34 = vsel %vm6611_vm8, %v2810_v63, 0 }
 0x1c6   : > { %v2814_v36 = vor.u32 %v2813_v32, %v7427_v21  ;;  %v2816_v52 = vor.u32 %v2815_v35, %v7426_v30  ;;  %v6627_v24 = vsel %vm6611_vm8, %v2812_v50, 0  ;;  %v6629_v22 = vrot.slane %v2752_v47, 7 }
 0x1c7   : > { %7647 = vst [vmem:[#allocation16_spill] sm:$0xff] %v6627_v24  ;;  %v6633_v40 = vcombine.low %v6623_v34, %v6627_v24  ;;  %v6636_v49 = vmul.f32 %v4803_v3, %v1248_v58  ;;  %v6639_v31 = vmul.f32 %v4820_v16, %v1248_v58  ;;  %v2808_v63 = vor.u32 %v2807_v62, %v7428_v10  ;;  %v1814_v62 = vpop.permute.xlu1 %1813 }
 0x1c8   : > { %v6645_v25 = vsel %vm6611_vm8, %v2814_v36, 0  ;;  %v6649_v47 = vsel %vm6611_vm8, %v2816_v52, 0  ;;  %v6652_v32 = vmul.f32 %v4815_v12, %v1248_v58  ;;  %v6662_v35 = vmul.f32 %v4870_v51, %v1248_v58 }
 0x1c9   : > { %7648 = vst [vmem:[#allocation27_spill] sm:$0xff] %v6633_v40  ;;  %v6656_v50 = vcombine.low %v6645_v25, %v6649_v47  ;;  %4510 = vmatprep.mubr.msk.bf16.mxu1 %vm2982_vm9, %v6633_v40  ;;  %v7650_v36 = vrot.slane %v6269_v28, 1  ;;  %v6670_v19 = vmul.f32 %v6421_v38, %v1248_v58  ;;  %v1369_v30 = vmul.f32 %v4801_v2, %v6322_v20 }
 0x1ca   : > { %v1613_v21 = vmul.f32 %v4803_v3, %v6322_v20  ;;  %v7651_v28 = vrot.slane %v6278_v7, 2  ;;  %v6686_v58 = vmul.f32 %v4803_v3, %v6338_v9  ;;  %v1372_v61 = vmul.f32 %v4801_v2, %v1243_v6 }
 0x1cb   : > { %7649 = vst [vmem:[#allocation23_spill] sm:$0xff] %v6656_v50  ;;  %v923_v52 = vsel %vm850_vm0, %v7650_v36, %v922_v53  ;;  %4511 = vmatmul.mubr.msk.bf16.vlgmr.msra.gmra.mrb[0].mxu1 %vm2982_vm9, %v6656_v50  ;;  %v1282_v36 = vmul.f32 %v4815_v12, %v6322_v20  ;;  %v1616_v7 = vmul.f32 %v4803_v3, %v1243_v6 }
 0x1cc   : > { %v991_v14 = vadd.f32 %v923_v52, %v6291_v56  ;;  %v1168_v53 = vsel %vm1095_vm1, %v7651_v28, %v1167_v18  ;;  %v1493_v52 = vrot.slane %v1369_v30, 1  ;;  %v1737_v13 = vrot.slane %v1613_v21, 2 }
 0x1cd   : > { %v1738_v43 = vrot.slane %v6686_v58, 2  ;;  %v1940_v18 = vmul.f32 %v4820_v16, %v1243_v6  ;;  %v2184_v39 = vmul.f32 %v6421_v38, %v1243_v6  ;;  %v1853_v21 = vmul.f32 %v4870_v51, %v1243_v6 }
 0x1ce   : > { %v1236_v56 = vadd.f32 %v1168_v53, %v991_v14  ;;  %v800_v14 = vmul.f32 %v4805_v4, %v6338_v9  ;;  %v7652_v53 = vrot.slane %v6355_v44, 1  ;;  %v6706_v58 = vmul.f32 %v4808_v5, %v6338_v9 }
 0x1cf   : > { %v2064_v10 = vrot.slane %v1940_v18, 1  ;;  %v1498_v28 = vrot.slane %v1372_v61, 1  ;;  %v1739_v55 = vsel %vm1095_vm1, %v1737_v13, %v1738_v43  ;;  %v1742_v41 = vrot.slane %v1616_v7, 2 }
 0x1d0   : > { %v1314_v33 = vadd.f32 %v1282_v36, %v1236_v56  ;;  %v1495_v30 = vsel %vm850_vm0, %v1493_v52, %v7652_v53  ;;  %v927_v56 = vrot.slane %v800_v14, 1  ;;  %v799_v36 = vmul.f32 %v4805_v4, %v6322_v20 }
 0x1d1   : > { %v2308_v44 = vrot.slane %v2184_v39, 2  ;;  %v1044_v52 = vmul.f32 %v4808_v5, %v6322_v20  ;;  %v6715_v18 = vsel %vm6611_vm8, %v2808_v63, 0  ;;  %v1172_v27 = vrot.slane %v6706_v58, 2 }
 0x1d2   : > { %v1563_v15 = vadd.f32 %v1495_v30, %v1314_v33  ;;  %v926_v33 = vrot.slane %v799_v36, 1  ;;  %v1284_v61 = vmul.f32 %v4815_v12, %v1243_v6  ;;  %v7653_v14 = vrot.slane %v6639_v31, 1  ;;  %v1321_v30 = vpop.permute.xlu0 %1320  ;;  %v4572_v6 = vld [vmem:[%s7354_s3 + $0x48] sm:$0xff]  }
 0x1d3   : > { %v636_v13 = vmul.f32 %v4813_v11, %v6322_v20  ;;  %v1171_v39 = vrot.slane %v1044_v52, 2  ;;  %v7654_v63 = vrot.slane %v6616_v42, 1  ;;  %v4573_v20 = vld [vmem:[%s7354_s3 + $0x8] sm:$0xff]   ;;  %v6746_v52 = vmul.f32 %v4820_v16, %v1814_v62  ;;  %4404 = vmatprep.subr.bf16.mxu0 %v4572_v6 }
 0x1d4   : > { %v1807_v53 = vadd.f32 %v1739_v55, %v1563_v15  ;;  %v2066_v4 = vsel %vm850_vm0, %v2064_v10, %v7653_v14  ;;  %v928_v5 = vsel %vm850_vm0, %v926_v33, %v927_v56  ;;  %v1283_v15 = vmul.f32 %v4815_v12, %v6338_v9  ;;  %v4574_v10 = vld [vmem:[%s7354_s3 + $0x50] sm:$0xff]   ;;  %4405 = vmatpush3.bf16.msra.mxu0 %v4573_v20 }
 0x1d5   : > { %v1500_v55 = vsel %vm850_vm0, %v1498_v28, %v7654_v63  ;;  %v993_v58 = vadd.f32 %v928_v5, %v636_v13  ;;  %v7656_v12 = vrot.slane %v6636_v49, 2  ;;  %v1173_v14 = vsel %vm1095_vm1, %v1171_v39, %v1172_v27  ;;  %4406 = vmatprep.subr.bf16.mxu0 %v4574_v10  ;;  %v7657_v20 = vld [vmem:[#allocation8_spill] sm:$0xff] }
 0x1d6   : > { %v1885_v7 = vadd.f32 %v1853_v21, %v1807_v53  ;;  %v7655_v21 = vrot.slane %v6670_v19, 2  ;;  %v1892_v53 = vpop.permute.xlu1 %1891  ;;  %v6750_v63 = vmul.f32 %v6421_v38, %v1814_v62  ;;  %v1315_v50 = vadd.f32 %v1283_v15, %v6582_v46 }
 0x1d7   : > { %v1744_v36 = vsel %vm1095_vm1, %v1742_v41, %v7656_v12  ;;  %v1238_v40 = vadd.f32 %v1173_v14, %v993_v58  ;;  %v1942_v13 = vmul.f32 %v4820_v16, %v1321_v30  ;;  %v2186_v41 = vmul.f32 %v6421_v38, %v1321_v30 }
 0x1d8   : > { %v2310_v28 = vsel %vm1095_vm1, %v2308_v44, %v7655_v21  ;;  %v2134_v33 = vadd.f32 %v2066_v4, %v1885_v7  ;;  %v1374_v44 = vmul.f32 %v4801_v2, %v1321_v30  ;;  %v4575_v4 = vld [vmem:[%s7354_s3 + $0x10] sm:$0xff]   ;;  %v1855_v39 = vmul.f32 %v4870_v51, %v1814_v62  ;;  %v4576_v2 = vld [vmem:[%s7354_s3 + $0x58] sm:$0xff]  }
 0x1d9   : > { %v1564_v7 = vadd.f32 %v6416_v54, %v1315_v50  ;;  %v1618_v5 = vmul.f32 %v4803_v3, %v1321_v30  ;;  %v6763_v46 = vmul.f32 %v4820_v16, %v1892_v53  ;;  %v1316_v15 = vadd.f32 %v1284_v61, %v1238_v40  ;;  %v7659_v30 = vld [vmem:[#allocation10_spill] sm:$0xff]  ;;  %4407 = vmatpush3.bf16.msra.mxu0 %v4575_v4 }
 0x1da   : > { %v2069_v6 = vrot.slane %v6746_v52, 1  ;;  %v7658_v21 = vrot.slane %v7657_v20, 2  ;;  %v2067_v62 = vrot.slane %v1942_v13, 1  ;;  %v2313_v54 = vrot.slane %v6750_v63, 2  ;;  %v1819_v52 = vpop.permute.xlu0 %1818  ;;  %4408 = vmatprep.subr.bf16.mxu0 %v4576_v2  ;;  %v7666_v20 = vld [vmem:[#allocation19_spill] sm:$0xff] }
 0x1db   : > { %v637_v3 = vmul.f32 %v4813_v11, %v6338_v9  ;;  %v7660_v10 = vrot.slane %v7659_v30, 1  ;;  %v2378_v14 = vadd.f32 %v2310_v28, %v2134_v33  ;;  %v1565_v24 = vadd.f32 %v1500_v55, %v1316_v15  ;;  %v4578_v9 = vld [vmem:[%s7354_s3 + $0x60] sm:$0xff]  }
 0x1dc   : > { %v1741_v58 = vsel %vm1095_vm1, %v1738_v43, %v7658_v21  ;;  %v1501_v40 = vrot.slane %v1374_v44, 1  ;;  %v2311_v61 = vrot.slane %v2186_v41, 2  ;;  %v4577_v43 = vld [vmem:[%s7354_s3 + $0x18] sm:$0xff]   ;;  %v1745_v13 = vrot.slane %v1618_v5, 2  ;;  %v7662_v44 = vld [vmem:[#allocation15_spill] sm:$0xff] }
 0x1dd   : > { %v1808_v50 = vadd.f32 %v1741_v58, %v1564_v7  ;;  %v930_v12 = vsel %vm850_vm0, %v927_v56, %v7660_v10  ;;  %v2072_v7 = vrot.slane %v6763_v46, 1  ;;  %v1809_v56 = vadd.f32 %v1744_v36, %v1565_v24  ;;  %4409 = vmatpush3.bf16.msra.mxu0 %v4577_v43 }
 0x1de   : > { %v994_v11 = vadd.f32 %v930_v12, %v637_v3  ;;  %v7661_v55 = vrot.slane %v6639_v31, 1  ;;  %v2189_v33 = vmul.f32 %v6421_v38, %v1892_v53  ;;  %v7663_v41 = vrot.slane %v7662_v44, 2  ;;  %4410 = vmatprep.subr.bf16.mxu0 %v4578_v9 }
 0x1df   : > { %v1886_v63 = vadd.f32 %v6662_v35, %v1808_v50  ;;  %v1944_v46 = vmul.f32 %v4820_v16, %v1819_v52  ;;  %v2188_v2 = vmul.f32 %v6421_v38, %v1819_v52  ;;  %v7664_v15 = vrot.slane %v6670_v19, 2  ;;  %v4579_v16 = vld [vmem:[%s7354_s3 + $0x20] sm:$0xff]  }
 0x1e0   : > { %v2068_v28 = vsel %vm850_vm0, %v7661_v55, %v2067_v62  ;;  %v1175_v35 = vsel %vm1095_vm1, %v1172_v27, %v7663_v41  ;;  %v7665_v31 = vrot.slane %v6616_v42, 1  ;;  %v4396_v53 = vpack.c.bf16 %v6564_v0, %v6561_v17  ;;  %v4637_v27 = vld [vmem:[%s7353_s2] ss:$0 sm:$0xff]  ;;  %v7667_v62 = vld [vmem:[#allocation29_spill] sm:$0xff] }
 0x1e1   : > { %v2135_v4 = vadd.f32 %v2068_v28, %v1886_v63  ;;  %v1239_v5 = vadd.f32 %v1175_v35, %v994_v11  ;;  %v2312_v24 = vsel %vm1095_vm1, %v7664_v15, %v2311_v61  ;;  %v2411_v21 = vadd.f32 %v4637_v27, %v7666_v20  ;;  %4411 = vmatpush3.bf16.msra.mxu0 %v4579_v16 }
 0x1e2   : > { %v1502_v36 = vsel %vm850_vm0, %v7665_v31, %v1501_v40  ;;  %v1887_v38 = vadd.f32 %v1855_v39, %v1809_v56  ;;  %v2070_v42 = vrot.slane %v1944_v46, 1  ;;  %v2314_v58 = vrot.slane %v2188_v2, 2  ;;  %2897 = vrot.lane.b32.xlu1 %v4396_v53, %s4647_s26  ;;  %2975 = vrot.lane.b32.xlu0 %v4396_v53, %s4648_s27 }
 0x1e3   : > { %v1317_v19 = vadd.f32 %v6652_v32, %v1239_v5  ;;  %v2412_v50 = vadd.f32 %v4637_v27, %v7667_v62  ;;  %v2415_v3 = vadd.f32 %v4637_v27, %v6580_v37  ;;  %v2416_v30 = vadd.f32 %v4637_v27, %v6595_v59 }
 0x1e4   : > { %v2443_v10 = vmax.f32 %v2411_v21, 0.0  ;;  %v2379_v12 = vadd.f32 %v2312_v24, %v2135_v4  ;;  %v2316_v40 = vrot.slane %v2189_v33, 2  ;;  %v2071_v39 = vsel %vm850_vm0, %v2069_v6, %v2070_v42  ;;  %v7669_v33 = vld [vmem:[#allocation22_spill] sm:$0xff] }
 0x1e5   : > { %v1566_v61 = vadd.f32 %v1502_v36, %v1317_v19  ;;  %v7668_v32 = vrot.slane %v6636_v49, 2  ;;  %v1856_v63 = vmul.f32 %v4870_v51, %v1819_v52  ;;  %v2136_v11 = vadd.f32 %v2071_v39, %v1887_v38  ;;  %v7671_v6 = vld [vmem:[#allocation6_spill] sm:$0xff] }
 0x1e6   : > { %v2444_v9 = vmax.f32 %v2412_v50, 0.0  ;;  %v2315_v37 = vsel %vm1095_vm1, %v2313_v54, %v2314_v58  ;;  %v2447_v55 = vmax.f32 %v2415_v3, 0.0  ;;  %v2448_v59 = vmax.f32 %v2416_v30, 0.0 }
 0x1e7   : > { %v1746_v43 = vsel %vm1095_vm1, %v7668_v32, %v1745_v13  ;;  %v2417_v28 = vadd.f32 %v4637_v27, %v2378_v14  ;;  %v2380_v44 = vadd.f32 %v2315_v37, %v2136_v11  ;;  %v7670_v41 = vmax.f32 %v7669_v33, 0.0 }
 0x1e8   : > { %v1810_v56 = vadd.f32 %v1746_v43, %v1566_v61  ;;  %v7672_v4 = vmax.f32 %v7671_v6, 0.0  ;;  %v2418_v5 = vadd.f32 %v4637_v27, %v2379_v12  ;;  %v7673_v51 = vmax.f32 %v6500_v57, 0.0 }
 0x1e9   : > { %v2463_v35 = vmax.f32 %v7670_v41, %v2443_v10  ;;  %v7674_v46 = vmax.f32 %v6555_v60, 0.0  ;;  %v2073_v54 = vsel %vm850_vm0, %v2070_v42, %v2072_v7  ;;  %v2419_v15 = vadd.f32 %v4637_v27, %v2380_v44 }
 0x1ea   : > { %v2464_v49 = vmax.f32 %v7672_v4, %v2444_v9  ;;  %v1888_v13 = vadd.f32 %v1856_v63, %v1810_v56  ;;  %v2465_v52 = vmax.f32 %v7673_v51, %v2447_v55  ;;  %v7675_v20 = vmov 0  }
 0x1eb   : > { %v2466_v2 = vmax.f32 %v7674_v46, %v2448_v59  ;;  %v2482_v24 = vrot.slane %v2463_v35, 1  ;;  %v6832_v21 = vrot.slane %v7675_v20, 1  ;;  %v2449_v16 = vmax.f32 %v2417_v28, 0.0 }
 0x1ec   : > { %v2514_v14 = vrot.slane %v2464_v49, 1  ;;  %v2137_v31 = vadd.f32 %v2073_v54, %v1888_v13  ;;  %v2483_v36 = vrot.slane %v2465_v52, 1  ;;  %v2317_v38 = vsel %vm1095_vm1, %v2314_v58, %v2316_v40  ;;  %v4580_v58 = vld [vmem:[%s7354_s3 + $0x68] sm:$0xff]  }
 0x1ed   : > { %v2515_v53 = vrot.slane %v2466_v2, 1  ;;  %v2451_v19 = vmax.f32 %v2419_v15, 0.0  ;;  %v2498_v57 = vmax.f32 %v2463_v35, %v2482_v24  ;;  %v4311_v7 = vcombine.low %v6715_v18, %v6623_v34  ;;  %v4581_v40 = vld [vmem:[%s7354_s3 + $0x28] sm:$0xff]   ;;  %4412 = vmatprep.subr.bf16.mxu0 %v4580_v58 }
 0x1ee   : > { %v2381_v62 = vadd.f32 %v2317_v38, %v2137_v31  ;;  %v2499_v50 = vmax.f32 %v2465_v52, %v2483_v36  ;;  %v2530_v60 = vmax.f32 %v2464_v49, %v2514_v14  ;;  %v2450_v42 = vmax.f32 %v2418_v5, 0.0  ;;  %4413 = vmatpush3.bf16.msra.mxu0 %v4581_v40  ;;  %v4582_v49 = vld [vmem:[%s7354_s3 + $0x70] sm:$0xff]  }
 0x1ef   : > { %v2531_v3 = vmax.f32 %v2466_v2, %v2515_v53  ;;  %v2467_v30 = vmax.f32 %v2449_v16, %v2451_v19  ;;  %v2546_v10 = vrot.slane %v2498_v57, 1  ;;  %v2562_v39 = vrot.slane %v2498_v57, 2  ;;  %v4583_v5 = vld [vmem:[%s7354_s3 + $0x30] sm:$0xff]   ;;  %4414 = vmatprep.subr.bf16.mxu0 %v4582_v49 }
 0x1f0   : > { %v2420_v12 = vadd.f32 %v4637_v27, %v2381_v62  ;;  %v2547_v61 = vrot.slane %v2499_v50, 1  ;;  %v6840_v32 = vsel %vm6611_vm8, %v6832_v21, 0  ;;  %v2563_v63 = vrot.slane %v2499_v50, 2  ;;  %v4584_v62 = vld [vmem:[%s7354_s3 + $0x78] sm:$0xff]  }
 0x1f1   : > { %v2484_v43 = vrot.slane %v2467_v30, 1  ;;  %v2578_v11 = vrot.slane %v2498_v57, 3  ;;  %v2579_v9 = vrot.slane %v2499_v50, 3  ;;  %v2602_v56 = vrot.slane %v2530_v60, 4 }
 0x1f2   : > { %v2452_v27 = vmax.f32 %v2420_v12, 0.0  ;;  %v2603_v37 = vrot.slane %v2531_v3, 4  ;;  %v2618_v55 = vrot.slane %v2530_v60, 5  ;;  %v2619_v28 = vrot.slane %v2531_v3, 5  ;;  %4415 = vmatpush3.bf16.msra.mxu0 %v4583_v5 }
 0x1f3   : > { %v2500_v59 = vmax.f32 %v2467_v30, %v2484_v43  ;;  %v2634_v44 = vrot.slane %v2530_v60, 6  ;;  %v2667_v33 = vsel %vm2661_vm2, %v2498_v57, %v2546_v10  ;;  %v2635_v35 = vrot.slane %v2531_v3, 6  ;;  %4416 = vmatprep.subr.bf16.mxu0 %v4584_v62 }
 0x1f4   : > { %v2468_v41 = vmax.f32 %v2450_v42, %v2452_v27  ;;  %v2668_v6 = vsel %vm2661_vm2, %v2499_v50, %v2547_v61  ;;  %v2676_v4 = vsel %vm2670_vm3, %v2667_v33, %v2562_v39  ;;  %v2650_v52 = vrot.slane %v2530_v60, 7  ;;  %v4585_v50 = vld [vmem:[%s7354_s3 + $0x38] sm:$0xff]  }
 0x1f5   : > { %v2548_v13 = vrot.slane %v2500_v59, 1  ;;  %v2564_v51 = vrot.slane %v2500_v59, 2  ;;  %v2677_v46 = vsel %vm2670_vm3, %v2668_v6, %v2563_v63  ;;  %v2651_v54 = vrot.slane %v2531_v3, 7 }
 0x1f6   : > { %v2516_v2 = vrot.slane %v2468_v41, 1  ;;  %v2685_v15 = vsel %vm2679_vm4, %v2676_v4, %v2578_v11  ;;  %v2686_v24 = vsel %vm2679_vm4, %v2677_v46, %v2579_v9  ;;  %v2580_v14 = vrot.slane %v2500_v59, 3  ;;  %4417 = vmatpush3.bf16.msra.mxu0 %v4585_v50 }
 0x1f7   : > { %v2669_v31 = vsel %vm2661_vm2, %v2500_v59, %v2548_v13  ;;  %v2694_v36 = vsel %vm2688_vm5, %v2685_v15, %v2602_v56  ;;  %v2695_v53 = vsel %vm2688_vm5, %v2686_v24, %v2603_v37  ;;  %v4295_v42 = vcombine.low %v7675_v20, %v6568_v1 }
 0x1f8   : > { %v2532_v16 = vmax.f32 %v2468_v41, %v2516_v2  ;;  %v2678_v38 = vsel %vm2670_vm3, %v2669_v31, %v2564_v51  ;;  %v2703_v19 = vsel %vm2697_vm6, %v2694_v36, %v2618_v55  ;;  %v2704_v57 = vsel %vm2697_vm6, %v2695_v53, %v2619_v28 }
 0x1f9   : > { %v2711_v60 = vsel %vm1095_vm1, %v2703_v19, %v2634_v44  ;;  %v2712_v3 = vsel %vm1095_vm1, %v2704_v57, %v2635_v35  ;;  %v2687_v30 = vsel %vm2679_vm4, %v2678_v38, %v2580_v14  ;;  %v4299_v39 = vcombine.low %v6840_v32, %v6715_v18 }
 0x1fa   : > { %v2604_v10 = vrot.slane %v2532_v16, 4  ;;  %v6878_v12 = vsel %vm850_vm0, %v2711_v60, %v2650_v52  ;;  %v6881_v61 = vsel %vm850_vm0, %v2712_v3, %v2651_v54  ;;  %v7676_v63 = vshll.u32 %v6534_v26, 16 }
 0x1fb   : > { %v2727_v58 = vpack.c.bf16 %v6878_v12, %v6878_v12  ;;  %v4397_v40 = vpack.c.bf16 %v6881_v61, %v6878_v12  ;;  %v6891_v43 = vpack.c.bf16 %v6881_v61, %v6881_v61  ;;  %v2620_v9 = vrot.slane %v2532_v16, 5 }
 0x1fc   : > { %v2750_v11 = vor.u32 %v7676_v63, %v6606_v48  ;;  %v2696_v27 = vsel %vm2688_vm5, %v2687_v30, %v2604_v10  ;;  %v7677_v56 = vshll.u32 %v6545_v8, 16  ;;  %v2636_v44 = vrot.slane %v2532_v16, 6 }
 0x1fd   : > { %v2773_v55 = vshrl.u32 %v2727_v58, 16  ;;  %v2776_v59 = vshll.u32 %v2727_v58, 16  ;;  %2899 = vrot.lane.b32.xlu1 %v4397_v40, %s4647_s26  ;;  %v2783_v28 = vshll.u32 %v6891_v43, 16  ;;  %2977 = vrot.lane.b32.xlu0 %v4397_v40, %s4648_s27  ;;  %v2780_v26 = vshrl.u32 %v6891_v43, 16 }
 0x1fe   : > { %v2757_v37 = vor.u32 %v7677_v56, %v6629_v22  ;;  %v2652_v48 = vrot.slane %v2532_v16, 7  ;;  %v2705_v33 = vsel %vm2697_vm6, %v2696_v27, %v2620_v9  ;;  %v7678_v41 = vshrl.u32 %v6568_v1, 16 }
 0x1ff   : > { %v2713_v8 = vsel %vm1095_vm1, %v2705_v33, %v2636_v44  ;;  %v2817_v6 = vrot.slane %v2776_v59, 1  ;;  %v2819_v4 = vrot.slane %v2783_v28, 1  ;;  %v7681_v49 = vshrl.u32 %v6572_v45, 16 }
 0x200   : > { %v2740_v35 = vrot.slane %v7678_v41, 7  ;;  %v6916_v13 = vsel %vm850_vm0, %v2713_v8, %v2652_v48  ;;  %v2800_v51 = vsel %vm6909_vm11, 0, %v2757_v37  ;;  %v7682_v52 = vshrl.u32 %v6576_v23, 16 }
 0x201   : > { %v2761_v5 = vrot.slane %v7681_v49, 7  ;;  %v2775_v2 = vrot.slane %v2773_v55, 7  ;;  %2893 = vrot.lane.b32.xlu1 %v4295_v42, %s4647_s26  ;;  %2955 = vrot.lane.b32.xlu0 %v4311_v7, %s4647_s26  ;;  %v2729_v54 = vpack.c.bf16 %v6916_v13, %v6916_v13  ;;  %v2799_v15 = vsel %vm6909_vm11, 0, %v2750_v11 }
 0x202   : > { %v2768_v46 = vrot.slane %v7682_v52, 7  ;;  %v2818_v24 = vor.u32 %v2817_v6, %v2773_v55  ;;  %v2820_v14 = vor.u32 %v2819_v4, %v2780_v26  ;;  %v7683_v31 = vshll.u32 %v6568_v1, 16 }
 0x203   : > { %v7684_v53 = vshll.u32 %v6572_v45, 16  ;;  %v7685_v38 = vshll.u32 %v6576_v23, 16  ;;  %v2778_v57 = vor.u32 %v2776_v59, %v2775_v2  ;;  %v2844_v34 = vshll.u32 %v2729_v54, 16 }
 0x204   : > { %v2743_v36 = vor.u32 %v7683_v31, %v2740_v35  ;;  %v6937_v18 = vcombine.low %v2799_v15, %v2800_v51  ;;  %v2838_v7 = vsel %vm6611_vm8, %v2818_v24, 0  ;;  %v2839_v62 = vsel %vm6611_vm8, %v2820_v14, 0  ;;  %v7690_v24 = vld [vmem:[#allocation28_spill] sm:$0xff] }
 0x205   : > { %v2764_v16 = vor.u32 %v7684_v53, %v2761_v5  ;;  %v2771_v19 = vor.u32 %v7685_v38, %v2768_v46  ;;  %v2841_v50 = vshrl.u32 %v2729_v54, 16  ;;  %v4302_v60 = vcombine.low %v2838_v7, %v2839_v62  ;;  %2921 = vrot.lane.b32.xlu1 %v4299_v39, %s4649_s24  ;;  %v7686_v39 = vld [vmem:[#allocation16_spill] sm:$0xff] }
 0x206   : > { %v2849_v1 = vrot.slane %v2844_v34, 1  ;;  %2964 = vrot.lane.b32.xlu0 %v6937_v18, %s4649_s24  ;;  %v4313_v3 = vcombine.low %v6649_v47, %v2838_v7  ;;  %v2798_v42 = vsel %vm6909_vm11, 0, %v2743_v36  ;;  %v2803_v10 = vsel %vm6909_vm11, 0, %v2778_v57 }
 0x207   : > { %v2801_v45 = vsel %vm6909_vm11, 0, %v2764_v16  ;;  %v2802_v23 = vsel %vm6909_vm11, 0, %v2771_v19  ;;  %4514 = vmatprep.mubr.msk.bf16.mxu1 %vm2982_vm9, %v4302_v60  ;;  %v4312_v58 = vcombine.low %v7686_v39, %v6645_v25  ;;  %v4303_v43 = vcombine.low %v2798_v42, %v2799_v15  ;;  %v7687_v25 = vld [vmem:[#allocation27_spill] sm:$0xff]  ;;  %v7689_v15 = vld [vmem:[#allocation9_spill] sm:$0xff] }
 0x208   : > { %v6954_v30 = vcombine.low %v2801_v45, %v2802_v23  ;;  %v2850_v40 = vor.u32 %v2849_v1, %v2841_v50  ;;  %v4305_v63 = vcombine.low %v2802_v23, %v2803_v10  ;;  %v2782_v11 = vrot.slane %v2780_v26, 7 }
 0x209   : > { %2935 = vrot.lane.b32.xlu1 %v4303_v43, %s4648_s27  ;;  %v4401_v27 = vpack.c.bf16 %v6916_v13, %v6881_v61  ;;  %v4304_v29 = vcombine.low %v2800_v51, %v2801_v45  ;;  %v2843_v55 = vrot.slane %v2841_v50, 7  ;;  %v2733_v44 = vrot.slane %v7675_v20, 7  ;;  %v7691_v50 = vld [vmem:[#allocation7_spill] sm:$0xff] }
 0x20a   : > { %v2852_v47 = vsel %vm6611_vm8, %v2850_v40, 0  ;;  %2957 = vrot.lane.b32.xlu0 %v4312_v58, %s4647_s26  ;;  %v2785_v56 = vor.u32 %v2783_v28, %v2782_v11  ;;  %v7688_v28 = vld [vmem:[#allocation23_spill] sm:$0xff]  ;;  %v4316_v35 = vcombine.low %v2729_v54, %v7675_v20  ;;  %v4398_v14 = vpack.c.bf16 %v7690_v24, %v7689_v15 }
 0x20b   : > { %v4317_v9 = vcombine.low %v2852_v47, %v6840_v32  ;;  %v2846_v59 = vor.u32 %v2844_v34, %v2843_v55  ;;  %v4314_v26 = vcombine.low %v2839_v62, %v2852_v47  ;;  %v6989_v33 = vsel %vm6909_vm11, 0, %v2733_v44  ;;  %v4593_v15 = vld [vmem:[%s7356_s5 + $0x48] sm:$0xff]  }
 0x20c   : > { %v2804_v37 = vsel %vm6909_vm11, 0, %v2785_v56  ;;  %v4291_v53 = vcombine.low %v6989_v33, %v2798_v42  ;;  %v4590_v24 = vld [vmem:[%s7356_s5 + $0x88] sm:$0xff]   ;;  %vm4652_vm0 = vmmov 0  }
 0x20d   : > { %4515 = vmatmul.mubr.msk.bf16.gmra.mrb[4].mxu1 %vm2982_vm9, %v4317_v9  ;;  %2923 = vrot.lane.b32.xlu1 %v7687_v25, %s4649_s24  ;;  %v6976_v32 = vcombine.low %v2803_v10, %v2804_v37  ;;  %v2848_v48 = vsel %vm6909_vm11, 0, %v2846_v59 }
 0x20e   : > { %2966 = vrot.lane.b32.xlu0 %v6954_v30, %s4649_s24  ;;  %v4315_v41 = vcombine.low %v2848_v48, %v6989_v33  ;;  %v4306_v8 = vcombine.low %v2804_v37, %v2848_v48 }
 0x211   : > { %2937 = vrot.lane.b32.xlu1 %v4304_v29, %s4648_s27 }
 0x212   : > { %2959 = vrot.lane.b32.xlu0 %v4313_v3, %s4647_s26 }
 0x215   : > { %2925 = vrot.lane.b32.xlu1 %v7688_v28, %s4649_s24 }
 0x216   : > { %2968 = vrot.lane.b32.xlu0 %v6976_v32, %s4649_s24 }
 0x218   : > { %v2896_v6 = vpop.permute.xlu1 %2895  ;;  %v2974_v4 = vpop.permute.xlu0 %2973 }
 0x219   : > { %2939 = vrot.lane.b32.xlu1 %v4305_v63, %s4648_s27  ;;  %v2988_v10 = vsel %vm2982_vm9, %v6937_v18, %v2896_v6 }
 0x21a   : > { %2961 = vrot.lane.b32.xlu0 %v4314_v26, %s4647_s26 }
 0x21d   : > { %2927 = vrot.lane.b32.xlu1 %v4302_v60, %s4649_s24  ;;  %v4399_v60 = vpack.c.bf16 %v6561_v17, %v7691_v50  ;;  %v4400_v17 = vpack.c.bf16 %v6878_v12, %v6564_v0  ;;  %v4604_v50 = vld [vmem:[%s7356_s5 + $0xe8] sm:$0xff]  }
 0x21e   : > { %2970 = vrot.lane.b32.xlu0 %v4315_v41, %s4649_s24 }
 0x221   : > { %2941 = vrot.lane.b32.xlu1 %v4306_v8, %s4648_s27 }
 0x222   : > { %2979 = vrot.lane.b32.xlu0 %v4316_v35, %s4648_s27 }
 0x254   : > { %v2898_v49 = vpop.permute.xlu1 %2897  ;;  %v2976_v5 = vpop.permute.xlu0 %2975 }
 0x255   : > { %v2991_v18 = vsel %vm2982_vm9, %v6954_v30, %v2898_v49 }
 0x26f   : > { %v2900_v51 = vpop.permute.xlu1 %2899  ;;  %v2978_v52 = vpop.permute.xlu0 %2977 }
 0x270   : > { %v2994_v59 = vsel %vm2982_vm9, %v6976_v32, %v2900_v51  ;;  %v4587_v51 = vld [vmem:[%s7356_s5 + $0x80] sm:$0xff]  }
 0x273   : > { %v2894_v46 = vpop.permute.xlu1 %2893  ;;  %v2956_v2 = vpop.permute.xlu0 %2955 }
 0x274   : > { %v3019_v54 = vsel %vm2982_vm9, %v4398_v14, %v2956_v2  ;;  %v2985_v19 = vsel %vm2982_vm9, %v4291_v53, %v2894_v46  ;;  %v4589_v46 = vld [vmem:[%s7356_s5 + $0x40] sm:$0xff]   ;;  %v4592_v14 = vld [vmem:[%s7356_s5 + $0xd0] sm:$0xff]   ;;  %v4596_v53 = vld [vmem:[%s7356_s5 + $0xd8] sm:$0xff]  }
 0x275   : > { %v4591_v2 = vld [vmem:[%s7356_s5] sm:$0xff]   ;;  %4448 = vmatprep.subr.bf16.mxu1 %v4589_v46 }
 0x276   : > { %4449 = vmatpush3.bf16.msra.mxu1 %v4591_v2 }
 0x277   : > { %v2922_v31 = vpop.permute.xlu1 %2921  ;;  %4450 = vmatprep.subr.bf16.mxu1 %v4593_v15 }
 0x278   : > { %v2965_v36 = vpop.permute.xlu0 %2964  ;;  %v2997_v57 = vsel %vm2995_vm12, %v2985_v19, %v2922_v31  ;;  %v4597_v31 = vld [vmem:[%s7356_s5 + $0x50] sm:$0xff]   ;;  %v4598_v19 = vld [vmem:[%s7356_s5 + $0x98] sm:$0xff]  }
 0x279   : > { %v3030_v16 = vsel %vm2995_vm12, %v3019_v54, %v2965_v36  ;;  %v4595_v54 = vld [vmem:[%s7356_s5 + $0x8] sm:$0xff]   ;;  %v4594_v36 = vld [vmem:[%s7356_s5 + $0x90] sm:$0xff]  }
 0x27a   : > { %v3038_v38 = vsel %vm3004_vm13, %v3030_v16, %v2974_v4  ;;  %4451 = vmatpush3.bf16.msra.mxu1 %v4595_v54  ;;  %v4599_v16 = vld [vmem:[%s7356_s5 + $0x10] sm:$0xff]  }
 0x27b   : > { %3244 = vmatprep.mubr.bf16.mxu0 %v3038_v38  ;;  %v2936_v34 = vpop.permute.xlu1 %2935  ;;  %4452 = vmatprep.subr.bf16.mxu1 %v4597_v31  ;;  %v4601_v38 = vld [vmem:[%s7356_s5 + $0x58] sm:$0xff]  }
 0x27c   : > { %v2958_v7 = vpop.permute.xlu0 %2957  ;;  %v3006_v62 = vsel %vm3004_vm13, %v2997_v57, %v2936_v34  ;;  %v4600_v57 = vld [vmem:[%s7356_s5 + $0xe0] sm:$0xff]   ;;  %v4603_v34 = vld [vmem:[%s7356_s5 + $0x18] sm:$0xff]  }
 0x27d   : > { %3245 = vmatmul.mubr.bf16.vlgmr.msra.gmra.mrb[0].mxu0 %v3006_v62  ;;  %v3022_v1 = vsel %vm2982_vm9, %v4399_v60, %v2958_v7  ;;  %v4605_v7 = vld [vmem:[%s7356_s5 + $0x60] sm:$0xff]  }
 0x27e   : > { %4453 = vmatpush3.bf16.msra.mxu1 %v4599_v16  ;;  %v4602_v62 = vld [vmem:[%s7356_s5 + $0xa0] sm:$0xff]  }
 0x27f   : > { %v2924_v45 = vpop.permute.xlu1 %2923  ;;  %4454 = vmatprep.subr.bf16.mxu1 %v4601_v38  ;;  %v4607_v60 = vld [vmem:[%s7356_s5 + $0x20] sm:$0xff]  }
 0x280   : > { %v2967_v23 = vpop.permute.xlu0 %2966  ;;  %v2999_v39 = vsel %vm2995_vm12, %v2988_v10, %v2924_v45  ;;  %v4608_v45 = vld [vmem:[%s7356_s5 + $0xf0] sm:$0xff]  }
 0x281   : > { %v3032_v3 = vsel %vm2995_vm12, %v3022_v1, %v2967_v23  ;;  %v4606_v1 = vld [vmem:[%s7356_s5 + $0xa8] sm:$0xff]  }
 0x282   : > { %v3041_v42 = vsel %vm3004_vm13, %v3032_v3, %v2976_v5  ;;  %v4586_v5 = vld [vmem:[%s7356_s5 + $0xc0] sm:$0xff]   ;;  %4455 = vmatpush3.bf16.msra.mxu1 %v4603_v34 }
 0x283   : > { %3252 = vmatprep.mubr.bf16.mxu0 %v3041_v42  ;;  %v2938_v58 = vpop.permute.xlu1 %2937  ;;  %4470 = vmatprep.subr.bf16.mxu0 %v4586_v5  ;;  %v7118_v3 = vld [vmem:[%s7355_s4] ss:$0 sm:$0xff] }
 0x284   : > { %v2960_v40 = vpop.permute.xlu0 %2959  ;;  %v3009_v43 = vsel %vm3004_vm13, %v2999_v39, %v2938_v58  ;;  %4471 = vmatpush3.bf16.msra.mxu0 %v4587_v51  ;;  %4456 = vmatprep.subr.bf16.mxu1 %v4605_v7 }
 0x285   : > { %3253 = vmatmul.mubr.bf16.gmra.mrb[4].mxu0 %v3009_v43  ;;  %v3025_v63 = vsel %vm2982_vm9, %v4400_v17, %v2960_v40 }
 0x286   : > { %4457 = vmatpush3.bf16.msra.mxu1 %v4607_v60 }
 0x287   : > { %v2926_v11 = vpop.permute.xlu1 %2925 }
 0x288   : > { %v2969_v47 = vpop.permute.xlu0 %2968  ;;  %v3001_v25 = vsel %vm2995_vm12, %v2991_v18, %v2926_v11 }
 0x289   : > { %v3034_v9 = vsel %vm2995_vm12, %v3025_v63, %v2969_v47 }
 0x28a   : > { %v3044_v56 = vsel %vm3004_vm13, %v3034_v9, %v2978_v52  ;;  %v4588_v52 = vld [vmem:[%s7356_s5 + $0xc8] sm:$0xff]  }
 0x28b   : > { %3260 = vmatprep.mubr.bf16.mxu0 %v3044_v56  ;;  %v2940_v29 = vpop.permute.xlu1 %2939  ;;  %4472 = vmatprep.subr.bf16.mxu0 %v4588_v52 }
 0x28c   : > { %v2962_v37 = vpop.permute.xlu0 %2961  ;;  %v3012_v55 = vsel %vm3004_vm13, %v3001_v25, %v2940_v29  ;;  %4473 = vmatpush3.bf16.msra.mxu0 %v4590_v24 }
 0x28d   : > { %3261 = vmatmul.mubr.bf16.gmra.mrb[8].mxu0 %v3012_v55  ;;  %v3028_v28 = vsel %vm2982_vm9, %v4401_v27, %v2962_v37  ;;  %4474 = vmatprep.subr.bf16.mxu0 %v4592_v14 }
 0x28f   : > { %v2928_v0 = vpop.permute.xlu1 %2927 }
 0x290   : > { %v2971_v12 = vpop.permute.xlu0 %2970  ;;  %v3003_v30 = vsel %vm2995_vm12, %v2994_v59, %v2928_v0  ;;  %4475 = vmatpush3.bf16.msra.mxu0 %v4594_v36 }
 0x291   : > { %v3036_v44 = vsel %vm2995_vm12, %v3028_v28, %v2971_v12  ;;  %4476 = vmatprep.subr.bf16.mxu0 %v4596_v53 }
 0x293   : > { %v2942_v26 = vpop.permute.xlu1 %2941 }
 0x294   : > { %v2980_v48 = vpop.permute.xlu0 %2979  ;;  %v3015_v35 = vsel %vm3004_vm13, %v3003_v30, %v2942_v26  ;;  %4477 = vmatpush3.bf16.msra.mxu0 %v4598_v19 }
 0x295   : > { %v3047_v41 = vsel %vm3004_vm13, %v3036_v44, %v2980_v48  ;;  %4478 = vmatprep.subr.bf16.mxu0 %v4600_v57 }
 0x296   : > { %3268 = vmatprep.mubr.bf16.mxu0 %v3047_v41 }
 0x297   : > { %3269 = vmatmul.mubr.bf16.gmra.mrb[12].mxu0 %v3015_v35 }
 0x298   : > { %4479 = vmatpush3.bf16.msra.mxu0 %v4602_v62 }
 0x299   : > { %4480 = vmatprep.subr.bf16.mxu0 %v4604_v50 }
 0x29c   : > { %4481 = vmatpush3.bf16.msra.mxu0 %v4606_v1 }
 0x29d   : > { %4482 = vmatprep.subr.bf16.mxu0 %v4608_v45 }
 0x29e   : > { %v7034_v8 = vpop.f32.mrb[0].mxu1 }
 0x29f   : > { %v3311_v32 = vpop.f32.mrb[1].mxu1 }
 0x2a0   : > { %v7036_v6 = vpop.f32.mrb[2].mxu1 }
 0x2a1   : > { %v3314_v61 = vpop.f32.mrb[3].mxu1 }
 0x2e0   : > { %v7038_v13 = vpop.f32.mrb[4].mxu1 }
 0x2e1   : > { %v7040_v27 = vpop.f32.mrb[5].mxu1 }
 0x2e2   : > { %v7042_v4 = vpop.f32.mrb[6].mxu1 }
 0x2e3   : > { %v7044_v49 = vpop.f32.mrb[7].mxu1 }
 0x350   : > { %v4418_v23 = vpop.f32.mrb[0].mxu0 }
 0x351   : > { %v4419_v42 = vpop.f32.mrb[1].mxu0 }
 0x352   : > { %v4420_v10 = vadd.f32 %v4419_v42, %v4418_v23  ;;  %v4421_v39 = vpop.f32.mrb[2].mxu0 }
 0x353   : > { %v4422_v58 = vpop.f32.mrb[3].mxu0 }
 0x354   : > { %v3247_v40 = vadd.f32 %v4420_v10, %v7118_v3  ;;  %v4423_v43 = vadd.f32 %v4422_v58, %v4421_v39 }
 0x356   : > { %v3312_v17 = vadd.f32 %v3311_v32, %v3247_v40  ;;  %v3250_v63 = vadd.f32 %v4423_v43, %v7118_v3 }
 0x358   : > { %v3315_v11 = vadd.f32 %v3314_v61, %v3250_v63  ;;  %v4424_v47 = vpop.f32.mrb[4].mxu0  ;;  %v3342_v56 = vmax.f32 %v3312_v17, 0.0 }
 0x359   : > { %v4425_v9 = vpop.f32.mrb[5].mxu0 }
 0x35a   : > { %v3343_v18 = vmax.f32 %v3315_v11, 0.0  ;;  %v4426_v25 = vadd.f32 %v4425_v9, %v4424_v47  ;;  %v4427_v29 = vpop.f32.mrb[6].mxu0 }
 0x35b   : > { %v4428_v37 = vpop.f32.mrb[7].mxu0 }
 0x35c   : > { %v3350_v55 = vmax.f32 %v3342_v56, %v3343_v18  ;;  %v3255_v0 = vadd.f32 %v4426_v25, %v7118_v3  ;;  %v4429_v12 = vadd.f32 %v4428_v37, %v4427_v29  ;;  %v4650_v18 = vmov 1983009808  }
 0x35d   : > { %v3476_v25 = vunpack.c.l.s4 %v4650_v18 }
 0x35e   : > { %v3358_v59 = vrot.slane %v3350_v55, 1  ;;  %v3320_v28 = vadd.f32 %v7034_v8, %v3255_v0  ;;  %v3258_v30 = vadd.f32 %v4429_v12, %v7118_v3 }
 0x360   : > { %v3366_v44 = vmax.f32 %v3350_v55, %v3358_v59  ;;  %v3323_v26 = vadd.f32 %v7036_v6, %v3258_v30  ;;  %v4430_v48 = vpop.f32.mrb[8].mxu0  ;;  %v3344_v61 = vmax.f32 %v3320_v28, 0.0 }
 0x361   : > { %v4431_v41 = vpop.f32.mrb[9].mxu0 }
 0x362   : > { %v3374_v35 = vrot.slane %v3366_v44, 1  ;;  %v3382_v32 = vrot.slane %v3366_v44, 2  ;;  %v3345_v5 = vmax.f32 %v3323_v26, 0.0  ;;  %v4433_v51 = vpop.f32.mrb[10].mxu0  ;;  %v4432_v52 = vadd.f32 %v4431_v41, %v4430_v48 }
 0x363   : > { %v4434_v46 = vpop.f32.mrb[11].mxu0  ;;  %v3390_v2 = vrot.slane %v3366_v44, 3  ;;  %v3477_v48 = vunpack.c.0.s8 %v3476_v25  ;;  %v4615_v25 = vld [vmem:[%s7356_s5 + $0x30] sm:$0xff]  }
 0x364   : > { %v3398_v15 = vsel %vm2661_vm2, %v3366_v44, %v3374_v35  ;;  %v3351_v24 = vmax.f32 %v3344_v61, %v3345_v5  ;;  %v4435_v14 = vadd.f32 %v4434_v46, %v4433_v51  ;;  %v3263_v54 = vadd.f32 %v4432_v52, %v7118_v3 }
 0x365   : > { %v3402_v8 = vsel %vm2670_vm3, %v3398_v15, %v3382_v32 }
 0x366   : > { %v3359_v6 = vrot.slane %v3351_v24, 1  ;;  %v3266_v31 = vadd.f32 %v4435_v14, %v7118_v3  ;;  %v7131_v36 = vsel %vm2679_vm4, %v3402_v8, %v3390_v2  ;;  %v3328_v53 = vadd.f32 %v7040_v27, %v3263_v54  ;;  %v7694_v14 = vld [vmem:[#allocation3_spill] sm:$0xff] }
 0x367   : > { %v3410_v16 = vpack.c.bf16 %v7131_v36, %v7131_v36  ;;  %v7170_v8 = vsub.s32 %v3477_v48, %v7694_v14 }
 0x368   : > { %v3367_v38 = vmax.f32 %v3351_v24, %v3359_v6  ;;  %v3331_v19 = vadd.f32 %v7044_v49, %v3266_v31  ;;  %v3346_v50 = vmax.f32 %v3328_v53, 0.0  ;;  %v7145_v49 = vsel %vm7138_vm15, %v6832_v21, 0 }
 0x369   : > { %v3418_v7 = vshll.u32 %v3410_v16, 16  ;;  %v3415_v42 = vshrl.u32 %v3410_v16, 16  ;;  %v3493_v54 = vcombine.low %v7675_v20, %v3410_v16 }
 0x36a   : > { %v4436_v34 = vpop.f32.mrb[12].mxu0  ;;  %v3375_v62 = vrot.slane %v3367_v38, 1  ;;  %v3347_v60 = vmax.f32 %v3331_v19, 0.0  ;;  %v3383_v45 = vrot.slane %v3367_v38, 2  ;;  %v3391_v40 = vrot.slane %v3367_v38, 3 }
 0x36b   : > { %v4437_v1 = vpop.f32.mrb[13].mxu0  ;;  %v3441_v10 = vrot.slane %v3418_v7, 1  ;;  %v3417_v59 = vrot.slane %v3415_v42, 7 }
 0x36c   : > { %v4438_v23 = vadd.f32 %v4437_v1, %v4436_v34  ;;  %v4439_v27 = vpop.f32.mrb[14].mxu0  ;;  %v3352_v39 = vmax.f32 %v3346_v50, %v3347_v60  ;;  %v3399_v43 = vsel %vm2661_vm2, %v3367_v38, %v3375_v62 }
 0x36d   : > { %v4440_v58 = vpop.f32.mrb[15].mxu0  ;;  %v3403_v11 = vsel %vm2670_vm3, %v3399_v43, %v3383_v45  ;;  %v3442_v47 = vor.u32 %v3441_v10, %v3415_v42  ;;  %v3420_v52 = vor.u32 %v3418_v7, %v3417_v59  ;;  %v3501_v45 = vrot.slane %v3493_v54, %v7170_v8  ;;  %v4611_v42 = vld [vmem:[%s7356_s5 + $0x28] sm:$0xff]  }
 0x36e   : > { %v3271_v17 = vadd.f32 %v4438_v23, %v7118_v3  ;;  %v4441_v63 = vadd.f32 %v4440_v58, %v4439_v27  ;;  %v3360_v9 = vrot.slane %v3352_v39, 1  ;;  %v7151_v56 = vsel %vm2679_vm4, %v3403_v11, %v3391_v40  ;;  %v4609_v23 = vld [vmem:[%s7356_s5 + $0x68] sm:$0xff]   ;;  %v4610_v27 = vld [vmem:[%s7356_s5 + $0xb0] sm:$0xff]   ;;  %v4614_v11 = vld [vmem:[%s7356_s5 + $0xb8] sm:$0xff]  }
 0x36f   : > { %v3411_v37 = vpack.c.bf16 %v7151_v56, %v7151_v56  ;;  %v7159_v55 = vsel %vm7138_vm15, %v3442_v47, 0  ;;  %v4342_v28 = vpack.c.bf16 %v7151_v56, %v7131_v36  ;;  %v7182_v34 = vsel %vm6909_vm11, 0, %v3420_v52  ;;  %4458 = vmatprep.subr.bf16.mxu1 %v4609_v23  ;;  %4483 = vmatpush3.bf16.msra.mxu0 %v4610_v27 }
 0x370   : > { %v3336_v21 = vadd.f32 %v7038_v13, %v3271_v17  ;;  %v3274_v29 = vadd.f32 %v4441_v63, %v7118_v3  ;;  %v3368_v0 = vmax.f32 %v3352_v39, %v3360_v9  ;;  %v3516_v12 = vcombine.low %v7145_v49, %v7159_v55  ;;  %v4612_v17 = vld [vmem:[%s7356_s5 + $0xf8] sm:$0xff]   ;;  %v4613_v63 = vld [vmem:[%s7356_s5 + $0x70] sm:$0xff]   ;;  %4459 = vmatpush3.bf16.msra.mxu1 %v4611_v42 }
 0x371   : > { %v3425_v13 = vshll.u32 %v3411_v37, 16  ;;  %v3422_v44 = vshrl.u32 %v3411_v37, 16  ;;  %4484 = vmatprep.subr.bf16.mxu0 %v4612_v17  ;;  %4460 = vmatprep.subr.bf16.mxu1 %v4613_v63  ;;  %v3473_v59 = vcombine.low %v6989_v33, %v7182_v34  ;;  %v3562_v48 = vrot.slane %v4342_v28, %v7170_v8  ;;  %v4620_v63 = vld [vmem:[%s7356_s5 + $0x110] sm:$0xff]  }
 0x372   : > { %v3339_v30 = vadd.f32 %v7042_v4, %v3274_v29  ;;  %v3376_v3 = vrot.slane %v3368_v0, 1  ;;  %v3384_v26 = vrot.slane %v3368_v0, 2  ;;  %v3348_v41 = vmax.f32 %v3336_v21, 0.0 }
 0x373   : > { %v3443_v32 = vrot.slane %v3425_v13, 1  ;;  %v3424_v61 = vrot.slane %v3422_v44, 7  ;;  %v3392_v5 = vrot.slane %v3368_v0, 3  ;;  %4485 = vmatpush3.bf16.msra.mxu0 %v4614_v11  ;;  %v4621_v11 = vld [vmem:[%s7356_s5 + $0x118] sm:$0xff]  }
 0x374   : > { %v3349_v35 = vmax.f32 %v3339_v30, 0.0  ;;  %v3400_v51 = vsel %vm2661_vm2, %v3368_v0, %v3376_v3  ;;  %4461 = vmatpush3.bf16.msra.mxu1 %v4615_v25  ;;  %v4625_v25 = vld [vmem:[%s7358_s7 + $0x18] sm:$0xff]  }
 0x375   : > { %v3404_v2 = vsel %vm2670_vm3, %v3400_v51, %v3384_v26  ;;  %v3444_v15 = vor.u32 %v3443_v32, %v3422_v44  ;;  %v3427_v24 = vor.u32 %v3425_v13, %v3424_v61  ;;  %v4616_v51 = vld [vmem:[%s7356_s5 + $0x78] sm:$0xff]  }
 0x376   : > { %v3353_v46 = vmax.f32 %v3348_v41, %v3349_v35  ;;  %v3408_v4 = vsel %vm2679_vm4, %v3404_v2, %v3392_v5  ;;  %v3524_v41 = vrot.slane %v3516_v12, %v7170_v8  ;;  %v4651_v2 = vmov 0.0   ;;  %4462 = vmatprep.subr.bf16.mxu1 %v4616_v51 }
 0x377   : > { %v3412_v31 = vpack.c.bf16 %v3408_v4, %v3408_v4  ;;  %v4341_v53 = vpack.c.bf16 %v3408_v4, %v7151_v56  ;;  %v7176_v38 = vsel %vm7138_vm15, %v3444_v15, 0  ;;  %v7186_v7 = vsel %vm6909_vm11, 0, %v3427_v24  ;;  %4518 = vmatprep.subr.bf16.mxu0 %v4651_v2  ;;  %v4618_v15 = vld [vmem:[%s7356_s5 + $0x38] sm:$0xff]  }
 0x378   : > { %v3361_v6 = vrot.slane %v3353_v46, 1  ;;  %v3572_v19 = vcombine.low %v7159_v55, %v7176_v38  ;;  %v3534_v1 = vcombine.low %v7182_v34, %v7186_v7  ;;  %v3481_v56 = vrot.slane %v3473_v59, %v7170_v8  ;;  %4463 = vmatpush3.bf16.msra.mxu1 %v4618_v15 }
 0x379   : > { %v3432_v62 = vshll.u32 %v3412_v31, 16  ;;  %v3508_v50 = vrot.slane %v4341_v53, %v7170_v8  ;;  %v3429_v60 = vshrl.u32 %v3412_v31, 16  ;;  %4530 = vmatprep.subr.bf16.mxu1 %v4651_v2 }
 0x37a   : > { %v3369_v16 = vmax.f32 %v3353_v46, %v3361_v6  ;;  %v3542_v57 = vrot.slane %v3534_v1, %v7170_v8 }
 0x37b   : > { %v3445_v58 = vrot.slane %v3432_v62, 1  ;;  %v3431_v40 = vrot.slane %v3429_v60, 7  ;;  %v7201_v43 = vcombine.low %v3501_v45, %v3508_v50 }
 0x37c   : > { %v3377_v10 = vrot.slane %v3369_v16, 1  ;;  %v3385_v39 = vrot.slane %v3369_v16, 2  ;;  %v3393_v47 = vrot.slane %v3369_v16, 3 }
 0x37d   : > { %v3446_v18 = vor.u32 %v3445_v58, %v3429_v60  ;;  %v3434_v29 = vor.u32 %v3432_v62, %v3431_v40  ;;  %v4619_v40 = vld [vmem:[%s7356_s5 + $0x108] sm:$0xff]  }
 0x37e   : > { %v3401_v9 = vsel %vm2661_vm2, %v3369_v16, %v3377_v10 }
 0x37f   : > { %v3405_v21 = vsel %vm2670_vm3, %v3401_v9, %v3385_v39  ;;  %v3456_v0 = vsel %vm7138_vm15, %v3446_v18, 0  ;;  %v3440_v44 = vsel %vm6909_vm11, 0, %v3434_v29  ;;  %v4623_v9 = vld [vmem:[%s7358_s7 + $0x8] sm:$0xff]   ;;  %v4624_v18 = vld [vmem:[%s7358_s7 + $0x10] sm:$0xff]  }
 0x380   : > { %v3409_v37 = vsel %vm2679_vm4, %v3405_v21, %v3393_v47  ;;  %v3517_v13 = vcombine.low %v7176_v38, %v3456_v0  ;;  %v3474_v26 = vcombine.low %v7186_v7, %v3440_v44  ;;  %v4622_v47 = vld [vmem:[%s7358_s7] sm:$0xff]   ;;  %v4627_v29 = vld [vmem:[%s7358_s7 + $0x28] sm:$0xff]  }
 0x381   : > { %v3413_v30 = vpack.c.bf16 %v3409_v37, %v3409_v37  ;;  %v4343_v3 = vpack.c.bf16 %v3409_v37, %v3408_v4  ;;  %v4626_v21 = vld [vmem:[%s7358_s7 + $0x20] sm:$0xff]   ;;  %v4628_v37 = vld [vmem:[%s7358_s7 + $0x30] sm:$0xff]  }
 0x382   : > { %v3488_v52 = vrot.slane %v3474_v26, %v7170_v8  ;;  %v7241_v36 = vrot.slane %v3517_v13, %v7170_v8 }
 0x383   : > { %v3600_v35 = vcombine.low %v3413_v30, %v7675_v20  ;;  %v3458_v32 = vshrl.u32 %v3413_v30, 16  ;;  %v3461_v61 = vshll.u32 %v3413_v30, 16  ;;  %v3569_v5 = vrot.slane %v4343_v3, %v7170_v8 }
 0x384   : > { %v3532_v24 = vcombine.low %v3524_v41, %v7241_v36  ;;  %v3489_v4 = vcombine.low %v3481_v56, %v3488_v52  ;;  %v4344_v41 = vld [vmem:[%s7357_s6] ss:$0 sm:$0xff] }
 0x385   : > { %v3607_v28 = vrot.slane %v3600_v35, %v7170_v8  ;;  %v3466_v12 = vrot.slane %v3461_v61, 1  ;;  %v3460_v46 = vrot.slane %v3458_v32, 7  ;;  %v3570_v20 = vcombine.low %v3562_v48, %v3569_v5 }
 0x387   : > { %v3608_v14 = vcombine.low %v3508_v50, %v3607_v28  ;;  %v3467_v54 = vor.u32 %v3466_v12, %v3458_v32  ;;  %v3463_v6 = vor.u32 %v3461_v61, %v3460_v46  ;;  %v3580_v50 = vrot.slane %v3572_v19, %v7170_v8  ;;  %v4617_v19 = vld [vmem:[%s7356_s5 + $0x100] sm:$0xff]  }
 0x389   : > { %3609 = vrot.lane.b32.xlu0 %v3608_v14, %s4649_s24  ;;  %v3469_v31 = vsel %vm7138_vm15, %v3467_v54, 0  ;;  %v3465_v53 = vsel %vm6909_vm11, 0, %v3463_v6 }
 0x38a   : > { %v3573_v16 = vcombine.low %v3456_v0, %v3469_v31  ;;  %v3611_v62 = vcombine.low %v3469_v31, %v7145_v49  ;;  %v3535_v60 = vcombine.low %v3440_v44, %v3465_v53  ;;  %v3591_v45 = vcombine.low %v3465_v53, %v6989_v33  ;;  %v4629_v0 = vld [vmem:[%s7358_s7 + $0x38] sm:$0xff]  }
 0x38c   : > { %v3587_v23 = vrot.slane %v3573_v16, %v7170_v8  ;;  %v3618_v22 = vrot.slane %v3611_v62, %v7170_v8  ;;  %v3549_v27 = vrot.slane %v3535_v60, %v7170_v8  ;;  %v3598_v49 = vrot.slane %v3591_v45, %v7170_v8  ;;  %v7695_v45 = vld [vmem:[#allocation4_spill] sm:$0xff] }
 0x38e   : > { %v3588_v42 = vcombine.low %v3580_v50, %v3587_v23  ;;  %v3550_v33 = vcombine.low %v3542_v57, %v3549_v27  ;;  %v3599_v10 = vcombine.low %v3488_v52, %v3598_v49  ;;  %v3619_v39 = vcombine.low %v7241_v36, %v3618_v22 }
 0x390   : > { %3589 = vrot.lane.b32.xlu1 %v3588_v42, %s4649_s24  ;;  %3551 = vrot.lane.b32.xlu0 %v3550_v33, %s4649_s24 }
 0x394   : > { %3510 = vrot.lane.b32.xlu1 %v7201_v43, %s4649_s24 }
 0x3fb   : > { %v3610_v55 = vpop.permute.xlu0 %3609 }
 0x3fc   : > { %v3634_v38 = vsel %vm2995_vm12, %v3599_v10, %v3610_v55 }
 0x3fd   : > { %4007 = vmatprep.mubr.bf16.mxu0 %v3634_v38 }
 0x402   : > { %v3590_v34 = vpop.permute.xlu1 %3589  ;;  %v3552_v7 = vpop.permute.xlu0 %3551 }
 0x403   : > { %v3630_v1 = vsel %vm2995_vm12, %v3570_v20, %v3590_v34  ;;  %v3626_v58 = vsel %vm2995_vm12, %v3532_v24, %v3552_v7 }
 0x404   : > { %3966 = vmatprep.mubr.bf16.mxu1 %v3626_v58  ;;  %4008 = vmatmul.mubr.bf16.vlgmr.msra.gmra.mrb[16].mxu0 %v3630_v1  ;;  %v4127_v58 = vld [vmem:[%s7359_s8] sm:$0x1] }
 0x405   : > { %4519 = vmatpush3.bf16.msra.mxu0 %v4617_v19  ;;  %4526 = vmatprep.mubr.msk.bf16.mxu0 %vm4652_vm0, %v4651_v2 }
 0x406   : > { %v3511_v43 = vpop.permute.xlu1 %3510  ;;  %4520 = vmatprep.subr.bf16.mxu0 %v4651_v2 }
 0x407   : > { %v3622_v17 = vsel %vm2995_vm12, %v3489_v4, %v3511_v43 }
 0x408   : > { %3967 = vmatmul.mubr.bf16.vlgmr.msra.gmra.mrb[8].mxu1 %v3622_v17 }
 0x409   : > { %4521 = vmatpush3.bf16.msra.mxu0 %v4619_v40  ;;  %4546 = vmatprep.mubr.msk.bf16.mxu1 %vm4652_vm0, %v4651_v2 }
 0x40a   : > { %4522 = vmatprep.subr.bf16.mxu0 %v4651_v2  ;;  %4531 = vmatpush3.bf16.msra.mxu1 %v4622_v47 }
 0x40b   : > { %4532 = vmatprep.subr.bf16.mxu1 %v4651_v2 }
 0x40d   : > { %4523 = vmatpush3.bf16.msra.mxu0 %v4620_v63 }
 0x40e   : > { %4524 = vmatprep.subr.bf16.mxu0 %v4651_v2  ;;  %4533 = vmatpush3.bf16.msra.mxu1 %v4623_v9 }
 0x40f   : > { %4534 = vmatprep.subr.bf16.mxu1 %v4651_v2 }
 0x411   : > { %4525 = vmatpush3.bf16.msra.mxu0 %v4621_v11 }
 0x412   : > { %4535 = vmatpush3.bf16.msra.mxu1 %v4624_v18 }
 0x413   : > { %4536 = vmatprep.subr.bf16.mxu1 %v4651_v2 }
 0x414   : > { %4527 = vmatmul.mubr.msk.bf16.vlgmr.msra.gmra.mrb[20].mxu0 %vm2995_vm12, %v3619_v39 }
 0x416   : > { %4537 = vmatpush3.bf16.msra.mxu1 %v4625_v25  ;;  %v4222_v25 = vld [vmem:[#allocation2] sm:$0x1] }
 0x417   : > { %4538 = vmatprep.subr.bf16.mxu1 %v4651_v2 }
 0x41a   : > { %4539 = vmatpush3.bf16.msra.mxu1 %v4626_v21 }
 0x41b   : > { %4540 = vmatprep.subr.bf16.mxu1 %v4651_v2 }
 0x41e   : > { %4541 = vmatpush3.bf16.msra.mxu1 %v4627_v29 }
 0x41f   : > { %4542 = vmatprep.subr.bf16.mxu1 %v4651_v2 }
 0x422   : > { %4543 = vmatpush3.bf16.msra.mxu1 %v4628_v37 }
 0x423   : > { %4544 = vmatprep.subr.bf16.mxu1 %v4651_v2 }
 0x426   : > { %4545 = vmatpush3.bf16.msra.mxu1 %v4629_v0 }
 0x4d7   : > { %v4486_v59 = vpop.f32.mrb[16].mxu0 }
 0x4d8   : > { %v4487_v30 = vpop.f32.mrb[17].mxu0 }
 0x4d9   : > { %v4488_v13 = vadd.f32 %v4487_v30, %v4486_v59  ;;  %v4489_v44 = vpop.f32.mrb[18].mxu0 }
 0x4da   : > { %v4490_v3 = vpop.f32.mrb[19].mxu0 }
 0x4db   : > { %v4491_v26 = vadd.f32 %v4490_v3, %v4489_v44  ;;  %v4464_v48 = vpop.f32.mrb[8].mxu1 }
 0x4dc   : > { %v4465_v35 = vpop.f32.mrb[9].mxu1 }
 0x4dd   : > { %v4466_v32 = vadd.f32 %v4465_v35, %v4464_v48  ;;  %v4467_v61 = vpop.f32.mrb[10].mxu1 }
 0x4de   : > { %v4468_v5 = vpop.f32.mrb[11].mxu1 }
 0x4df   : > { %v3969_v51 = vadd.f32 %v4466_v32, %v4344_v41  ;;  %v4469_v52 = vadd.f32 %v4468_v5, %v4467_v61 }
 0x4e1   : > { %v3972_v36 = vadd.f32 %v4469_v52, %v4344_v41  ;;  %v4010_v56 = vadd.f32 %v4488_v13, %v3969_v51 }
 0x4e3   : > { %v4013_v28 = vadd.f32 %v4491_v26, %v3972_v36 }
 0x4e7   : > { %v4050_v12 = vpop.f32.mrb[20].mxu0 }
 0x4e8   : > { %v4051_v46 = vadd.f32 %v4050_v12, %v4010_v56  ;;  %v4528_v20 = vpop.f32.mrb[21].mxu0 }
 0x4e9   : > { %v4053_v2 = vpop.f32.mrb[22].mxu0 }
 0x4ea   : > { %v4057_v15 = vmax.f32 %v4051_v46, 0.0  ;;  %v4054_v24 = vadd.f32 %v4053_v2, %v4013_v28  ;;  %v4529_v4 = vpop.f32.mrb[23].mxu0 }
 0x4ec   : > { %v4061_v14 = vcombine.high %v4057_v15, %v4057_v15  ;;  %v4058_v54 = vmax.f32 %v4054_v24, 0.0 }
 0x4ee   : > { %v4065_v6 = vmax.f32 %v4057_v15, %v4061_v14  ;;  %v4062_v31 = vcombine.high %v4058_v54, %v4058_v54 }
 0x4f0   : > { %v4382_v53 = vrot.slane %v4065_v6, 9  ;;  %v4066_v16 = vmax.f32 %v4058_v54, %v4062_v31 }
 0x4f2   : > { %v4075_v62 = vmax.f32 %v4065_v6, %v4382_v53  ;;  %v4383_v60 = vrot.slane %v4066_v16, 9 }
 0x4f4   : > { %v4082_v50 = vrot.slane %v4075_v62, %v7695_v45  ;;  %v4076_v57 = vmax.f32 %v4066_v16, %v4383_v60 }
 0x4f6   : > { %v4086_v23 = vrot.slane %v4076_v57, %v7695_v45  ;;  %v4089_v22 = vsel %vm2661_vm2, %v4075_v62, %v4082_v50 }
 0x4f8   : > { %v4090_v27 = vsel %vm2661_vm2, %v4076_v57, %v4086_v23 }
 0x4f9   : > { %v4093_v49 = vcombine.low %v4089_v22, %v4090_v27 }
 0x4fb   : > { %v4100_v42 = vrot.slane %v4093_v49, %v7170_v8  ;;  %v4217_v8 = vld [vmem:[%s7360_s9] sm:$0x1] }
 0x4fd   : > { %v4102_v33 = vsel %vm2688_vm5, %v4100_v42, 0.0 }
 0x4fe   : > { %v4103_v10 = vrot.slane %v4102_v33, 4 }
 0x500   : > { %v4104_v39 = vadd.f32 %v4103_v10, %v4102_v33 }
 0x502   : > { %v4105_v55 = vrot.slane %v4104_v39, 2 }
 0x504   : > { %v4106_v38 = vadd.f32 %v4105_v55, %v4104_v39 }
 0x506   : > { %v4107_v19 = vrot.slane %v4106_v38, 1 }
 0x508   : > { %v4108_v34 = vadd.f32 %v4107_v19, %v4106_v38 }
 0x50a   : > { %v4109_v7 = vmul.f32 0.25, %v4108_v34 }
 0x50c   : > { %v4110_v1 = vpack.c.bf16 %v4109_v7, %v4109_v7 }
 0x50e   : > { %4547 = vmatmul.mubr.bf16.vlgmr.msra.gmra.mrb[12].mxu1 %v4110_v1 }
 0x5e1   : > { %v4210_v40 = vpop.f32.mrb[12].mxu1 }
 0x5e2   : > { %v4211_v43 = vadd.f32 %v4210_v40, %v4127_v58  ;;  %v4548_v17 = vpop.f32.mrb[13].mxu1 }
 0x5e3   : > { %v4213_v63 = vpop.f32.mrb[14].mxu1 }
 0x5e4   : > { %v4216_v11 = vmax.f32 %v4211_v43, 0.0  ;;  %v4549_v47 = vpop.f32.mrb[15].mxu1 }
 0x5e6   : > { %v4218_v9 = vmul.f32 %v4217_v8, %v4216_v11 }
 0x5e8   : > { %v4219_v18 = vsel %vm2661_vm2, %v4218_v9, 0.0 }
 0x5e9   : > { %4220 = vadd.xlane.f32.xlu0 %v4219_v18 }
 0x676   : > { %v4221_v21 = vpop.xlane.xlu0 %4220 }
 0x677   : > { %v4223_v29 = vadd.f32 %v4222_v25, %v4221_v21 }
 0x679   : > { %v4392_v37 = vmul.f32 -1.442695, %v4223_v29 }
 0x67b   : > { %4630 = vpow2.f32 %v4392_v37 }
 0x685   : > { %v4631_v0 = vpop.eup %4630 }
 0x686   : > { %v4227_v59 = vadd.f32 1.0, %v4631_v0 }
 0x688   : > { %4632 = vrcp.f32 %v4227_v59 }
 0x692   : > { %v4633_v30 = vpop.eup %4632 }
 0x693   : > { %4232 = vperm.xlu1 %4567, %v4633_v30  }
 0x712   : > { %v4233_v13 = vpop.permute.xlu1 %4232 }
 0x713   : > { %4235 = vst [vmem:[%s384_s17] sm:$0x1] %v4233_v13 }
 0x714 PF: > { %s23_s19 = sadd.s32 1, %s4644_s19  }
 0x715   : > { %p20_p4 = scmp.ge.s32.totalorder %s23_s19, 4  }
 0x717   :  { %22 = sbr.rel (!%p20_p4) target bundleno = 3 (0x3), region = 94 }

</bundles_post_ra>
